<compile_context>
chip_gen: v6e
topology: v6e:2x2x1
jax: 0.10.0
libtpu: 0.0.40
codegen_flags: <defaults>
</compile_context>

<pallas_src>
import numpy as np

import jax
import jax.numpy as jnp
from jax import lax
from jax.experimental import pallas as pl
from jax.experimental.pallas import tpu as pltpu


def _round_up(x, m):
    return (x + m - 1) // m * m


# --------------------------------------------------------------------------
# Small trace-time feature / hardware probes (all with safe fallbacks).
# --------------------------------------------------------------------------
_BUFFERED_OK = None


def _weight_buffering_kwargs():
    """pipeline_mode=pl.Buffered(1) for constant-index operands (weights), if
    the installed Pallas supports it; probed once with a tiny kernel."""
    global _BUFFERED_OK
    if _BUFFERED_OK is None:
        try:
            def _probe(x_ref, o_ref):
                o_ref[...] = x_ref[...] + 1.0

            with jax.ensure_compile_time_eval():
                fn = pl.pallas_call(
                    _probe,
                    out_shape=jax.ShapeDtypeStruct((8, 128), jnp.float32),
                    grid=(1,),
                    in_specs=[pl.BlockSpec((8, 128), lambda i: (0, 0),
                                           pipeline_mode=pl.Buffered(1))],
                    out_specs=pl.BlockSpec((8, 128), lambda i: (0, 0)),
                )
                x = jnp.ones((8, 128), jnp.float32)
                _BUFFERED_OK = bool(jnp.allclose(fn(x), x + 1.0))
        except Exception:
            _BUFFERED_OK = False
    return {"pipeline_mode": pl.Buffered(1)} if _BUFFERED_OK else {}


def _vmem_capacity_bytes():
    try:
        return int(pltpu.get_tpu_info().vmem_capacity_bytes)
    except Exception:
        return 64 << 20          # v7x-conservative default


def _default_conv2_accum():
    # v5e MXU is 4x128x128: K=128 per-tap accumulating dots are native and skip
    # the (rows, 9*width_p) patches buffer.  v6e/v7x prefer one long-K matmul.
    try:
        kind = jax.devices()[0].device_kind.lower()
    except Exception:
        return False
    return ("v5 lite" in kind) or ("v5e" in kind)


# --------------------------------------------------------------------------
# Strip sizing / VMEM budgeting.
# --------------------------------------------------------------------------
def _vmem_estimate(strip_h, W, cin_p, width_p, cout_p, x_bytes, has_ds,
                   conv2_accum):
    halo_pix = (strip_h + 2) * W
    strip_pix = strip_h * W
    est = 2 * halo_pix * cin_p * x_bytes            # x blocks, double-buffered
    est += 2 * strip_pix * cout_p * 4               # output block, double-buffered
    est += 2 * halo_pix * 3 * 4                     # mask block
    w = (cin_p * width_p + 9 * width_p * width_p + width_p * cout_p) * 2
    if has_ds:
        w += cin_p * cout_p * 2
    w += 4 * width_p * 4
    est += w                                        # weights (single-buffered)
    est += halo_pix * cin_p * x_bytes               # x assembly scratch
    est += halo_pix * width_p * (4 + 3 * 2)         # h1 f32 + 3 bf16 shifted bases
    est += 2 * strip_pix * width_p * 4              # h2, h3 (f32)
    if conv2_accum:
        est += 2 * strip_pix * width_p * 2          # a couple of live taps
    else:
        est += 2 * strip_pix * 9 * width_p * 2      # taps + patches (bf16)
    est += 2 * strip_pix * cout_p * 4               # identity + out (f32)
    return est


def _pick_strip_h(H, W, cin_p, width_p, cout_p, x_bytes, has_ds, conv2_accum,
                  budget):
    divisors = [d for d in range(H, 0, -1) if H % d == 0]
    strip_h = divisors[-1]
    for d in divisors:
        if _vmem_estimate(d, W, cin_p, width_p, cout_p, x_bytes, has_ds,
                          conv2_accum) <= budget:
            strip_h = d
            break
    # Prefer >= 2 strips so the grid pipelines and both v7x TensorCores get
    # work even at batch 1 (only when the halved strip is still a decent tile).
    if strip_h == H and H % 2 == 0 and (H // 2) * W >= 64:
        strip_h = H // 2
    return strip_h


# --------------------------------------------------------------------------
# Kernel body.
# --------------------------------------------------------------------------
def _bottleneck_body(xb_ref, xt1_ref, xt2_ref, m_ref, w1_ref, w2_ref, w3_ref,
                     wd_ref, s2_ref, b2_ref, s3_ref, b3_ref, o_ref, xbuf_ref,
                     *, W, strip_h, conv2_accum):
    cin_p = xbuf_ref.shape[1]
    width_p = w2_ref.shape[1]
    strip_pix = strip_h * W
    halo_pix = (strip_h + 2) * W

    # Assemble strip + 1-row halo as one flat (pixels, channels) slab in VMEM.
    xbuf_ref[0:strip_pix, :] = xb_ref[...].reshape(strip_pix, cin_p)
    xbuf_ref[strip_pix:strip_pix + W, :] = xt1_ref[...].reshape(W, cin_p)
    xbuf_ref[strip_pix + W:halo_pix, :] = xt2_ref[...].reshape(W, cin_p)
    x_halo = xbuf_ref[...]
    x_bf = x_halo.astype(jnp.bfloat16)

    # Prefetched 0/1 masks (no iota / div / mod in-kernel).
    m = m_ref[0]                                    # (halo_pix, 3) f32
    row_keep = m[:, 0:1] > 0.5                      # 0 on out-of-image halo rows
    left_ok = m[W:W + strip_pix, 1:2] > 0.5         # column x-1 is in range
    right_ok = m[W:W + strip_pix, 2:3] > 0.5        # column x+1 is in range

    # Shortcut path first (it is the accumulator of the final add).
    x_int = x_halo[W:W + strip_pix]                 # interior pixels of the strip
    if wd_ref is None:
        ident = x_int.astype(jnp.float32)           # pure identity kept in f32
    else:
        ident = jnp.dot(x_int.astype(jnp.bfloat16), wd_ref[...],
                        preferred_element_type=jnp.float32)

    # conv1 (1x1) -> bn2 (folded scale/bias) -> relu, on strip + halo rows.
    h1 = jnp.dot(x_bf, w1_ref[...], preferred_element_type=jnp.float32)
    h1 = jnp.maximum(h1 * s2_ref[...] + b2_ref[...], 0.0)
    # conv2's SAME zero padding: out-of-image halo rows must contribute zeros
    # (bn2's bias would otherwise leak relu(b2) into the first/last strip).
    h1 = jnp.where(row_keep, h1, 0.0)

    # conv2 (3x3, stride 1, pad 1).  Vertical taps are plain row-offset slices
    # of the halo'd buffer; only the two horizontal shifts need an XLU roll
    # plus a static column mask.  All MXU operands are bf16 (f32 accumulate).
    base = {
        0: h1.astype(jnp.bfloat16),
        1: pltpu.roll(h1, shift=halo_pix - 1, axis=0).astype(jnp.bfloat16),
        -1: pltpu.roll(h1, shift=1, axis=0).astype(jnp.bfloat16),
    }
    col_ok = {-1: left_ok, 0: None, 1: right_ok}

    taps = []
    h2 = None
    for dy in range(3):                             # tap order matches w2 (ky, kx)
        for dx in range(3):
            ox = dx - 1
            tap = base[ox][dy * W:dy * W + strip_pix]
            if col_ok[ox] is not None:
                tap = jnp.where(col_ok[ox], tap, 0)
            if conv2_accum:
                t = 3 * dy + dx
                part = jnp.dot(tap, w2_ref[t * width_p:(t + 1) * width_p, :],
                               preferred_element_type=jnp.float32)
                h2 = part if h2 is None else h2 + part
            else:
                taps.append(tap)
    if not conv2_accum:
        patches = jnp.concatenate(taps, axis=-1)    # (strip_pix, 9*width_p) bf16
        h2 = jnp.dot(patches, w2_ref[...], preferred_element_type=jnp.float32)

    # bn3 (folded) -> relu -> conv3 (1x1) -> + shortcut (no final relu).
    h3 = jnp.maximum(h2 * s3_ref[...] + b3_ref[...], 0.0)
    out = ident + jnp.dot(h3.astype(jnp.bfloat16), w3_ref[...],
                          preferred_element_type=jnp.float32)
    o_ref[...] = out.reshape(o_ref.shape).astype(o_ref.dtype)


def _make_kernel(W, strip_h, has_ds, conv2_accum):
    if has_ds:
        def kernel(xb, xt1, xt2, m, w1, w2, w3, wd, s2, b2, s3, b3, o, xbuf):
            _bottleneck_body(xb, xt1, xt2, m, w1, w2, w3, wd, s2, b2, s3, b3,
                             o, xbuf, W=W, strip_h=strip_h,
                             conv2_accum=conv2_accum)
    else:
        def kernel(xb, xt1, xt2, m, w1, w2, w3, s2, b2, s3, b3, o, xbuf):
            _bottleneck_body(xb, xt1, xt2, m, w1, w2, w3, None, s2, b2, s3, b3,
                             o, xbuf, W=W, strip_h=strip_h,
                             conv2_accum=conv2_accum)
    return kernel


# --------------------------------------------------------------------------
# Wrapper.
# --------------------------------------------------------------------------
def preact_bottleneck_nhwc(x, params, *, strip_h=None, conv2_accum=None):
    """x: (N, H, W, Cin) float32 NHWC -> (N, H, W, expansion*planes) float32."""
    w1, w2, w3, wd, s2, b2, s3, b3 = params
    N, H, W, cin = x.shape
    width = w1.shape[1]
    cout = w3.shape[1]
    assert w1.shape == (cin, width)
    assert w2.shape == (3, 3, width, width)
    assert w3.shape == (width, cout)
    assert s2.size == width and b2.size == width
    # The reference module applies bn3 (expansion*planes features) to conv2's
    # width-channel output, so it is only shape-consistent when they match.
    assert s3.size == width and b3.size == width

    has_ds = wd is not None
    if not has_ds:
        assert cin == cout, "identity shortcut requires inplanes == expansion*planes"

    if conv2_accum is None:
        conv2_accum = _default_conv2_accum()

    # Channel padding to full 128-lane tiles: dense (unmasked) output stores,
    # aligned im2col concat, uniform shapes on the shortcut add.
    cin_p = _round_up(cin, 128)
    width_p = _round_up(width, 128)
    cout_p = _round_up(cout, 128)

    w1p = jnp.pad(w1, ((0, cin_p - cin), (0, width_p - width))).astype(jnp.bfloat16)
    w2p = jnp.pad(w2, ((0, 0), (0, 0), (0, width_p - width), (0, width_p - width)))
    w2p = w2p.reshape(9 * width_p, width_p).astype(jnp.bfloat16)
    w3p = jnp.pad(w3, ((0, width_p - width), (0, cout_p - cout))).astype(jnp.bfloat16)
    wdp = (jnp.pad(wd, ((0, cin_p - cin), (0, cout_p - cout))).astype(jnp.bfloat16)
           if has_ds else None)

    def _vec(v):
        return jnp.pad(v.reshape(1, width).astype(jnp.float32),
                       ((0, 0), (0, width_p - width)))
    s2p, b2p, s3p, b3p = _vec(s2), _vec(b2), _vec(s3), _vec(b3)

    # x is streamed bf16 when the shortcut is a 1x1 conv (every consumer is a
    # bf16 matmul); kept f32 for the pure-identity shortcut so the residual add
    # stays full precision.  One zero row above/below the image supplies the
    # conv2 SAME-padding support rows for the halo reads.
    x_dtype = jnp.bfloat16 if has_ds else jnp.float32
    x_bytes = 2 if has_ds else 4
    x_pad = jnp.pad(x, ((0, 0), (1, 1), (0, 0), (0, cin_p - cin))).astype(x_dtype)

    phys_vmem = _vmem_capacity_bytes()
    if strip_h is None:
        strip_h = _pick_strip_h(H, W, cin_p, width_p, cout_p, x_bytes, has_ds,
                                conv2_accum, budget=int(phys_vmem * 0.45))
    assert H % strip_h == 0
    S = H // strip_h
    strip_pix = strip_h * W
    halo_pix = (strip_h + 2) * W

    est = _vmem_estimate(strip_h, W, cin_p, width_p, cout_p, x_bytes, has_ds,
                         conv2_accum)
    vmem_limit = int(min(phys_vmem * 0.95, max(32 << 20, 2 * est)))

    # Prefetched 0/1 masks per strip: [row_keep, left_ok, right_ok].
    p = np.arange(halo_pix)
    col = p % W
    left = (col != 0).astype(np.float32)
    right = (col != W - 1).astype(np.float32)
    masks_np = np.ones((S, halo_pix, 3), np.float32)
    for s in range(S):
        keep = np.ones(halo_pix, np.float32)
        if s == 0:
            keep[:W] = 0.0
        if s == S - 1:
            keep[halo_pix - W:] = 0.0
        masks_np[s, :, 0] = keep
        masks_np[s, :, 1] = left
        masks_np[s, :, 2] = right
    masks = jnp.asarray(masks_np)

    wbuf = _weight_buffering_kwargs()

    def _const_spec(shape):
        nd = len(shape)
        return pl.BlockSpec(shape, lambda n, s: (0,) * nd, **wbuf)

    # x_pad is passed three times: a strip-sized body block (which, thanks to
    # the H padding, already starts one row above the strip = the top halo)
    # plus two single-row blocks that supply the bottom halo.
    body_spec = pl.BlockSpec((1, strip_h, W, cin_p), lambda n, s: (n, s, 0, 0))
    tail1_spec = pl.BlockSpec((1, 1, W, cin_p),
                              lambda n, s: (n, (s + 1) * strip_h, 0, 0))
    tail2_spec = pl.BlockSpec((1, 1, W, cin_p),
                              lambda n, s: (n, (s + 1) * strip_h + 1, 0, 0))
    mask_spec = pl.BlockSpec((1, halo_pix, 3), lambda n, s: (s, 0, 0))
    out_spec = pl.BlockSpec((1, strip_h, W, cout_p), lambda n, s: (n, s, 0, 0))

    in_specs = [body_spec, tail1_spec, tail2_spec, mask_spec,
                _const_spec(w1p.shape), _const_spec(w2p.shape),
                _const_spec(w3p.shape)]
    args = [x_pad, x_pad, x_pad, masks, w1p, w2p, w3p]
    if has_ds:
        in_specs.append(_const_spec(wdp.shape))
        args.append(wdp)
    in_specs += [_const_spec((1, width_p))] * 4
    args += [s2p, b2p, s3p, b3p]

    out = pl.pallas_call(
        _make_kernel(W, strip_h, has_ds, conv2_accum),
        out_shape=jax.ShapeDtypeStruct((N, H, W, cout_p), jnp.float32),
        grid_spec=pltpu.PrefetchScalarGridSpec(
            num_scalar_prefetch=0,
            grid=(N, S),
            in_specs=in_specs,
            out_specs=out_spec,
            scratch_shapes=[pltpu.VMEM((halo_pix, cin_p), x_dtype)],
        ),
        compiler_params=pltpu.CompilerParams(
            dimension_semantics=("parallel", "parallel"),
            vmem_limit_bytes=vmem_limit,
        ),
    )(*args)

    if cout_p != cout:
        out = out[..., :cout]
    return out


def preact_bottleneck(x_nchw, params, **kw):
    """PyTorch-layout (NCHW) convenience wrapper.  Prefer the NHWC entry point
    end-to-end to avoid the two HBM round-trip transposes."""
    x = jnp.transpose(x_nchw, (0, 2, 3, 1))
    out = preact_bottleneck_nhwc(x, params, **kw)
    return jnp.transpose(out, (0, 3, 1, 2))


# --------------------------------------------------------------------------
# Pure-JAX reference + parameter construction (for the self-test).
# --------------------------------------------------------------------------
def _reference_nhwc(x, params):
    w1, w2, w3, wd, s2, b2, s3, b3 = params
    dn = ('NHWC', 'HWIO', 'NHWC')

    def conv1x1(a, w):
        return lax.conv_general_dilated(a, w.reshape(1, 1, *w.shape), (1, 1),
                                        'VALID', dimension_numbers=dn)

    h = conv1x1(x, w1)
    h = jnp.maximum(h * s2.reshape(1, 1, 1, -1) + b2.reshape(1, 1, 1, -1), 0.0)
    h = lax.conv_general_dilated(h, w2, (1, 1), 'SAME', dimension_numbers=dn)
    h = jnp.maximum(h * s3.reshape(1, 1, 1, -1) + b3.reshape(1, 1, 1, -1), 0.0)
    h = conv1x1(h, w3)
    ident = x if wd is None else conv1x1(x, wd)
    return h + ident


def _make_params(key, inplanes, planes, base_width=256, groups=1,
                 expansion=4, eps=1e-5):
    width = int(planes * (base_width / 64.0)) * groups
    cout = planes * expansion
    # The reference module applies bn3 (cout features) to conv2's width-channel
    # output, so it is only shape-consistent when width == expansion*planes.
    assert width == cout
    ks = jax.random.split(key, 12)
    w1 = jax.random.normal(ks[0], (inplanes, width), jnp.float32) * 0.1
    w2 = jax.random.normal(ks[1], (3, 3, width, width), jnp.float32) * 0.05
    w3 = jax.random.normal(ks[2], (width, cout), jnp.float32) * 0.1
    has_ds = inplanes != cout                       # stride fixed to 1 here
    wd = (jax.random.normal(ks[3], (inplanes, cout), jnp.float32) * 0.1
          if has_ds else None)
    g2 = 1.0 + 0.1 * jax.random.normal(ks[4], (width,), jnp.float32)
    be2 = 0.1 * jax.random.normal(ks[5], (width,), jnp.float32)
    m2 = 0.1 * jax.random.normal(ks[6], (width,), jnp.float32)
    v2 = jax.random.uniform(ks[7], (width,), jnp.float32, 0.5, 1.5)
    g3 = 1.0 + 0.1 * jax.random.normal(ks[8], (cout,), jnp.float32)
    be3 = 0.1 * jax.random.normal(ks[9], (cout,), jnp.float32)
    m3 = 0.1 * jax.random.normal(ks[10], (cout,), jnp.float32)
    v3 = jax.random.uniform(ks[11], (cout,), jnp.float32, 0.5, 1.5)
    s2 = g2 / jnp.sqrt(v2 + eps)
    b2 = be2 - m2 * s2
    s3 = g3 / jnp.sqrt(v3 + eps)
    b3 = be3 - m3 * s3
    return (w1, w2, w3, wd, s2, b2, s3, b3)


if __name__ == "__main__":
    _weight_buffering_kwargs()      # probe pl.Buffered(1) support eagerly

    key = jax.random.PRNGKey(0)
    k_a, k_b, k_pa, k_pb = jax.random.split(key, 4)

    N, H, W = 2, 16, 16
    planes = 8

    # Config A: inplanes != expansion*planes -> 1x1-conv downsample path.
    inplanes_a = 16
    params_a = _make_params(k_pa, inplanes_a, planes)
    x_a = jax.random.normal(k_a, (N, H, W, inplanes_a), jnp.float32)  # NHWC

    # Config B: inplanes == expansion*planes -> pure identity shortcut.
    inplanes_b = 32
    params_b = _make_params(k_pb, inplanes_b, planes)
    x_b = jax.random.normal(k_b, (N, H, W, inplanes_b), jnp.float32)  # NHWC

    fn = jax.jit(preact_bottleneck_nhwc)
    for name, x, params in (("downsample", x_a, params_a),
                            ("identity", x_b, params_b)):
        out = jax.block_until_ready(fn(x, params))
        ref = jax.block_until_ready(_reference_nhwc(x, params))
        if out.shape != ref.shape:
            raise AssertionError(f"{name}: shape {out.shape} != {ref.shape}")
        if not jnp.allclose(out, ref, atol=3e-2, rtol=3e-2):
            err = float(jnp.max(jnp.abs(out - ref)))
            raise AssertionError(
                f"{name}: Pallas kernel mismatch, max abs err {err:.4f}")

    print("KERNEL_OK")
</pallas_src>

<mosaic_0001>
module attributes {stable_mosaic.version = 11 : i64} {
  func.func @_probe(%arg0: i32, %arg1: memref<8x128xf32, #tpu.memory_space<vmem>>, %arg2: memref<8x128xf32, #tpu.memory_space<vmem>>) attributes {dimension_semantics = [#tpu.dimension_semantics<arbitrary>], iteration_bounds = array<i64: 1>, scalar_prefetch = 0 : i64, scratch_operands = 0 : i64, tpu.core_type = #tpu.core_type<tc>, window_params = [{pipeline_mode = #tpu.pipeline_mode<synchronous>, transform_indices = @transform_0, window_bounds = array<i64: 8, 128>}, {pipeline_mode = #tpu.pipeline_mode<synchronous>, transform_indices = @transform_1, window_bounds = array<i64: 8, 128>}]} {
    %c0 = arith.constant 0 : index
    %c0_0 = arith.constant 0 : index
    %0 = vector.load %arg1[%c0, %c0_0] : memref<8x128xf32, #tpu.memory_space<vmem>>, vector<8x128xf32>
    %cst = arith.constant 1.000000e+00 : f32
    %1 = vector.broadcast %cst : f32 to vector<8x128xf32>
    %2 = arith.addf %0, %1 : vector<8x128xf32>
    %c0_1 = arith.constant 0 : index
    %c0_2 = arith.constant 0 : index
    %3 = vector.load %arg2[%c0_1, %c0_2] : memref<8x128xf32, #tpu.memory_space<vmem>>, vector<8x128xf32>
    tpu.vector_store %arg2[%c0_1, %c0_2], %2 {strides = array<i32>} : memref<8x128xf32, #tpu.memory_space<vmem>>, vector<8x128xf32>,
    return
  }
  func.func @transform_0(%arg0: i32) -> (i32, i32) {
    %c0_i32 = arith.constant 0 : i32
    %c0_i32_0 = arith.constant 0 : i32
    %c0_i32_1 = arith.constant 0 : i32
    return %c0_i32, %c0_i32_0 : i32, i32
  }
  func.func @transform_1(%arg0: i32) -> (i32, i32) {
    %c0_i32 = arith.constant 0 : i32
    %c0_i32_0 = arith.constant 0 : i32
    %c0_i32_1 = arith.constant 0 : i32
    return %c0_i32, %c0_i32_0 : i32, i32
  }
}

module attributes {stable_mosaic.version = 11 : i64} {
  func.func @kernel(%arg0: i32, %arg1: i32, %arg2: memref<1x8x16x128xbf16, #tpu.memory_space<vmem>>, %arg3: memref<1x1x16x128xbf16, #tpu.memory_space<vmem>>, %arg4: memref<1x1x16x128xbf16, #tpu.memory_space<vmem>>, %arg5: memref<1x160x3xf32, #tpu.memory_space<vmem>>, %arg6: memref<128x128xbf16, #tpu.memory_space<vmem>>, %arg7: memref<1152x128xbf16, #tpu.memory_space<vmem>>, %arg8: memref<128x128xbf16, #tpu.memory_space<vmem>>, %arg9: memref<128x128xbf16, #tpu.memory_space<vmem>>, %arg10: memref<1x128xf32, #tpu.memory_space<vmem>>, %arg11: memref<1x128xf32, #tpu.memory_space<vmem>>, %arg12: memref<1x128xf32, #tpu.memory_space<vmem>>, %arg13: memref<1x128xf32, #tpu.memory_space<vmem>>, %arg14: memref<1x8x16x128xf32, #tpu.memory_space<vmem>>, %arg15: memref<160x128xbf16, #tpu.memory_space<vmem>>) attributes {dimension_semantics = [#tpu.dimension_semantics<parallel>, #tpu.dimension_semantics<parallel>], iteration_bounds = array<i64: 2, 2>, scalar_prefetch = 0 : i64, scratch_operands = 1 : i64, tpu.core_type = #tpu.core_type<tc>, window_params = [{transform_indices = @transform_0, window_bounds = array<i64: 1, 8, 16, 128>}, {transform_indices = @transform_1, window_bounds = array<i64: 1, 1, 16, 128>}, {transform_indices = @transform_2, window_bounds = array<i64: 1, 1, 16, 128>}, {transform_indices = @transform_3, window_bounds = array<i64: 1, 160, 3>}, {pipeline_mode = #tpu.pipeline_mode<synchronous>, transform_indices = @transform_4, window_bounds = array<i64: 128, 128>}, {pipeline_mode = #tpu.pipeline_mode<synchronous>, transform_indices = @transform_5, window_bounds = array<i64: 1152, 128>}, {pipeline_mode = #tpu.pipeline_mode<synchronous>, transform_indices = @transform_6, window_bounds = array<i64: 128, 128>}, {pipeline_mode = #tpu.pipeline_mode<synchronous>, transform_indices = @transform_7, window_bounds = array<i64: 128, 128>}, {pipeline_mode = #tpu.pipeline_mode<synchronous>, transform_indices = @transform_8, window_bounds = array<i64: 1, 128>}, {pipeline_mode = #tpu.pipeline_mode<synchronous>, transform_indices = @transform_9, window_bounds = array<i64: 1, 128>}, {pipeline_mode = #tpu.pipeline_mode<synchronous>, transform_indices = @transform_10, window_bounds = array<i64: 1, 128>}, {pipeline_mode = #tpu.pipeline_mode<synchronous>, transform_indices = @transform_11, window_bounds = array<i64: 1, 128>}, {transform_indices = @transform_12, window_bounds = array<i64: 1, 8, 16, 128>}]} {
    %c0 = arith.constant 0 : index
    %c0_0 = arith.constant 0 : index
    %c0_1 = arith.constant 0 : index
    %c0_2 = arith.constant 0 : index
    %0 = vector.load %arg2[%c0, %c0_0, %c0_1, %c0_2] : memref<1x8x16x128xbf16, #tpu.memory_space<vmem>>, vector<1x8x16x128xbf16>
    %1 = vector.shape_cast %0 : vector<1x8x16x128xbf16> to vector<128x128xbf16>
    %c0_3 = arith.constant 0 : index
    %c0_4 = arith.constant 0 : index
    %2 = vector.load %arg15[%c0_3, %c0_4] : memref<160x128xbf16, #tpu.memory_space<vmem>>, vector<128x128xbf16>
    tpu.vector_store %arg15[%c0_3, %c0_4], %1 {strides = array<i32>} : memref<160x128xbf16, #tpu.memory_space<vmem>>, vector<128x128xbf16>,
    %c0_5 = arith.constant 0 : index
    %c0_6 = arith.constant 0 : index
    %c0_7 = arith.constant 0 : index
    %c0_8 = arith.constant 0 : index
    %3 = vector.load %arg3[%c0_5, %c0_6, %c0_7, %c0_8] : memref<1x1x16x128xbf16, #tpu.memory_space<vmem>>, vector<1x1x16x128xbf16>
    %4 = vector.shape_cast %3 : vector<1x1x16x128xbf16> to vector<16x128xbf16>
    %c128 = arith.constant 128 : index
    %c0_9 = arith.constant 0 : index
    %5 = vector.load %arg15[%c128, %c0_9] : memref<160x128xbf16, #tpu.memory_space<vmem>>, vector<16x128xbf16>
    tpu.vector_store %arg15[%c128, %c0_9], %4 {strides = array<i32>} : memref<160x128xbf16, #tpu.memory_space<vmem>>, vector<16x128xbf16>,
    %c0_10 = arith.constant 0 : index
    %c0_11 = arith.constant 0 : index
    %c0_12 = arith.constant 0 : index
    %c0_13 = arith.constant 0 : index
    %6 = vector.load %arg4[%c0_10, %c0_11, %c0_12, %c0_13] : memref<1x1x16x128xbf16, #tpu.memory_space<vmem>>, vector<1x1x16x128xbf16>
    %7 = vector.shape_cast %6 : vector<1x1x16x128xbf16> to vector<16x128xbf16>
    %c144 = arith.constant 144 : index
    %c0_14 = arith.constant 0 : index
    %8 = vector.load %arg15[%c144, %c0_14] : memref<160x128xbf16, #tpu.memory_space<vmem>>, vector<16x128xbf16>
    tpu.vector_store %arg15[%c144, %c0_14], %7 {strides = array<i32>} : memref<160x128xbf16, #tpu.memory_space<vmem>>, vector<16x128xbf16>,
    %c0_15 = arith.constant 0 : index
    %c0_16 = arith.constant 0 : index
    %9 = vector.load %arg15[%c0_15, %c0_16] : memref<160x128xbf16, #tpu.memory_space<vmem>>, vector<160x128xbf16>
    %c0_17 = arith.constant 0 : index
    %c0_18 = arith.constant 0 : index
    %c0_19 = arith.constant 0 : index
    %10 = vector.load %arg5[%c0_17, %c0_18, %c0_19] : memref<1x160x3xf32, #tpu.memory_space<vmem>>, vector<1x160x3xf32>
    %11 = vector.shape_cast %10 : vector<1x160x3xf32> to vector<160x3xf32>
    %12 = vector.extract_strided_slice %11 {offsets = [0, 0], sizes = [160, 1], strides = [1, 1]} : vector<160x3xf32> to vector<160x1xf32>
    %cst = arith.constant 5.000000e-01 : f32
    %13 = vector.broadcast %cst : f32 to vector<160x1xf32>
    %14 = arith.cmpf ogt, %12, %13 : vector<160x1xf32>
    %15 = vector.extract_strided_slice %11 {offsets = [16, 1], sizes = [128, 1], strides = [1, 1]} : vector<160x3xf32> to vector<128x1xf32>
    %cst_20 = arith.constant 5.000000e-01 : f32
    %16 = vector.broadcast %cst_20 : f32 to vector<128x1xf32>
    %17 = arith.cmpf ogt, %15, %16 : vector<128x1xf32>
    %18 = vector.extract_strided_slice %11 {offsets = [16, 2], sizes = [128, 1], strides = [1, 1]} : vector<160x3xf32> to vector<128x1xf32>
    %cst_21 = arith.constant 5.000000e-01 : f32
    %19 = vector.broadcast %cst_21 : f32 to vector<128x1xf32>
    %20 = arith.cmpf ogt, %18, %19 : vector<128x1xf32>
    %21 = vector.extract_strided_slice %9 {offsets = [16, 0], sizes = [128, 128], strides = [1, 1]} : vector<160x128xbf16> to vector<128x128xbf16>
    %c0_22 = arith.constant 0 : index
    %c0_23 = arith.constant 0 : index
    %22 = vector.load %arg9[%c0_22, %c0_23] : memref<128x128xbf16, #tpu.memory_space<vmem>>, vector<128x128xbf16>
    %cst_24 = arith.constant dense<0.000000e+00> : vector<128x128xf32>
    %23 = tpu.matmul %21, %22, %cst_24 {dimension_numbers = #tpu.dot_dimension_numbers<[1], [0], [0], [1], [0, 0, 1, 1], [], []>} : vector<128x128xbf16>, vector<128x128xbf16>, vector<128x128xf32> -> vector<128x128xf32>
    %c0_25 = arith.constant 0 : index
    %c0_26 = arith.constant 0 : index
    %24 = vector.load %arg6[%c0_25, %c0_26] : memref<128x128xbf16, #tpu.memory_space<vmem>>, vector<128x128xbf16>
    %cst_27 = arith.constant dense<0.000000e+00> : vector<160x128xf32>
    %25 = tpu.matmul %9, %24, %cst_27 {dimension_numbers = #tpu.dot_dimension_numbers<[1], [0], [0], [1], [0, 0, 1, 1], [], []>} : vector<160x128xbf16>, vector<128x128xbf16>, vector<160x128xf32> -> vector<160x128xf32>
    %c0_28 = arith.constant 0 : index
    %c0_29 = arith.constant 0 : index
    %26 = vector.load %arg10[%c0_28, %c0_29] : memref<1x128xf32, #tpu.memory_space<vmem>>, vector<1x128xf32>
    %27 = vector.broadcast %26 : vector<1x128xf32> to vector<160x128xf32>
    %28 = arith.mulf %25, %27 : vector<160x128xf32>
    %c0_30 = arith.constant 0 : index
    %c0_31 = arith.constant 0 : index
    %29 = vector.load %arg11[%c0_30, %c0_31] : memref<1x128xf32, #tpu.memory_space<vmem>>, vector<1x128xf32>
    %30 = vector.broadcast %29 : vector<1x128xf32> to vector<160x128xf32>
    %31 = arith.addf %28, %30 : vector<160x128xf32>
    %cst_32 = arith.constant 0.000000e+00 : f32
    %32 = vector.broadcast %cst_32 : f32 to vector<160x128xf32>
    %33 = arith.maximumf %31, %32 : vector<160x128xf32>
    %cst_33 = arith.constant 0.000000e+00 : f32
    %34 = vector.shape_cast %14 : vector<160x1xi1> to vector<160x1xi1>
    %35 = vector.broadcast %34 : vector<160x1xi1> to vector<160x128xi1>
    %36 = vector.broadcast %cst_33 : f32 to vector<160x128xf32>
    %37 = arith.select %35, %33, %36 : vector<160x128xi1>, vector<160x128xf32>
    %38 = arith.truncf %37 : vector<160x128xf32> to vector<160x128xbf16>
    %c159_i32 = arith.constant 159 : i32
    %39 = tpu.dynamic_rotate %37 by %c159_i32 dim 0 : vector<160x128xf32>, i32 -> vector<160x128xf32>
    %40 = arith.truncf %39 : vector<160x128xf32> to vector<160x128xbf16>
    %c1_i32 = arith.constant 1 : i32
    %41 = tpu.dynamic_rotate %37 by %c1_i32 dim 0 : vector<160x128xf32>, i32 -> vector<160x128xf32>
    %42 = arith.truncf %41 : vector<160x128xf32> to vector<160x128xbf16>
    %43 = vector.extract_strided_slice %42 {offsets = [0, 0], sizes = [128, 128], strides = [1, 1]} : vector<160x128xbf16> to vector<128x128xbf16>
    %c0_i32 = arith.constant 0 : i32
    %44 = arith.sitofp %c0_i32 : i32 to bf16
    %45 = vector.shape_cast %17 : vector<128x1xi1> to vector<128x1xi1>
    %46 = vector.broadcast %45 : vector<128x1xi1> to vector<128x128xi1>
    %47 = vector.broadcast %44 : bf16 to vector<128x128xbf16>
    %48 = arith.select %46, %43, %47 : vector<128x128xi1>, vector<128x128xbf16>
    %49 = vector.extract_strided_slice %38 {offsets = [0, 0], sizes = [128, 128], strides = [1, 1]} : vector<160x128xbf16> to vector<128x128xbf16>
    %50 = vector.extract_strided_slice %40 {offsets = [0, 0], sizes = [128, 128], strides = [1, 1]} : vector<160x128xbf16> to vector<128x128xbf16>
    %c0_i32_34 = arith.constant 0 : i32
    %51 = arith.sitofp %c0_i32_34 : i32 to bf16
    %52 = vector.shape_cast %20 : vector<128x1xi1> to vector<128x1xi1>
    %53 = vector.broadcast %52 : vector<128x1xi1> to vector<128x128xi1>
    %54 = vector.broadcast %51 : bf16 to vector<128x128xbf16>
    %55 = arith.select %53, %50, %54 : vector<128x128xi1>, vector<128x128xbf16>
    %56 = vector.extract_strided_slice %42 {offsets = [16, 0], sizes = [128, 128], strides = [1, 1]} : vector<160x128xbf16> to vector<128x128xbf16>
    %c0_i32_35 = arith.constant 0 : i32
    %57 = arith.sitofp %c0_i32_35 : i32 to bf16
    %58 = vector.shape_cast %17 : vector<128x1xi1> to vector<128x1xi1>
    %59 = vector.broadcast %58 : vector<128x1xi1> to vector<128x128xi1>
    %60 = vector.broadcast %57 : bf16 to vector<128x128xbf16>
    %61 = arith.select %59, %56, %60 : vector<128x128xi1>, vector<128x128xbf16>
    %62 = vector.extract_strided_slice %38 {offsets = [16, 0], sizes = [128, 128], strides = [1, 1]} : vector<160x128xbf16> to vector<128x128xbf16>
    %63 = vector.extract_strided_slice %40 {offsets = [16, 0], sizes = [128, 128], strides = [1, 1]} : vector<160x128xbf16> to vector<128x128xbf16>
    %c0_i32_36 = arith.constant 0 : i32
    %64 = arith.sitofp %c0_i32_36 : i32 to bf16
    %65 = vector.shape_cast %20 : vector<128x1xi1> to vector<128x1xi1>
    %66 = vector.broadcast %65 : vector<128x1xi1> to vector<128x128xi1>
    %67 = vector.broadcast %64 : bf16 to vector<128x128xbf16>
    %68 = arith.select %66, %63, %67 : vector<128x128xi1>, vector<128x128xbf16>
    %69 = vector.extract_strided_slice %42 {offsets = [32, 0], sizes = [128, 128], strides = [1, 1]} : vector<160x128xbf16> to vector<128x128xbf16>
    %c0_i32_37 = arith.constant 0 : i32
    %70 = arith.sitofp %c0_i32_37 : i32 to bf16
    %71 = vector.shape_cast %17 : vector<128x1xi1> to vector<128x1xi1>
    %72 = vector.broadcast %71 : vector<128x1xi1> to vector<128x128xi1>
    %73 = vector.broadcast %70 : bf16 to vector<128x128xbf16>
    %74 = arith.select %72, %69, %73 : vector<128x128xi1>, vector<128x128xbf16>
    %75 = vector.extract_strided_slice %38 {offsets = [32, 0], sizes = [128, 128], strides = [1, 1]} : vector<160x128xbf16> to vector<128x128xbf16>
    %76 = vector.extract_strided_slice %40 {offsets = [32, 0], sizes = [128, 128], strides = [1, 1]} : vector<160x128xbf16> to vector<128x128xbf16>
    %c0_i32_38 = arith.constant 0 : i32
    %77 = arith.sitofp %c0_i32_38 : i32 to bf16
    %78 = vector.shape_cast %20 : vector<128x1xi1> to vector<128x1xi1>
    %79 = vector.broadcast %78 : vector<128x1xi1> to vector<128x128xi1>
    %80 = vector.broadcast %77 : bf16 to vector<128x128xbf16>
    %81 = arith.select %79, %76, %80 : vector<128x128xi1>, vector<128x128xbf16>
    %82 = tpu.concatenate %48, %49, %55, %61, %62, %68, %74, %75, %81 in 1 : vector<128x128xbf16>, vector<128x128xbf16>, vector<128x128xbf16>, vector<128x128xbf16>, vector<128x128xbf16>, vector<128x128xbf16>, vector<128x128xbf16>, vector<128x128xbf16>, vector<128x128xbf16> -> vector<128x1152xbf16>
    %c0_39 = arith.constant 0 : index
    %c0_40 = arith.constant 0 : index
    %83 = vector.load %arg7[%c0_39, %c0_40] : memref<1152x128xbf16, #tpu.memory_space<vmem>>, vector<1152x128xbf16>
    %cst_41 = arith.constant dense<0.000000e+00> : vector<128x128xf32>
    %84 = tpu.matmul %82, %83, %cst_41 {dimension_numbers = #tpu.dot_dimension_numbers<[1], [0], [0], [1], [0, 0, 1, 1], [], []>} : vector<128x1152xbf16>, vector<1152x128xbf16>, vector<128x128xf32> -> vector<128x128xf32>
    %c0_42 = arith.constant 0 : index
    %c0_43 = arith.constant 0 : index
    %85 = vector.load %arg12[%c0_42, %c0_43] : memref<1x128xf32, #tpu.memory_space<vmem>>, vector<1x128xf32>
    %86 = vector.broadcast %85 : vector<1x128xf32> to vector<128x128xf32>
    %87 = arith.mulf %84, %86 : vector<128x128xf32>
    %c0_44 = arith.constant 0 : index
    %c0_45 = arith.constant 0 : index
    %88 = vector.load %arg13[%c0_44, %c0_45] : memref<1x128xf32, #tpu.memory_space<vmem>>, vector<1x128xf32>
    %89 = vector.broadcast %88 : vector<1x128xf32> to vector<128x128xf32>
    %90 = arith.addf %87, %89 : vector<128x128xf32>
    %cst_46 = arith.constant 0.000000e+00 : f32
    %91 = vector.broadcast %cst_46 : f32 to vector<128x128xf32>
    %92 = arith.maximumf %90, %91 : vector<128x128xf32>
    %93 = arith.truncf %92 : vector<128x128xf32> to vector<128x128xbf16>
    %c0_47 = arith.constant 0 : index
    %c0_48 = arith.constant 0 : index
    %94 = vector.load %arg8[%c0_47, %c0_48] : memref<128x128xbf16, #tpu.memory_space<vmem>>, vector<128x128xbf16>
    %cst_49 = arith.constant dense<0.000000e+00> : vector<128x128xf32>
    %95 = tpu.matmul %93, %94, %cst_49 {dimension_numbers = #tpu.dot_dimension_numbers<[1], [0], [0], [1], [0, 0, 1, 1], [], []>} : vector<128x128xbf16>, vector<128x128xbf16>, vector<128x128xf32> -> vector<128x128xf32>
    %96 = arith.addf %23, %95 : vector<128x128xf32>
    %97 = vector.shape_cast %96 : vector<128x128xf32> to vector<1x8x16x128xf32>
    %c0_50 = arith.constant 0 : index
    %c0_51 = arith.constant 0 : index
    %c0_52 = arith.constant 0 : index
    %c0_53 = arith.constant 0 : index
    %98 = vector.load %arg14[%c0_50, %c0_51, %c0_52, %c0_53] : memref<1x8x16x128xf32, #tpu.memory_space<vmem>>, vector<1x8x16x128xf32>
    tpu.vector_store %arg14[%c0_50, %c0_51, %c0_52, %c0_53], %97 {strides = array<i32>} : memref<1x8x16x128xf32, #tpu.memory_space<vmem>>, vector<1x8x16x128xf32>,
    return
  }
  func.func @transform_0(%arg0: i32, %arg1: i32) -> (i32, i32, i32, i32) {
    %c0_i32 = arith.constant 0 : i32
    %c0_i32_0 = arith.constant 0 : i32
    %c0_i32_1 = arith.constant 0 : i32
    return %arg0, %arg1, %c0_i32, %c0_i32_0 : i32, i32, i32, i32
  }
  func.func @transform_1(%arg0: i32, %arg1: i32) -> (i32, i32, i32, i32) {
    %c1_i32 = arith.constant 1 : i32
    %0 = arith.addi %arg1, %c1_i32 : i32
    %c8_i32 = arith.constant 8 : i32
    %1 = arith.muli %0, %c8_i32 : i32
    %c0_i32 = arith.constant 0 : i32
    %c0_i32_0 = arith.constant 0 : i32
    %c0_i32_1 = arith.constant 0 : i32
    return %arg0, %1, %c0_i32, %c0_i32_0 : i32, i32, i32, i32
  }
  func.func @transform_2(%arg0: i32, %arg1: i32) -> (i32, i32, i32, i32) {
    %c1_i32 = arith.constant 1 : i32
    %0 = arith.addi %arg1, %c1_i32 : i32
    %c8_i32 = arith.constant 8 : i32
    %1 = arith.muli %0, %c8_i32 : i32
    %c1_i32_0 = arith.constant 1 : i32
    %2 = arith.addi %1, %c1_i32_0 : i32
    %c0_i32 = arith.constant 0 : i32
    %c0_i32_1 = arith.constant 0 : i32
    %c0_i32_2 = arith.constant 0 : i32
    return %arg0, %2, %c0_i32, %c0_i32_1 : i32, i32, i32, i32
  }
  func.func @transform_3(%arg0: i32, %arg1: i32) -> (i32, i32, i32) {
    %c0_i32 = arith.constant 0 : i32
    %c0_i32_0 = arith.constant 0 : i32
    %c0_i32_1 = arith.constant 0 : i32
    return %arg1, %c0_i32, %c0_i32_0 : i32, i32, i32
  }
  func.func @transform_4(%arg0: i32, %arg1: i32) -> (i32, i32) {
    %c0_i32 = arith.constant 0 : i32
    %c0_i32_0 = arith.constant 0 : i32
    %c0_i32_1 = arith.constant 0 : i32
    return %c0_i32, %c0_i32_0 : i32, i32
  }
  func.func @transform_5(%arg0: i32, %arg1: i32) -> (i32, i32) {
    %c0_i32 = arith.constant 0 : i32
    %c0_i32_0 = arith.constant 0 : i32
    %c0_i32_1 = arith.constant 0 : i32
    return %c0_i32, %c0_i32_0 : i32, i32
  }
  func.func @transform_6(%arg0: i32, %arg1: i32) -> (i32, i32) {
    %c0_i32 = arith.constant 0 : i32
    %c0_i32_0 = arith.constant 0 : i32
    %c0_i32_1 = arith.constant 0 : i32
    return %c0_i32, %c0_i32_0 : i32, i32
  }
  func.func @transform_7(%arg0: i32, %arg1: i32) -> (i32, i32) {
    %c0_i32 = arith.constant 0 : i32
    %c0_i32_0 = arith.constant 0 : i32
    %c0_i32_1 = arith.constant 0 : i32
    return %c0_i32, %c0_i32_0 : i32, i32
  }
  func.func @transform_8(%arg0: i32, %arg1: i32) -> (i32, i32) {
    %c0_i32 = arith.constant 0 : i32
    %c0_i32_0 = arith.constant 0 : i32
    %c0_i32_1 = arith.constant 0 : i32
    return %c0_i32, %c0_i32_0 : i32, i32
  }
  func.func @transform_9(%arg0: i32, %arg1: i32) -> (i32, i32) {
    %c0_i32 = arith.constant 0 : i32
    %c0_i32_0 = arith.constant 0 : i32
    %c0_i32_1 = arith.constant 0 : i32
    return %c0_i32, %c0_i32_0 : i32, i32
  }
  func.func @transform_10(%arg0: i32, %arg1: i32) -> (i32, i32) {
    %c0_i32 = arith.constant 0 : i32
    %c0_i32_0 = arith.constant 0 : i32
    %c0_i32_1 = arith.constant 0 : i32
    return %c0_i32, %c0_i32_0 : i32, i32
  }
  func.func @transform_11(%arg0: i32, %arg1: i32) -> (i32, i32) {
    %c0_i32 = arith.constant 0 : i32
    %c0_i32_0 = arith.constant 0 : i32
    %c0_i32_1 = arith.constant 0 : i32
    return %c0_i32, %c0_i32_0 : i32, i32
  }
  func.func @transform_12(%arg0: i32, %arg1: i32) -> (i32, i32, i32, i32) {
    %c0_i32 = arith.constant 0 : i32
    %c0_i32_0 = arith.constant 0 : i32
    %c0_i32_1 = arith.constant 0 : i32
    return %arg0, %arg1, %c0_i32, %c0_i32_0 : i32, i32, i32, i32
  }
}

</mosaic_0001>

<bundles_post_ra>
// kernel: tpu_custom_call.1
= control target key start
LH: loop header
LB: loop body
LE: loop exit
PB: predicated region body
PF: predicated region fallthrough
CT: control target
= control target key end

     0   :  { %6 = vsyncpa [#allocation3], 0  ;;  %s103_s0 = inlined_call_operand.hbm [shape: f32[8,128], index: 0, kind: input, shape index: {}]   ;;  %s104_s1 = inlined_call_operand.hbm [shape: f32[8,128], index: 1, kind: output, shape index: {}]  }
   0x1   :  { %7 = vsyncpa [#allocation4], 0  ;;  %s85_s6 = smov [#allocation2]  }
   0x2   :  { %s14_s7 = sshll.u32 %s85_s6, 4  ;;  %s15_s7 = int_to_ptr.vmem [resolvable:$true] %s14_s7 }
   0x3   :  { %s49_s8 = scalar_lea.vmem %s15_s7, 128  ;;  %p54_p1 = scmp.lt.s32.totalorder %s15_s7, %s15_s7 }
   0x4   :  { %p50_p0 = scmp.ne.s32.totalorder %s15_s7, %s49_s8  ;;  %p55_p2 = scmp.lt.s32.totalorder %s49_s8, %s49_s8 }
   0x6   :  { %p56_p3 = por %p55_p2, %p54_p1 }
   0x8   :  { %p57_p4 = pnand %p56_p3, %p50_p0 }
   0xa   :  { %60 = shalt.err (!%p57_p4)
}
   0xb   :  { %17 = dma.hbm_to_vmem [thread:$0]  %s103_s0, 128, %s15_s7, [#allocation3]  }
   0xc   :  { %81 = dma.done.wait [#allocation3], 128  }
   0xd   :  { %82 = vsyncadd [#allocation3], 4294967168  ;;  %s86_s11 = smov [#allocation5]   ;;  %v21_v0 = vld [vmem:[#allocation2] sm:$0xff] }
   0xe   :  { %s30_s12 = sshll.u32 %s86_s11, 4  ;;  %v22_v1 = vadd.f32 1.0, %v21_v0  ;;  %s31_s12 = int_to_ptr.vmem [resolvable:$true] %s30_s12 }
   0xf   :  { %s61_s13 = scalar_lea.vmem %s31_s12, 128  ;;  %p66_p6 = scmp.lt.s32.totalorder %s31_s12, %s31_s12 }
  0x10   :  { %23 = vst [vmem:[#allocation5] sm:$0xff] %v22_v1  ;;  %p62_p5 = scmp.ne.s32.totalorder %s31_s12, %s61_s13  ;;  %p67_p7 = scmp.lt.s32.totalorder %s61_s13, %s61_s13 }
  0x12   :  { %p68_p8 = por %p67_p7, %p66_p6 }
  0x14   :  { %p69_p9 = pnand %p68_p8, %p62_p5 }
  0x16   :  { %72 = shalt.err (!%p69_p9)
}
  0x17   :  { %33 = dma.vmem_to_hbm [thread:$0]  %s31_s12, 128, %s104_s1, [#allocation4]  }
  0x18   :  { %83 = dma.done.wait [#allocation4], 128  }
  0x19   :  { %84 = vsyncadd [#allocation4], 4294967168 }
  0x1a   :  { %37 = vsyncpa [#allocation3], 1 }
  0x1b   :  { %38 = vsyncpa [#allocation4], 1 }

// kernel: preact_bottleneck_nhwc.1
= control target key start
LH: loop header
LB: loop body
LE: loop exit
PB: predicated region body
PF: predicated region fallthrough
CT: control target
= control target key end

     0   :  { %s6486_s0 = inlined_call_operand.vmem [shape: bf16[2,18,16,128], index: 0, kind: input, shape index: {}, may-alias: {0,1,2}]   ;;  %s6487_s1 = inlined_call_operand.vmem [shape: bf16[2,18,16,128], index: 1, kind: input, shape index: {}, may-alias: {0,1,2}]   ;;  %s6488_s2 = inlined_call_operand.vmem [shape: bf16[2,18,16,128], index: 2, kind: input, shape index: {}, may-alias: {0,1,2}]   ;;  %s6489_s3 = inlined_call_operand.vmem [shape: f32[2,160,3], index: 3, kind: input, shape index: {}]   ;;  %s6490_s4 = inlined_call_operand.vmem [shape: bf16[128,128], index: 4, kind: input, shape index: {}]   ;;  %s6491_s5 = inlined_call_operand.vmem [shape: bf16[1152,128], index: 5, kind: input, shape index: {}]   ;;  %s6492_s6 = inlined_call_operand.vmem [shape: bf16[128,128], index: 6, kind: input, shape index: {}]   ;;  %s6493_s7 = inlined_call_operand.vmem [shape: bf16[128,128], index: 7, kind: input, shape index: {}]   ;;  %s6494_s8 = inlined_call_operand.vmem [shape: f32[1,128], index: 8, kind: input, shape index: {}]   ;;  %s6495_s9 = inlined_call_operand.vmem [shape: f32[1,128], index: 9, kind: input, shape index: {}]   ;;  %s6496_s10 = inlined_call_operand.vmem [shape: f32[1,128], index: 10, kind: input, shape index: {}]   ;;  %s6497_s11 = inlined_call_operand.vmem [shape: f32[1,128], index: 11, kind: input, shape index: {}]   ;;  %s6498_s12 = inlined_call_operand.hbm [shape: f32[2,16,16,128], index: 12, kind: output, shape index: {}]  }
   0x1   :  { %6574 = sst [smem:[#allocation39_spill]] %s6489_s3 }
   0x2   :  { %17 = vsyncpa [#allocation4], 0 }
   0x3   :  { %19 = vsyncpa [#allocation4 + $0x1], 0  ;;  %s4300_s21 = smov 0   ;;  %s4302_s22 = smov 0  }
   0x4   :  { %s4304_s23 = smov 0   ;;  %s4306_s24 = smov 0  }
   0x5   :  { %s4308_s25 = smov 0   ;;  %s4310_s26 = smov 0  }
   0x6   :  { %s4312_s27 = smov 0   ;;  %s4314_s28 = smov 0  }
   0x7 LB: > { %6575 = sst [smem:[#allocation6_spill]] %s4199_s21  ;;  %s3171_s29 = sadd.s32 4294967295, %s4227_s28   ;;  %s4227_s28 = sphi %s4314_s28, %s25_s28   ;;  %s4223_s27 = sphi %s4312_s27, %s6906_s27   ;;  %s4219_s26 = sphi %s4310_s26, %s6905_s26   ;;  %s4215_s25 = sphi %s4308_s25, %s6904_s25   ;;  %s4211_s24 = sphi %s4306_s24, %s6903_s24   ;;  %s4207_s23 = sphi %s4304_s23, %s6909_s23   ;;  %s4203_s22 = sphi %s4302_s22, %s6908_s22   ;;  %s4199_s21 = sphi %s4300_s21, %s6907_s21  }
   0x8   : > { %6576 = sst [smem:[#allocation7_spill]] %s4219_s26  ;;  %s3172_s30 = sadd.s32 4294967294, %s4227_s28  }
   0x9   : > { %6577 = sst [smem:[#allocation8_spill]] %s4223_s27  ;;  %s34_s13 = sadd.s32 1, %s4219_s26 }
   0xa   : > { %p35_p0 = scmp.ge.s32.totalorder %s34_s13, 2  ;;  %s37_s14 = sadd.s32 1, %s4223_s27 }
   0xb   : > { %p344_p1 = scmp.ne.s32.totalorder %s4207_s23, %s4203_s22  ;;  %p345_p2 = scmp.eq.s32.totalorder %s3171_s29, 3 }
   0xc   : > { %s6911_s13 = smov (%p35_p0, %s34_s13), 0  ;;  %s6913_s14 = smov (!%p35_p0, %s37_s14), %s4223_s27 }
   0xd   : > { %6578 = sst [smem:[#allocation9_spill]] %s6911_s13  ;;  %s330_s15 = ssub.s32 %s4219_s26, %s6911_s13 }
   0xe   : > { %p4351_p3 = por %p345_p2, %p344_p1  ;;  %p39_p4 = scmp.ge.s32.totalorder %s6913_s14, 2 }
   0xf   : > { %p350_p5 = scmp.ne.s32.totalorder %s4203_s22, %s4199_s21  ;;  %p351_p6 = scmp.eq.s32.totalorder %s3172_s30, 3 }
  0x10   : > { %p3179_p7 = scmp.ge.s32.totalorder %s4227_s28, 1  ;;  %s6915_s14 = smov (%p39_p4, %s6913_s14), 0 }
  0x11   : > { %6580 = sst [smem:[#allocation10_spill]] %s6915_s14  ;;  %p4360_p8 = por %p351_p6, %p350_p5 }
  0x12   : > { %p459_p9 = scmp.lt.s32.totalorder %s4227_s28, 5  ;;  %s329_s18 = ssub.s32 %s4223_s27, %s6915_s14 }
  0x13   : > { %s334_s19 = sadd.s32 1, %s4207_s23  ;;  %s331_s20 = sor.u32 %s330_s15, %s329_s18 }
  0x14   : > { %p460_p10 = pnand %p3179_p7, %p459_p9  ;;  %p332_p11 = scmp.eq.s32.totalorder %s331_s20, 0 }
  0x16   : > { %s4369_s29 = scalar_select %p332_p11, %s4207_s23, %s334_s19  }
  0x17   : > { %463 = sbr.rel (%p460_p10) target bundleno = 897 (0x381), region = 68 }
  0x1c   : > { %v4021_v0 = vld [vmem:[%s6490_s4 + $0x38] sm:$0xff]   ;;  %v4022_v1 = vld [vmem:[%s6490_s4 + $0x30] sm:$0xff]   ;;  %v6507_v2 = vmov 0   ;;  %p588_p12 = scmp.lt.s32.totalorder %s4211_s24, 1  ;;  %v4023_v3 = vld [vmem:[%s6490_s4 + $0x28] sm:$0xff]   ;;  %s4385_s18 = sshll.u32 %s4211_s24, 3 }
  0x1d   : > { %3990 = vset.pattern.permute.xlu1 %v6507_v2  ;;  %3989 = vset.pattern.permute.xlu0 %v6507_v2  ;;  %p545_p13 = scmp.lt.s32.totalorder %s4215_s25, 1  ;;  %s6582_s3 = sld [smem:[#allocation39_spill]]  ;;  %v4024_v7 = vld [vmem:[%s6490_s4 + $0x20] sm:$0xff]   ;;  %v4025_v14 = vld [vmem:[%s6490_s4 + $0x18] sm:$0xff]   ;;  %v4230_v16 = vmov 1   ;;  %v4026_v20 = vld [vmem:[%s6490_s4 + $0x10] sm:$0xff]  }
  0x1e   : > { %3779 = vmatprep.subr.bf16.mxu0 %v4021_v0  ;;  %s589_s15 = scalar_select %p588_p12, %s4211_s24, 1  ;;  %v4027_v33 = vld [vmem:[%s6490_s4 + $0x8] sm:$0xff]   ;;  %v4028_v38 = vld [vmem:[%s6490_s4] sm:$0xff]   ;;  %v4231_v55 = vmov 2  }
  0x1f   : > { %3780 = vmatpush3.bf16.msra.mxu0 %v4021_v0  ;;  %p547_p0 = scmp.lt.s32.totalorder %s4385_s18, 17  ;;  %s4420_s14 = sadd.s32 8, %s4385_s18 }
  0x20   : > { %3781 = vmatprep.subr.bf16.mxu0 %v4022_v1  ;;  %s3912_s21 = smul.u32 160, %s589_s15  ;;  %p564_p1 = scmp.lt.s32.totalorder %s4420_s14, 17 }
  0x21   : > { %s546_s15 = scalar_select %p545_p13, %s4215_s25, 1 }
  0x22   : > { %s6504_s27 = sadd.s32 1, %s4420_s14 }
  0x23   : > { %3782 = vmatpush3.bf16.msra.mxu0 %v4022_v1  ;;  %s4391_s30 = scalar_lea.vmem %s6582_s3, %s3912_s21  ;;  %s4409_s19 = smul.u32 36, %s546_s15 }
  0x24   : > { %v676_v4 = vld [vmem:[%s4391_s30 + $0x98] sm:$0xff]  ;;  %v657_v5 = vld [vmem:[%s4391_s30] sm:$0xff]  ;;  %3783 = vmatprep.subr.bf16.mxu0 %v4023_v3  ;;  %v658_v6 = vld [vmem:[%s4391_s30 + $0x8] sm:$0xff]  ;;  %s548_s21 = scalar_select %p547_p0, %s4385_s18, 17 }
  0x25   : > { %vm696_vm0 = vcmp.gt.f32.partialorder %v676_v4, 0.5  ;;  %vm677_vm1 = vcmp.gt.f32.partialorder %v657_v5, 0.5  ;;  %vm678_vm2 = vcmp.gt.f32.partialorder %v658_v6, 0.5  ;;  %v659_v8 = vld [vmem:[%s4391_s30 + $0x10] sm:$0xff]  ;;  %v661_v11 = vld [vmem:[%s4391_s30 + $0x20] sm:$0xff]  ;;  %v660_v15 = vld [vmem:[%s4391_s30 + $0x18] sm:$0xff] }
  0x26   : > { %v1043_v9 = vsel %vm696_vm0, 1, %v6507_v2  ;;  %v1024_v10 = vsel %vm677_vm1, 1, %v6507_v2  ;;  %vm679_vm3 = vcmp.gt.f32.partialorder %v659_v8, 0.5  ;;  %v1025_v12 = vsel %vm678_vm2, 1, %v6507_v2  ;;  %s3182_s13 = sshll.u32 %s548_s21, 1  ;;  %v662_v17 = vld [vmem:[%s4391_s30 + $0x28] sm:$0xff] }
  0x27   : > { %1102 = vperm.xlu1 %3990, %v1043_v9   ;;  %1045 = vperm.xlu0 %3989, %v1024_v10   ;;  %v4412_v13 = vsel %vm679_vm3, 1, %v6507_v2  ;;  %vm681_vm4 = vcmp.gt.f32.partialorder %v661_v11, 0.5  ;;  %s551_s3 = sadd.s32 %s4409_s19, %s3182_s13  ;;  %v664_v18 = vld [vmem:[%s4391_s30 + $0x38] sm:$0xff]  ;;  %v665_v21 = vld [vmem:[%s4391_s30 + $0x40] sm:$0xff]  ;;  %v663_v22 = vld [vmem:[%s4391_s30 + $0x30] sm:$0xff]  ;;  %vm680_vm5 = vcmp.gt.f32.partialorder %v660_v15, 0.5 }
  0x28   : > { %3784 = vmatpush3.bf16.msra.mxu0 %v4023_v3  ;;  %s3183_s15 = sshll.u32 %s551_s3, 2  ;;  %v4428_v19 = vsel %vm681_vm4, 1, %v6507_v2  ;;  %vm682_vm6 = vcmp.gt.f32.partialorder %v662_v17, 0.5  ;;  %vm684_vm7 = vcmp.gt.f32.partialorder %v664_v18, 0.5  ;;  %vm685_vm8 = vcmp.gt.f32.partialorder %v665_v21, 0.5  ;;  %v666_v29 = vld [vmem:[%s4391_s30 + $0x48] sm:$0xff] }
  0x29   : > { %3785 = vmatprep.subr.bf16.mxu0 %v4024_v7  ;;  %s553_s13 = scalar_lea.vmem %s6486_s0, %s3183_s15  ;;  %p4446_p2 = scmp.lt.s32.totalorder %s6504_s27, 17  ;;  %v4453_v32 = vsel %vm680_vm5, 1, %v6507_v2  ;;  %v4462_v34 = vsel %vm682_vm6, 1, %v6507_v2  ;;  %v4466_v35 = vsel %vm684_vm7, 1, %v6507_v2  ;;  %vm683_vm9 = vcmp.gt.f32.partialorder %v663_v22, 0.5  ;;  %v668_v37 = vld [vmem:[%s4391_s30 + $0x58] sm:$0xff] }
  0x2a   : > { %v597_v23 = vld [vmem:[%s553_s13] sm:$0xff]   ;;  %v599_v24 = vld [vmem:[%s553_s13 + $0x8] sm:$0xff]   ;;  %v601_v25 = vld [vmem:[%s553_s13 + $0x10] sm:$0xff]   ;;  %s565_s3 = scalar_select %p564_p1, %s4420_s14, 17  ;;  %v4470_v36 = vsel %vm685_vm8, 1, %v6507_v2  ;;  %vm686_vm10 = vcmp.gt.f32.partialorder %v666_v29, 0.5 }
  0x2b   : > { %3991 = vset.pattern.permute.xlu1 %v4230_v16  ;;  %1048 = vperm.xlu0 %3989, %v1025_v12   ;;  %613 = vst [vmem:[#allocation2] sm:$0xff] %v597_v23   ;;  %615 = vst [vmem:[#allocation2 + $0x8] sm:$0xff] %v599_v24   ;;  %v603_v26 = vld [vmem:[%s553_s13 + $0x18] sm:$0xff]   ;;  %v605_v27 = vld [vmem:[%s553_s13 + $0x20] sm:$0xff]   ;;  %v4488_v41 = vsel %vm683_vm9, 1, %v6507_v2  ;;  %vm688_vm11 = vcmp.gt.f32.partialorder %v668_v37, 0.5 }
  0x2c   : > { %1259 = vperm.xlu1 %3991, %v4412_v13   ;;  %3786 = vmatpush3.bf16.msra.mxu0 %v4024_v7  ;;  %617 = vst [vmem:[#allocation2 + $0x10] sm:$0xff] %v601_v25   ;;  %v607_v28 = vld [vmem:[%s553_s13 + $0x28] sm:$0xff]   ;;  %619 = vst [vmem:[#allocation2 + $0x18] sm:$0xff] %v603_v26   ;;  %v609_v30 = vld [vmem:[%s553_s13 + $0x30] sm:$0xff]   ;;  %s3185_s15 = sshll.u32 %s565_s3, 1  ;;  %v4496_v44 = vsel %vm686_vm10, 1, %v6507_v2 }
  0x2d   : > { %3787 = vmatprep.subr.bf16.mxu0 %v4025_v14  ;;  %621 = vst [vmem:[#allocation2 + $0x20] sm:$0xff] %v605_v27   ;;  %623 = vst [vmem:[#allocation2 + $0x28] sm:$0xff] %v607_v28   ;;  %v611_v31 = vld [vmem:[%s553_s13 + $0x38] sm:$0xff]   ;;  %s568_s26 = sadd.s32 %s4409_s19, %s3185_s15  ;;  %v670_v42 = vld [vmem:[%s4391_s30 + $0x68] sm:$0xff]  ;;  %v4503_v48 = vsel %vm688_vm11, 1, %v6507_v2  ;;  %s536_s15 = sand.u32 1, %s4203_s22  }
  0x2e   : > { %625 = vst [vmem:[#allocation2 + $0x30] sm:$0xff] %v609_v30   ;;  %627 = vst [vmem:[#allocation2 + $0x38] sm:$0xff] %v611_v31   ;;  %s3186_s13 = sshll.u32 %s568_s26, 2  ;;  %s6584_s26 = sadd.s32 1, %s4420_s14  ;;  %v667_v43 = vld [vmem:[%s4391_s30 + $0x50] sm:$0xff]  ;;  %vm690_vm12 = vcmp.gt.f32.partialorder %v670_v42, 0.5 }
  0x2f   : > { %1057 = vperm.xlu0 %3989, %v4428_v19   ;;  %s570_s21 = scalar_lea.vmem %s6487_s1, %s3186_s13  ;;  %s6917_s26 = smov (!%p4446_p2, %s6584_s26), 17  ;;  %v672_v45 = vld [vmem:[%s4391_s30 + $0x78] sm:$0xff]  ;;  %vm687_vm13 = vcmp.gt.f32.partialorder %v667_v43, 0.5  ;;  %v669_v46 = vld [vmem:[%s4391_s30 + $0x60] sm:$0xff]  ;;  %v4510_v50 = vsel %vm690_vm12, 1, %v6507_v2  ;;  %v674_v63 = vld [vmem:[%s4391_s30 + $0x88] sm:$0xff] }
  0x30   : > { %3992 = vset.pattern.permute.xlu1 %v6507_v2  ;;  %3788 = vmatpush3.bf16.msra.mxu0 %v4025_v14  ;;  %v629_v39 = vld [vmem:[%s570_s21] sm:$0xff]   ;;  %s3188_s13 = sshll.u32 %s6917_s26, 1  ;;  %v1034_v51 = vsel %vm687_vm13, 1, %v6507_v2  ;;  %vm692_vm14 = vcmp.gt.f32.partialorder %v672_v45, 0.5  ;;  %vm689_vm15 = vcmp.gt.f32.partialorder %v669_v46, 0.5  ;;  %vm694_vm0 = vcmp.gt.f32.partialorder %v674_v63, 0.5 }
  0x31   : > { %1051 = vperm.xlu1 %3992, %v4412_v13   ;;  %3789 = vmatprep.subr.bf16.mxu0 %v4026_v20  ;;  %631 = vst [vmem:[#allocation2 + $0x40] sm:$0xff] %v629_v39   ;;  %s582_s27 = sadd.s32 %s4409_s19, %s3188_s13  ;;  %v4522_v56 = vsel %vm692_vm14, 1, %v6507_v2  ;;  %v4525_v57 = vsel %vm689_vm15, 1, %v6507_v2  ;;  %v675_v0 = vld [vmem:[%s4391_s30 + $0x90] sm:$0xff]  ;;  %v4557_v1 = vsel %vm694_vm0, 1, %v6507_v2  ;;  %v4039_v3 = vld [vmem:[%s6491_s5 + $0xf8] sm:$0xff]  }
  0x32   : > { %v4029_v40 = vld [vmem:[#allocation2] sm:$0xff]   ;;  %s3189_s14 = sshll.u32 %s582_s27, 2  ;;  %v4030_v47 = vld [vmem:[#allocation2 + $0x8] sm:$0xff]   ;;  %vm695_vm1 = vcmp.gt.f32.partialorder %v675_v0, 0.5  ;;  %v4040_v4 = vld [vmem:[%s6491_s5 + $0xb8] sm:$0xff]   ;;  %s3180_s21 = sshll.u32 %s536_s15, 7 }
  0x33   : > { %3994 = vset.pattern.permute.xlu0 %v4230_v16  ;;  %3795 = vmatprep.mubr.bf16.mxu0 %v4029_v40  ;;  %s584_s3 = scalar_lea.vmem %s6488_s2, %s3189_s14  ;;  %v4031_v49 = vld [vmem:[#allocation2 + $0x10] sm:$0xff]   ;;  %v4032_v53 = vld [vmem:[#allocation2 + $0x18] sm:$0xff]   ;;  %v1042_v6 = vsel %vm695_vm1, 1, %v6507_v2  ;;  %v4043_v8 = vld [vmem:[%s6491_s5 + $0xe8] sm:$0xff]   ;;  %s6405_s20 = scalar_lea.vmem [#allocation3], %s3180_s21 }
  0x34   : > { %1262 = vperm.xlu0 %3994, %v4453_v32   ;;  %3790 = vmatpush3.bf16.msra.mxu0 %v4026_v20  ;;  %v633_v52 = vld [vmem:[%s584_s3] sm:$0xff]   ;;  %v4034_v58 = vld [vmem:[#allocation2 + $0x28] sm:$0xff]   ;;  %v4041_v5 = vld [vmem:[%s6491_s5 + $0xf0] sm:$0xff]   ;;  %s3456_s26 = sshll.u32 %s4211_s24, 4  ;;  %s3440_s13 = sshll.u32 %s4215_s25, 5 }
  0x35   : > { %1054 = vperm.xlu1 %3992, %v4453_v32   ;;  %3791 = vmatprep.subr.bf16.mxu0 %v4027_v33  ;;  %635 = vst [vmem:[#allocation2 + $0x48] sm:$0xff] %v633_v52   ;;  %v4033_v54 = vld [vmem:[#allocation2 + $0x20] sm:$0xff]   ;;  %v4035_v59 = vld [vmem:[#allocation2 + $0x30] sm:$0xff]   ;;  %v4036_v60 = vld [vmem:[#allocation2 + $0x38] sm:$0xff]   ;;  %s3029_s27 = sadd.s32 %s3456_s26, %s3440_s13  ;;  %s3032_s24 = sshll.u32 %s6405_s20, 4  ;;  %s6429_s24 = int_to_ptr.vmem [resolvable:$true] %s3032_s24 }
  0x36   : > { %v4042_v7 = vld [vmem:[%s6491_s5 + $0xb0] sm:$0xff]   ;;  %v4044_v9 = vld [vmem:[%s6491_s5 + $0xa8] sm:$0xff]   ;;  %v4045_v11 = vld [vmem:[%s6491_s5 + $0xe0] sm:$0xff]   ;;  %s6435_s18 = scalar_lea.sflag [#allocation4], %s536_s15  ;;  %s4135_s3 = scalar_lea.vmem %s6429_s24, 2048 }
  0x37   : > { %v671_v10 = vld [vmem:[%s4391_s30 + $0x70] sm:$0xff]  ;;  %v4046_v12 = vld [vmem:[%s6491_s5 + $0xa0] sm:$0xff]   ;;  %v4048_v14 = vld [vmem:[%s6491_s5 + $0x98] sm:$0xff]   ;;  %p4136_p4 = scmp.ne.s32.totalorder %s6429_s24, %s4135_s3  ;;  %s4232_s21 = smov [#allocation3]  }
  0x38   : > { %1265 = vperm.xlu0 %3994, %v4428_v19   ;;  %3792 = vmatpush3.bf16.msra.mxu0 %v4027_v33  ;;  %v4037_v61 = vld [vmem:[#allocation2 + $0x40] sm:$0xff]   ;;  %vm691_vm2 = vcmp.gt.f32.partialorder %v671_v10, 0.5  ;;  %v4049_v17 = vld [vmem:[%s6491_s5 + $0xd0] sm:$0xff]   ;;  %v4052_v20 = vld [vmem:[%s6491_s5 + $0x88] sm:$0xff]   ;;  %s4139_s26 = sshll.u32 %s4232_s21, 4  ;;  %s4140_s26 = int_to_ptr.vmem [resolvable:$false] %s4139_s26 }
  0x39   : > { %3993 = vset.pattern.permute.xlu1 %v4230_v16  ;;  %3793 = vmatprep.subr.bf16.mxu0 %v4028_v38  ;;  %v1038_v15 = vsel %vm691_vm2, 1, %v6507_v2  ;;  %v4050_v18 = vld [vmem:[%s6491_s5 + $0x90] sm:$0xff]   ;;  %v673_v21 = vld [vmem:[%s4391_s30 + $0x80] sm:$0xff]  ;;  %v4053_v23 = vld [vmem:[%s6491_s5 + $0x78] sm:$0xff]   ;;  %s3441_s30 = sshll.u32 %s3029_s27, 7  ;;  %p4137_p5 = pnand %p4136_p4, %p4351_p3 }
  0x3a   : > { %1268 = vperm.xlu1 %3993, %v4462_v34   ;;  %v4054_v22 = vld [vmem:[%s6491_s5 + $0xc0] sm:$0xff]   ;;  %vm693_vm3 = vcmp.gt.f32.partialorder %v673_v21, 0.5  ;;  %v4055_v25 = vld [vmem:[%s6491_s5 + $0x38] sm:$0xff]   ;;  %3475 = vmatprep.subr.bf16.mxu1 %v4053_v23  ;;  %v4057_v27 = vld [vmem:[%s6491_s5 + $0x70] sm:$0xff]   ;;  %s6427_s19 = scalar_lea.hbm %s6498_s12, %s3441_s30  ;;  %s4141_s13 = scalar_lea.vmem %s4140_s26, 4096 }
  0x3b   : > { %v4056_v24 = vld [vmem:[%s6491_s5 + $0x80] sm:$0xff]   ;;  %3476 = vmatpush3.bf16.msra.mxu1 %v4055_v25  ;;  %v1040_v26 = vsel %vm693_vm3, 1, %v6507_v2  ;;  %v4058_v28 = vld [vmem:[%s6491_s5 + $0x30] sm:$0xff]   ;;  %v4059_v29 = vld [vmem:[%s6491_s5 + $0x68] sm:$0xff]   ;;  %p4138_p6 = pneg %p4137_p5  ;;  %p4142_p7 = scmp.lt.s32.totalorder %s6429_s24, %s4140_s26 }
  0x3c   : > { %1274 = vperm.xlu0 %3994, %v4466_v35   ;;  %3794 = vmatpush3.bf16.msra.mxu0 %v4028_v38  ;;  %v4038_v62 = vld [vmem:[#allocation2 + $0x48] sm:$0xff]   ;;  %v4061_v31 = vld [vmem:[%s6491_s5 + $0x60] sm:$0xff]   ;;  %v4065_v37 = vld [vmem:[%s6491_s5 + $0x50] sm:$0xff]   ;;  %p4143_p9 = scmp.lt.s32.totalorder %s4141_s13, %s4135_s3 }
  0x3d   : > { %3539 = vmatprep.subr.bf16.mxu0 %v4039_v3  ;;  %3477 = vmatprep.subr.bf16.mxu1 %v4057_v27  ;;  %v4062_v33 = vld [vmem:[%s6491_s5 + $0x20] sm:$0xff]   ;;  %v4066_v38 = vld [vmem:[%s6491_s5 + $0x10] sm:$0xff]   ;;  %v4067_v40 = vld [vmem:[%s6491_s5 + $0x48] sm:$0xff]  }
  0x3e   : > { %3995 = vset.pattern.permute.xlu1 %v6507_v2  ;;  %v4069_v43 = vld [vmem:[%s6491_s5 + $0x40] sm:$0xff]   ;;  %v4071_v46 = vld [vmem:[%s6491_s5 + $0x178] sm:$0xff]   ;;  %p4144_p10 = por %p4143_p9, %p4142_p7 }
  0x3f   : > { %1060 = vperm.xlu1 %3995, %v4462_v34   ;;  %3796 = vmatmul.mubr.bf16.vlgmr.msra.gmra.mxu0 %v4030_v47  ;;  %v4070_v45 = vld [vmem:[%s6491_s5] sm:$0xff]  }
  0x40   : > { %1277 = vperm.xlu0 %3994, %v4470_v36   ;;  %3799 = vmatprep.mubr.bf16.mxu0 %v4031_v49  ;;  %v4073_v49 = vld [vmem:[%s6491_s5 + $0x1f8] sm:$0xff]   ;;  %v4742_v10 = vld [vmem:[%s6494_s8] ss:$0 sm:$0xff]  ;;  %p4145_p11 = pnand %p4144_p10, %p4138_p6 }
  0x41   : > { %3540 = vmatpush3.bf16.msra.mxu0 %v4040_v4  ;;  %3478 = vmatpush3.bf16.msra.mxu1 %v4058_v28 }
  0x42   : > { %3541 = vmatprep.subr.bf16.mxu0 %v4041_v5  ;;  %3479 = vmatprep.subr.bf16.mxu1 %v4059_v29 }
  0x43   : > { %3996 = vset.pattern.permute.xlu1 %v4230_v16 }
  0x44   : > { %1271 = vperm.xlu1 %3996, %v4488_v41   ;;  %3999 = vset.pattern.permute.xlu0 %v4231_v55 }
  0x45   : > { %1395 = vperm.xlu0 %3999, %v4412_v13   ;;  %3542 = vmatpush3.bf16.msra.mxu0 %v4042_v7  ;;  %v4047_v13 = vld [vmem:[%s6491_s5 + $0xd8] sm:$0xff]  }
  0x46   : > { %3543 = vmatprep.subr.bf16.mxu0 %v4043_v8 }
  0x47   : > { %3800 = vmatmul.mubr.bf16.gmra.mxu0 %v4032_v53 }
  0x48   : > { %3997 = vset.pattern.permute.xlu1 %v6507_v2  ;;  %3803 = vmatprep.mubr.bf16.mxu0 %v4033_v54 }
  0x49   : > { %1063 = vperm.xlu1 %3997, %v4488_v41   ;;  %4002 = vset.pattern.permute.xlu0 %v6507_v2 }
  0x4a   : > { %1072 = vperm.xlu0 %4002, %v4496_v44   ;;  %3544 = vmatpush3.bf16.msra.mxu0 %v4044_v9 }
  0x4b   : > { %3545 = vmatprep.subr.bf16.mxu0 %v4045_v11 }
  0x4d   : > { %1066 = vperm.xlu1 %3997, %v4466_v35  }
  0x4e   : > { %1078 = vperm.xlu0 %4002, %v4503_v48   ;;  %3546 = vmatpush3.bf16.msra.mxu0 %v4046_v12 }
  0x4f   : > { %3804 = vmatmul.mubr.bf16.gmra.mxu0 %v4034_v58  ;;  %3547 = vmatprep.subr.bf16.mxu0 %v4047_v13 }
  0x50   : > { %3807 = vmatprep.mubr.bf16.mxu0 %v4035_v59 }
  0x51   : > { %3998 = vset.pattern.permute.xlu1 %v4230_v16 }
  0x52   : > { %1280 = vperm.xlu1 %3998, %v4496_v44   ;;  %1084 = vperm.xlu0 %4002, %v4510_v50  }
  0x53   : > { %3548 = vmatpush3.bf16.msra.mxu0 %v4048_v14 }
  0x54   : > { %3549 = vmatprep.subr.bf16.mxu0 %v4049_v17  ;;  %v4757_v17 = vld [vmem:[%s6495_s9] ss:$0 sm:$0xff] }
  0x56   : > { %4000 = vset.pattern.permute.xlu1 %v4231_v55  ;;  %4009 = vset.pattern.permute.xlu0 %v4231_v55 }
  0x57   : > { %1398 = vperm.xlu1 %4000, %v4453_v32   ;;  %1401 = vperm.xlu0 %4009, %v4428_v19   ;;  %v4051_v19 = vld [vmem:[%s6491_s5 + $0xc8] sm:$0xff]  }
  0x58   : > { %3808 = vmatmul.mubr.bf16.gmra.mxu0 %v4036_v60 }
  0x59   : > { %3811 = vmatprep.mubr.bf16.mxu0 %v4037_v61  ;;  %3550 = vmatpush3.bf16.msra.mxu0 %v4050_v18 }
  0x5a   : > { %3551 = vmatprep.subr.bf16.mxu0 %v4051_v19  ;;  %v1174_v19 = vlaneseq }
  0x5b   : > { %4001 = vset.pattern.permute.xlu1 %v6507_v2  ;;  %1407 = vperm.xlu0 %4009, %v4488_v41   ;;  %v4068_v41 = vld [vmem:[%s6491_s5 + $0x8] sm:$0xff]  }
  0x5c   : > { %1069 = vperm.xlu1 %4001, %v4470_v36  }
  0x5d   : > { %3552 = vmatpush3.bf16.msra.mxu0 %v4052_v20 }
  0x5e   : > { %3553 = vmatprep.subr.bf16.mxu0 %v4054_v22 }
  0x5f   : > { %1413 = vperm.xlu0 %4009, %v4470_v36  }
  0x60   : > { %4003 = vset.pattern.permute.xlu1 %v4230_v16  ;;  %3812 = vmatmul.mubr.bf16.gmra.mxu0 %v4038_v62 }
  0x61   : > { %1283 = vperm.xlu1 %4003, %v1034_v51   ;;  %3554 = vmatpush3.bf16.msra.mxu0 %v4056_v24 }
  0x62   : > { %3667 = vmatprep.subr.bf16.mxu0 %v4073_v49 }
  0x63   : > { %4013 = vset.pattern.permute.xlu0 %v6507_v2 }
  0x64   : > { %1090 = vperm.xlu0 %4013, %v4522_v56  }
  0x65   : > { %1286 = vperm.xlu1 %4003, %v4503_v48  }
  0x68   : > { %4015 = vset.pattern.permute.xlu0 %v4231_v55 }
  0x69   : > { %4004 = vset.pattern.permute.xlu1 %v4231_v55  ;;  %1419 = vperm.xlu0 %4015, %v1034_v51  }
  0x6a   : > { %1404 = vperm.xlu1 %4004, %v4462_v34   ;;  %v4063_v34 = vld [vmem:[%s6491_s5 + $0x58] sm:$0xff]  }
  0x6d   : > { %1428 = vperm.xlu0 %4015, %v4510_v50  }
  0x6e   : > { %4005 = vset.pattern.permute.xlu1 %v6507_v2 }
  0x6f   : > { %1075 = vperm.xlu1 %4005, %v1034_v51  }
  0x71   : > { %1434 = vperm.xlu0 %4015, %v4522_v56  }
  0x73   : > { %4006 = vset.pattern.permute.xlu1 %v4230_v16 }
  0x74   : > { %1289 = vperm.xlu1 %4006, %v4525_v57  }
  0x75   : > { %4018 = vset.pattern.permute.xlu0 %v6507_v2 }
  0x76   : > { %1096 = vperm.xlu0 %4018, %v4557_v1  }
  0x78   : > { %1292 = vperm.xlu1 %4006, %v4510_v50  }
  0x7a   : > { %1099 = vperm.xlu0 %4018, %v1042_v6  }
  0x7c   : > { %4007 = vset.pattern.permute.xlu1 %v4231_v55 }
  0x7d   : > { %1410 = vperm.xlu1 %4007, %v4466_v35   ;;  %v4064_v35 = vld [vmem:[%s6491_s5 + $0x18] sm:$0xff]  }
  0x7e   : > { %4020 = vset.pattern.permute.xlu0 %v4231_v55 }
  0x81   : > { %4008 = vset.pattern.permute.xlu1 %v6507_v2 }
  0x82   : > { %1081 = vperm.xlu1 %4008, %v4525_v57  }
  0x86   : > { %4010 = vset.pattern.permute.xlu1 %v4230_v16 }
  0x87   : > { %1295 = vperm.xlu1 %4010, %v1038_v15  }
  0x8b   : > { %1298 = vperm.xlu1 %4010, %v4522_v56  }
  0x8f   : > { %4011 = vset.pattern.permute.xlu1 %v4231_v55 }
  0x90   : > { %1416 = vperm.xlu1 %4011, %v4496_v44  }
  0x94   : > { %4012 = vset.pattern.permute.xlu1 %v6507_v2 }
  0x95   : > { %1087 = vperm.xlu1 %4012, %v1038_v15  }
  0x99   : > { %4014 = vset.pattern.permute.xlu1 %v4230_v16  ;;  %v4060_v16 = vld [vmem:[%s6491_s5 + $0x28] sm:$0xff]  }
  0x9a   : > { %1301 = vperm.xlu1 %4014, %v1040_v26   ;;  %3480 = vmatpush3.bf16.msra.mxu1 %v4060_v16 }
  0x9b   : > { %3481 = vmatprep.subr.bf16.mxu1 %v4061_v31 }
  0x9e   : > { %1304 = vperm.xlu1 %4014, %v4557_v1   ;;  %3482 = vmatpush3.bf16.msra.mxu1 %v4062_v33  ;;  %v4791_v33 = vshrl.u32 %v1174_v19, 7 }
  0x9f   : > { %3483 = vmatprep.subr.bf16.mxu1 %v4063_v34 }
  0xa2   : > { %4016 = vset.pattern.permute.xlu1 %v4231_v55  ;;  %v4648_v30 = vpop.permute.xlu1 %1102  ;;  %3484 = vmatpush3.bf16.msra.mxu1 %v4064_v35  ;;  %v4687_v44 = vpop.permute.xlu0 %1045 }
  0xa3   : > { %6585 = vst [vmem:[#allocation11_spill] sm:$0xff] %v4648_v30  ;;  %1422 = vperm.xlu1 %4016, %v4503_v48   ;;  %3485 = vmatprep.subr.bf16.mxu1 %v4065_v37  ;;  %vm1104_vm3 = vcmp.eq.s32.totalorder %v4687_v44, 1 }
  0xa6   : > { %3486 = vmatpush3.bf16.msra.mxu1 %v4066_v38  ;;  %v4698_v48 = vpop.permute.xlu0 %1048 }
  0xa7   : > { %1425 = vperm.xlu1 %4016, %v4525_v57   ;;  %v4655_v32 = vpop.permute.xlu1 %1259  ;;  %3487 = vmatprep.subr.bf16.mxu1 %v4067_v40 }
  0xa8   : > { %vm1306_vm4 = vcmp.eq.s32.totalorder %v4655_v32, 1 }
  0xa9   : > { %vm4750_vm7 = vmpackc.low %vm1306_vm4, %vm1306_vm4 }
  0xaa   : > { %3488 = vmatpush3.bf16.msra.mxu1 %v4068_v41  ;;  %v4705_v51 = vpop.permute.xlu0 %1057  ;;  %v1338_v29 = vsel %vm4750_vm7, 65537, %v6507_v2 }
  0xab   : > { %1431 = vperm.xlu1 %4016, %v1038_v15   ;;  %3489 = vmatprep.subr.bf16.mxu1 %v4069_v43  ;;  %6587 = vst [vmem:[#allocation13_spill] sm:$0xff] %v4705_v51 }
  0xac   : > { %v4666_v36 = vpop.permute.xlu1 %1051 }
  0xae   : > { %3490 = vmatpush3.bf16.msra.mxu1 %v4070_v45 }
  0xaf   : > { %4017 = vset.pattern.permute.xlu1 %v6507_v2  ;;  %3603 = vmatprep.subr.bf16.mxu1 %v4071_v46  ;;  %v1263_v53 = vpop.permute.xlu0 %1262 }
  0xb0   : > { %1093 = vperm.xlu1 %4017, %v1040_v26   ;;  %v4675_v39 = vpop.permute.xlu1 %1054  ;;  %vm1307_vm5 = vcmp.eq.s32.totalorder %v1263_v53, 1 }
  0xb1   : > { %vm4759_vm9 = vmpackc.low %vm1307_vm5, %vm1307_vm5  ;;  %vm1105_vm5 = vcmp.eq.s32.totalorder %v4698_v48, 1 }
  0xb2   : > { %v1339_v34 = vsel %vm4759_vm9, 65537, %v6507_v2 }
  0xb3   : > { %v1266_v56 = vpop.permute.xlu0 %1265  ;;  %v3211_v53 = vcombine.low %v1338_v29, %v1339_v34 }
  0xb4   : > { %4019 = vset.pattern.permute.xlu1 %v4231_v55  ;;  %vm1308_vm6 = vcmp.eq.s32.totalorder %v1266_v56, 1 }
  0xb5   : > { %1437 = vperm.xlu1 %4019, %v1040_v26   ;;  %v1269_v42 = vpop.permute.xlu1 %1268  ;;  %vm4766_vm11 = vmpackc.low %vm1308_vm6, %vm1308_vm6  ;;  %vm6520_vm6 = vcmp.eq.s32.totalorder %v4666_v36, 1 }
  0xb6   : > { %vm1309_vm8 = vcmp.eq.s32.totalorder %v1269_v42, 1  ;;  %v4811_v41 = vsel %vm4766_vm11, 65537, %v6507_v2  ;;  %vm6558_vm11 = vcmp.lt.s32.totalorder %v4791_v33, 7 }
  0xb7   : > { %v1275_v58 = vpop.permute.xlu0 %1274  ;;  %vm4770_vm13 = vmpackc.low %vm1309_vm8, %vm1309_vm8  ;;  %vm6519_vm8 = vcmp.eq.s32.totalorder %v4675_v39, 1 }
  0xb8   : > { %vm1311_vm10 = vcmp.eq.s32.totalorder %v1275_v58, 1  ;;  %v4816_v42 = vsel %vm4770_vm13, 65537, %v6507_v2 }
  0xb9   : > { %1440 = vperm.xlu1 %4019, %v4557_v1   ;;  %vm4784_vm15 = vmpackc.low %vm1311_vm10, %vm1311_vm10 }
  0xba   : > { %v4696_v47 = vpop.permute.xlu1 %1060 }
  0xbb   : > { %6586 = vst [vmem:[#allocation12_spill] sm:$0xff] %v4696_v47  ;;  %v1278_v60 = vpop.permute.xlu0 %1277  ;;  %vm6516_vm13 = vcmp.eq.s32.totalorder %v4696_v47, 1  ;;  %v4074_v47 = vld [vmem:[%s6491_s5 + $0x1b8] sm:$0xff]  }
  0xbc   : > { %vm1312_vm12 = vcmp.eq.s32.totalorder %v1278_v60, 1 }
  0xbd   : > { %vm4796_vm1 = vmpackc.low %vm1312_vm12, %vm1312_vm12  ;;  %vm6517_vm12 = vcmp.eq.s32.totalorder %v4705_v51, 1 }
  0xbf   : > { %v4703_v50 = vpop.permute.xlu1 %1271 }
  0xc0   : > { %v1396_v62 = vpop.permute.xlu0 %1395  ;;  %vm1310_vm14 = vcmp.eq.s32.totalorder %v4703_v50, 1 }
  0xc1   : > { %vm1442_vm0 = vcmp.eq.s32.totalorder %v1396_v62, 1  ;;  %vm4821_vm4 = vmpackc.low %vm1310_vm14, %vm1310_vm14  ;;  %v4850_v62 = vsel %vm4784_vm15, 65537, %v6507_v2  ;;  %vm6552_vm14 = vcmp.lt.s32.totalorder %v4791_v33, 1 }
  0xc2   : > { %vm4829_vm7 = vmpackc.low %vm1442_vm0, %vm1442_vm0  ;;  %v4866_v19 = vsel %vm4821_vm4, 65537, %v6507_v2  ;;  %vm4929_vm4 = vcmp.ne.s16.totalorder %v3211_v53, 0 }
  0xc4   : > { %v4707_v52 = vpop.permute.xlu1 %1063 }
  0xc5   : > { %v4723_v1 = vpop.permute.xlu0 %1072 }
  0xc6   : > { %6589 = vst [vmem:[#allocation15_spill] sm:$0xff] %v4723_v1 }
  0xc8   : > { %v4709_v54 = vpop.permute.xlu1 %1066 }
  0xc9   : > { %v4727_v4 = vpop.permute.xlu0 %1078 }
  0xca   : > { %6591 = vst [vmem:[#allocation17_spill] sm:$0xff] %v4727_v4 }
  0xcd   : > { %v4711_v55 = vpop.permute.xlu1 %1280  ;;  %v4731_v6 = vpop.permute.xlu0 %1084 }
  0xce   : > { %vm1313_vm2 = vcmp.eq.s32.totalorder %v4711_v55, 1  ;;  %v3212_v55 = vcombine.low %v4811_v41, %v4816_v42 }
  0xcf   : > { %vm4839_vm9 = vmpackc.low %vm1313_vm2, %vm1313_vm2 }
  0xd0   : > { %v4880_v25 = vsel %vm4839_vm9, 65537, %v6507_v2  ;;  %vm4923_vm2 = vmpackc.low %vm1105_vm5, %vm1104_vm3 }
  0xd2   : > { %v4713_v57 = vpop.permute.xlu1 %1398  ;;  %v4735_v8 = vpop.permute.xlu0 %1401 }
  0xd3   : > { %vm1443_vm10 = vcmp.eq.s32.totalorder %v4713_v57, 1  ;;  %vm1444_vm0 = vcmp.eq.s32.totalorder %v4735_v8, 1 }
  0xd4   : > { %vm1459_vm15 = vmpackc.low %vm1443_vm10, %vm1443_vm10 }
  0xd5   : > { %v1475_v43 = vsel %vm1459_vm15, 65537, %v6507_v2 }
  0xd6   : > { %v4747_v12 = vpop.permute.xlu0 %1407 }
  0xd7   : > { %v4715_v59 = vpop.permute.xlu1 %1069 }
  0xd8   : > { %6588 = vst [vmem:[#allocation14_spill] sm:$0xff] %v4715_v59 }
  0xda   : > { %v4775_v26 = vpop.permute.xlu0 %1413 }
  0xdb   : > { %vm1448_vm15 = vcmp.eq.s32.totalorder %v4775_v26, 1 }
  0xdc   : > { %v4717_v61 = vpop.permute.xlu1 %1283 }
  0xe0   : > { %v4719_v63 = vpop.permute.xlu1 %1286 }
  0xe5   : > { %v4721_v0 = vpop.permute.xlu1 %1404 }
  0xe6   : > { %vm1445_vm10 = vcmp.eq.s32.totalorder %v4721_v0, 1 }
  0xea   : > { %v4725_v3 = vpop.permute.xlu1 %1075 }
  0xeb   : > { %6590 = vst [vmem:[#allocation16_spill] sm:$0xff] %v4725_v3 }
  0xef   : > { %v4729_v5 = vpop.permute.xlu1 %1289 }
  0xf3   : > { %v4733_v7 = vpop.permute.xlu1 %1292 }
  0xf8   : > { %v4737_v9 = vpop.permute.xlu1 %1410 }
  0xfd   : > { %v4744_v11 = vpop.permute.xlu1 %1081 }
  0xff   : > { %v3797_v13 = vpop.f32.mrf.mxu0 }
 0x100   : > { %v959_v14 = vmul.f32 %v3797_v13, %v4742_v10  ;;  %v4854_v13 = vpop.permute.xlu0 %1090 }
 0x101   : > { %v871_v18 = vpop.f32.mrf.mxu0 }
 0x102   : > { %v957_v21 = vmul.f32 %v4742_v10, %v871_v18  ;;  %v4764_v22 = vpop.permute.xlu1 %1295  ;;  %v4778_v27 = vadd.f32 %v4757_v17, %v959_v14  ;;  %v4860_v18 = vsel %vm4796_vm1, 65537, %v6507_v2  ;;  %vm1446_vm1 = vcmp.eq.s32.totalorder %v4747_v12, 1 }
 0x103   : > { %v3798_v24 = vpop.f32.mrf.mxu0  ;;  %vm4953_vm9 = vmpackc.low %vm1446_vm1, %vm1446_vm1 }
 0x104   : > { %v960_v28 = vmul.f32 %v3798_v24, %v4742_v10  ;;  %v4789_v31 = vadd.f32 %v4757_v17, %v957_v21  ;;  %v6506_v49 = vmax.f32 %v4778_v27, 0.0  ;;  %v4875_v24 = vsel %vm4829_vm7, 65537, %v6507_v2  ;;  %vm4936_vm7 = vmpackc.low %vm1444_vm0, %vm1444_vm0 }
 0x105   : > { %v874_v32 = vpop.f32.mrf.mxu0  ;;  %vm4989_vm0 = vcmp.ne.s16.totalorder %v3212_v55, 0  ;;  %vm5001_vm1 = vmpackc.low %vm1445_vm10, %vm1445_vm10 }
 0x106   : > { %v4802_v37 = vadd.f32 %v4757_v17, %v960_v28  ;;  %v958_v38 = vmul.f32 %v4742_v10, %v874_v32  ;;  %v4805_v40 = vpop.permute.xlu1 %1298  ;;  %v1004_v58 = vmax.f32 %v4789_v31, 0.0  ;;  %v4889_v28 = vsel %vm6520_vm6, %v6506_v49, 0.0 }
 0x107   : > { %v3801_v45 = vpop.f32.mrf.mxu0  ;;  %v6510_v46 = vrot.slane %v4889_v28, 1 }
 0x108   : > { %6604 = vst [vmem:[#allocation18_spill] sm:$0xff] %v4802_v37  ;;  %v985_v50 = vadd.f32 %v4757_v17, %v958_v38  ;;  %v6505_v14 = vmax.f32 %v4802_v37, 0.0  ;;  %v4899_v16 = vsel %vm1104_vm3, %v1004_v58, 0.0  ;;  %v963_v48 = vmul.f32 %v3801_v45, %v4742_v10 }
 0x109   : > { %v887_v60 = vpop.f32.mrf.mxu0  ;;  %v6512_v44 = vrot.slane %v4899_v16, 1  ;;  %vm6524_vm3 = vcmp.eq.s32.totalorder %v4707_v52, 1  ;;  %v6622_v37 = vmov 0  }
 0x10a   : > { %v1005_v15 = vmax.f32 %v985_v50, 0.0  ;;  %v961_v20 = vmul.f32 %v4742_v10, %v887_v60  ;;  %v4908_v32 = vsel %vm6519_vm8, %v6505_v14, 0.0  ;;  %v4957_v14 = vpop.permute.xlu0 %1419 }
 0x10b   : > { %v3802_v21 = vpop.f32.mrf.mxu0  ;;  %v4869_v23 = vpop.permute.xlu1 %1416  ;;  %v1210_v45 = vrot.slane %v4908_v32, 7 }
 0x10c   : > { %v4893_v29 = vsel %vm1105_vm5, %v1005_v15, 0.0  ;;  %v4902_v57 = vadd.f32 %v4757_v17, %v961_v20  ;;  %v964_v35 = vmul.f32 %v3802_v21, %v4742_v10  ;;  %vm6523_vm5 = vcmp.eq.s32.totalorder %v4709_v54, 1 }
 0x10d   : > { %v890_v31 = vpop.f32.mrf.mxu0  ;;  %v1155_v34 = vrot.slane %v4893_v29, 1  ;;  %v3300_v49 = vpack.c.bf16 %v1005_v15, %v1004_v58  ;;  %v4977_v58 = vsel %vm4936_vm7, 65537, %v6622_v37  ;;  %v3219_v15 = vcombine.low %v4875_v24, %v1475_v43 }
 0x10e   : > { %6611 = vst [vmem:[#allocation19_spill] sm:$0xff] %v4902_v57  ;;  %v962_v38 = vmul.f32 %v4742_v10, %v890_v31  ;;  %v4971_v21 = vadd.f32 %v4757_v17, %v964_v35  ;;  %v4996_v20 = vsel %vm4953_vm9, 65537, %v6622_v37  ;;  %v1209_v43 = vrot.slane %v4889_v28, 7  ;;  %vm5023_vm9 = vmpackc.low %vm1448_vm15, %vm1448_vm15  ;;  %v1429_v26 = vpop.permute.xlu0 %1428  ;;  %v4104_v35 = vld [vmem:[%s6491_s5 + $0x230] sm:$0xff]  }
 0x10f   : > { %v4927_v56 = vpop.f32.mrf.mxu0  ;;  %v1194_v12 = vsel %vm6558_vm11, %v1155_v34, %v6510_v46  ;;  %v1195_v41 = vsel %vm6558_vm11, %v6512_v44, %v1155_v34  ;;  %v6623_v46 = vmax.f32 %v4902_v57, 0.0  ;;  %3301 = vmatprep.mubr.msk.bf16.mxu1 %vm4923_vm2, %v3300_v49  ;;  %v5007_v49 = vadd.f32 %v4757_v17, %v963_v48 }
 0x110   : > { %v4944_v31 = vadd.f32 %v4757_v17, %v962_v38  ;;  %v4946_v53 = vpop.permute.xlu1 %1087  ;;  %6621 = vst [vmem:[#allocation21_spill] sm:$0xff] %v4971_v21  ;;  %vm1314_vm2 = vcmp.eq.s32.totalorder %v4717_v61, 1  ;;  %vm1447_vm7 = vcmp.eq.s32.totalorder %v4737_v9, 1  ;;  %v1197_v0 = vpack.c.bf16 %v1194_v12, %v1195_v41  ;;  %v4076_v61 = vld [vmem:[%s6491_s5 + $0x1f0] sm:$0xff]  }
 0x111   : > { %v903_v42 = vpop.f32.mrf.mxu0  ;;  %v4985_v38 = vsel %vm6517_vm12, %v6623_v46, 0.0  ;;  %6628 = vst [vmem:[#allocation22_spill] sm:$0xff] %v5007_v49  ;;  %v6632_v41 = vrot.slane %v4893_v29, 7  ;;  %vm5035_vm10 = vcmp.ne.s16.totalorder %v3219_v15, 0  ;;  %v6633_v46 = vmov 0  ;;  %vm5077_vm8 = vmpackc.low %vm1447_vm7, %vm1447_vm7 }
 0x112   : > { %6618 = vst [vmem:[#allocation20_spill] sm:$0xff] %v4944_v31  ;;  %v6511_v2 = vmax.f32 %v4944_v31, 0.0  ;;  %v1244_v31 = vsel %vm6552_vm14, %v1209_v43, %v1210_v45  ;;  %v6634_v46 = vsel %vm5035_vm10, 4294967295, %v6633_v46  ;;  %vm1315_vm15 = vcmp.eq.s32.totalorder %v4719_v63, 1 }
 0x113   : > { %v3806_v34 = vpop.f32.mrf.mxu0  ;;  %v1245_v12 = vsel %vm6552_vm14, %v6632_v41, %v1209_v43  ;;  %6635 = vst [vmem:[#allocation24_spill] sm:$0xff] %v6634_v46  ;;  %v1477_v57 = vsel %vm5001_vm1, 65537, %v6622_v37  ;;  %vm1316_vm12 = vcmp.eq.s32.totalorder %v4729_v5, 1  ;;  %v965_v24 = vmul.f32 %v4742_v10, %v903_v42  ;;  %vm5092_vm6 = vmpackc.low %vm1315_vm15, %vm1315_vm15  ;;  %v5150_v42 = vpop.permute.xlu0 %1434 }
 0x114   : > { %v5013_v55 = vsel %vm6516_vm13, %v6511_v2, 0.0  ;;  %v1211_v2 = vrot.slane %v4985_v38, 7  ;;  %v5043_v44 = vpack.c.bf16 %v1244_v31, %v1245_v12  ;;  %vm5051_vm13 = vmpackc.low %vm1314_vm2, %vm1314_vm2  ;;  %v5070_v51 = vsel %vm5023_vm9, 65537, %v6622_v37 }
 0x115   : > { %v906_v50 = vpop.f32.mrf.mxu0  ;;  %v5018_v8 = vpop.permute.xlu1 %1301  ;;  %v6639_v31 = vrot.slane %v5013_v55, 7  ;;  %vm1450_vm2 = vcmp.eq.s32.totalorder %v4957_v14, 1  ;;  %vm1317_vm7 = vcmp.eq.s32.totalorder %v4733_v7, 1  ;;  %vm1453_vm9 = vcmp.eq.s32.totalorder %v1429_v26, 1  ;;  %v4080_v26 = vld [vmem:[%s6491_s5 + $0x1a8] sm:$0xff]  }
 0x116   : > { %6629 = vst [vmem:[#allocation23_spill] sm:$0xff] %v5018_v8  ;;  %6636 = vst [vmem:[#allocation25_spill] sm:$0xff] %v5043_v44  ;;  %3331 = vmatprep.mubr.msk.bf16.mxu0 %vm4929_vm4, %v5043_v44  ;;  %v966_v48 = vmul.f32 %v4742_v10, %v906_v50  ;;  %v3220_v8 = vcombine.low %v4977_v58, %v1477_v57  ;;  %v1243_v63 = vsel %vm6552_vm14, %v1210_v45, %v1211_v2  ;;  %v6647_v57 = vmov 0 }
 0x117   : > { %v1242_v12 = vsel %vm6552_vm14, %v1211_v2, %v6639_v31  ;;  %v6645_v31 = vmax.f32 %v4971_v21, 0.0  ;;  %3332 = vmatmul.mubr.msk.bf16.vlgmr.msra.gmra.mxu0 %vm5035_vm10, %v1197_v0  ;;  %v1157_v0 = vrot.slane %v4908_v32, 1  ;;  %v967_v2 = vmul.f32 %v4927_v56, %v4742_v10 }
 0x118   : > { %v5058_v41 = vpop.f32.mrf.mxu0  ;;  %v5127_v45 = vpack.c.bf16 %v1242_v12, %v1243_v63  ;;  %3668 = vmatpush3.bf16.msra.mxu0 %v4074_v47  ;;  %v1479_v5 = vsel %vm5077_vm8, 65537, %v6622_v37  ;;  %v5142_v32 = vadd.f32 %v4757_v17, %v965_v24  ;;  %v968_v56 = vmul.f32 %v3806_v34, %v4742_v10  ;;  %v4079_v12 = vld [vmem:[%s6491_s5 + $0x1e8] sm:$0xff]   ;;  %vm5155_vm8 = vmpackc.low %vm1317_vm7, %vm1317_vm7 }
 0x119   : > { %v5086_v43 = vpop.permute.xlu1 %1304  ;;  %v5102_v50 = vsel %vm6523_vm5, %v6645_v31, 0.0  ;;  %vm5120_vm5 = vmpackc.low %vm1316_vm12, %vm1316_vm12  ;;  %3669 = vmatprep.subr.bf16.mxu0 %v4076_v61  ;;  %vm1449_vm12 = vcmp.eq.s32.totalorder %v4869_v23, 1  ;;  %v5162_v34 = vadd.f32 %v4757_v17, %v966_v48  ;;  %v6658_v61 = vrot.slane %v4985_v38, 1 }
 0x11a   : > { %6642 = vst [vmem:[#allocation26_spill] sm:$0xff] %v5086_v43  ;;  %v5106_v44 = vpop.f32.mrf.mxu0  ;;  %v6646_v43 = vcombine.low %v4866_v19, %v4850_v62  ;;  %6652 = vst [vmem:[#allocation28_spill] sm:$0xff] %v5127_v45  ;;  %v4078_v62 = vld [vmem:[%s6491_s5 + $0x1b0] sm:$0xff]   ;;  %v6653_v19 = vmax.f32 %v5007_v49, 0.0  ;;  %3333 = vmatprep.mubr.msk.bf16.mxu0 %vm4989_vm0, %v5127_v45  ;;  %vm6543_vm7 = vcmp.eq.s32.totalorder %v4727_v4, 1  ;;  %v5182_v48 = vsel %vm5051_vm13, 65537, %v6622_v37 }
 0x11b   : > { %6654 = vst [vmem:[#allocation29_spill] sm:$0xff] %v5142_v32  ;;  %6657 = vst [vmem:[#allocation30_spill] sm:$0xff] %v5162_v34  ;;  %v1192_v7 = vsel %vm6558_vm11, %v1157_v0, %v6658_v61  ;;  %vm5189_vm1 = vcmp.ne.s16.totalorder %v3220_v8, 0  ;;  %v6661_v61 = vmov 0  ;;  %v5196_v14 = vsel %vm5120_vm5, 65537, %v6622_v37 }
 0x11c   : > { %vm5113_vm15 = vcmp.ne.s16.totalorder %v6646_v43, 0  ;;  %v5139_v43 = vsel %vm6524_vm3, %v6653_v19, 0.0  ;;  %v5145_v47 = vpop.f32.mrf.mxu0  ;;  %vm5175_vm3 = vmpackc.low %vm1450_vm2, %vm1450_vm2  ;;  %v5187_v19 = vsel %vm5092_vm6, 65537, %v6622_v37  ;;  %v6662_v61 = vsel %vm5189_vm1, 4294967295, %v6661_v61  ;;  %3670 = vmatpush3.bf16.msra.mxu0 %v4078_v62 }
 0x11d   : > { %v6648_v57 = vsel %vm5113_vm15, 4294967295, %v6647_v57  ;;  %6663 = vst [vmem:[#allocation31_spill] sm:$0xff] %v6662_v61  ;;  %vm5202_vm13 = vmpackc.low %vm1453_vm9, %vm1453_vm9  ;;  %v3221_v9 = vcombine.low %v4996_v20, %v1479_v5  ;;  %v1213_v8 = vrot.slane %v5139_v43, 7  ;;  %v5209_v45 = vadd.f32 %v4757_v17, %v967_v2  ;;  %3671 = vmatprep.subr.bf16.mxu0 %v4079_v12  ;;  %v4082_v5 = vld [vmem:[%s6491_s5 + $0x1e0] sm:$0xff]   ;;  %v4085_v61 = vld [vmem:[%s6491_s5 + $0x1d8] sm:$0xff]  }
 0x11e   : > { %6649 = vst [vmem:[#allocation27_spill] sm:$0xff] %v6648_v57  ;;  %v922_v24 = vpop.f32.mrf.mxu0  ;;  %v5198_v46 = vpop.permute.xlu1 %1422  ;;  %v6667_v58 = vrot.slane %v4889_v28, 1  ;;  %v5221_v49 = vsel %vm5155_vm8, 65537, %v6622_v37  ;;  %vm5226_vm6 = vmpackc.low %vm1449_vm12, %vm1449_vm12  ;;  %v5253_v12 = vsel %vm5175_vm3, 65537, %v6622_v37  ;;  %vm6540_vm5 = vcmp.eq.s32.totalorder %v4725_v3, 1 }
 0x11f   : > { %6666 = vst [vmem:[#allocation32_spill] sm:$0xff] %v5209_v45  ;;  %vm5272_vm3 = vcmp.ne.s16.totalorder %v3221_v9, 0  ;;  %v6675_v15 = vmov 0  ;;  %v1481_v31 = vsel %vm5226_vm6, 65537, %v6622_v37  ;;  %vm6678_vm2 = vcmp.eq.s32.totalorder %v4715_v59, 1  ;;  %v4105_v59 = vld [vmem:[%s6491_s5 + $0x228] sm:$0xff]  }
 0x120   : > { %v1193_v21 = vsel %vm6558_vm11, %v6667_v58, %v1157_v0  ;;  %v5232_v0 = vadd.f32 %v4757_v17, %v968_v56  ;;  %v3813_v62 = vpop.f32.mrf.mxu0  ;;  %v6672_v58 = vrot.slane %v5102_v50, 7  ;;  %v6673_v56 = vrot.slane %v5013_v55, 7  ;;  %3672 = vmatpush3.bf16.msra.mxu0 %v4080_v26 }
 0x121   : > { %v5234_v2 = vpack.c.bf16 %v1192_v7, %v1193_v21  ;;  %v5258_v7 = vsel %vm5202_vm13, 65537, %v6622_v37  ;;  %v6676_v15 = vsel %vm5272_vm3, 4294967295, %v6675_v15  ;;  %v975_v26 = vmul.f32 %v3813_v62, %v4742_v10  ;;  %3673 = vmatprep.subr.bf16.mxu0 %v4082_v5 }
 0x122   : > { %6670 = vst [vmem:[#allocation33_spill] sm:$0xff] %v5232_v0  ;;  %v1240_v28 = vsel %vm6552_vm14, %v1213_v8, %v6672_v58  ;;  %v1241_v21 = vsel %vm6552_vm14, %v6673_v56, %v1213_v8  ;;  %v935_v23 = vpop.f32.mrf.mxu0  ;;  %v5266_v8 = vpop.permute.xlu1 %1425  ;;  %vm6550_vm9 = vcmp.eq.s32.totalorder %v4648_v30, 1  ;;  %vm6680_vm8 = vcmp.eq.s32.totalorder %v4723_v1, 1 }
 0x123   : > { %6671 = vst [vmem:[#allocation34_spill] sm:$0xff] %v5234_v2  ;;  %3334 = vmatmul.mubr.msk.bf16.gmra.mxu0 %vm5189_vm1, %v5234_v2  ;;  %v5264_v58 = vpack.c.bf16 %v1240_v28, %v1241_v21  ;;  %v5268_v56 = vpop.permute.xlu0 %1096  ;;  %v4084_v28 = vld [vmem:[%s6491_s5 + $0x1a0] sm:$0xff]   ;;  %v6677_v21 = vmax.f32 %v5142_v32, 0.0  ;;  %v971_v2 = vmul.f32 %v5058_v41, %v4742_v10  ;;  %v969_v41 = vmul.f32 %v4742_v10, %v5106_v44 }
 0x124   : > { %v3814_v20 = vpop.f32.mrf.mxu0  ;;  %v973_v62 = vmul.f32 %v4742_v10, %v935_v23  ;;  %v6681_v5 = vcombine.low %v4860_v18, %v4880_v25  ;;  %v3222_v1 = vcombine.low %v5070_v51, %v1481_v31  ;;  %3674 = vmatpush3.bf16.msra.mxu0 %v4084_v28  ;;  %v6684_v23 = vmax.f32 %v5209_v45, 0.0  ;;  %v4088_v28 = vld [vmem:[%s6491_s5 + $0x1d0] sm:$0xff]  }
 0x125   : > { %6674 = vst [vmem:[#allocation35_spill] sm:$0xff] %v5264_v58  ;;  %v5287_v63 = vsel %vm6678_vm2, %v6677_v21, 0.0  ;;  %3335 = vmatprep.mubr.msk.bf16.mxu0 %vm5113_vm15, %v5264_v58  ;;  %v6679_v21 = vmax.f32 %v5162_v34, 0.0  ;;  %v970_v58 = vmul.f32 %v4742_v10, %v922_v24  ;;  %v1159_v34 = vrot.slane %v5013_v55, 1  ;;  %v4086_v24 = vld [vmem:[%s6491_s5 + $0x198] sm:$0xff]   ;;  %3675 = vmatprep.subr.bf16.mxu0 %v4085_v61 }
 0x126   : > { %vm5313_vm12 = vcmp.ne.s16.totalorder %v6681_v5, 0  ;;  %v976_v44 = vmul.f32 %v3814_v20, %v4742_v10  ;;  %v5323_v32 = vpop.permute.xlu1 %1431  ;;  %v5333_v55 = vadd.f32 %v4757_v17, %v973_v62  ;;  %v5343_v31 = vsel %vm6540_vm5, %v6684_v23, 0.0  ;;  %v938_v25 = vpop.f32.mrf.mxu0 }
 0x127   : > { %v5304_v9 = vsel %vm6680_vm8, %v6679_v21, 0.0  ;;  %v5320_v21 = vadd.f32 %v4757_v17, %v975_v26  ;;  %v1215_v20 = vrot.slane %v5287_v63, 7  ;;  %v5351_v5 = vpop.permute.xlu0 %1099  ;;  %v6686_v18 = vmax.f32 %v5232_v0, 0.0  ;;  %v4107_v0 = vld [vmem:[%s6491_s5 + $0x218] sm:$0xff]  }
 0x128   : > { %v1216_v62 = vrot.slane %v5304_v9, 7  ;;  %6685 = vst [vmem:[#allocation36_spill] sm:$0xff] %v5351_v5  ;;  %v5360_v23 = vadd.f32 %v4757_v17, %v971_v2  ;;  %v5363_v26 = vadd.f32 %v4757_v17, %v969_v41  ;;  %v5366_v61 = vadd.f32 %v4757_v17, %v970_v58  ;;  %3676 = vmatpush3.bf16.msra.mxu0 %v4086_v24  ;;  %v4091_v24 = vld [vmem:[%s6491_s5 + $0x1c8] sm:$0xff]  }
 0x129   : > { %v5357_v51 = vsel %vm6543_vm7, %v6686_v18, 0.0  ;;  %vm5368_vm5 = vcmp.ne.s16.totalorder %v3222_v1, 0  ;;  %v6687_v3 = vmov 0  ;;  %vm1451_vm6 = vcmp.eq.s32.totalorder %v5198_v46, 1  ;;  %3677 = vmatprep.subr.bf16.mxu0 %v4088_v28 }
 0x12a   : > { %v6688_v3 = vsel %vm5368_vm5, 4294967295, %v6687_v3  ;;  %v1003_v4 = vadd.f32 %v4757_v17, %v976_v44  ;;  %v6689_v18 = vrot.slane %v5139_v43, 1  ;;  %v6690_v41 = vrot.slane %v4985_v38, 1  ;;  %vm1467_vm13 = vmpackc.low %vm1451_vm6, %vm1451_vm6 }
 0x12b   : > { %v6691_v1 = vcombine.low %v5182_v48, %v5187_v19  ;;  %v972_v44 = vmul.f32 %v5145_v47, %v4742_v10  ;;  %v6549_v45 = vmax.f32 %v5320_v21, 0.0  ;;  %v6548_v57 = vmax.f32 %v5333_v55, 0.0  ;;  %v5395_v38 = vpop.permute.xlu1 %1093 }
 0x12c   : > { %v1190_v2 = vsel %vm6558_vm11, %v1159_v34, %v6689_v18  ;;  %v1191_v58 = vsel %vm6558_vm11, %v6690_v41, %v1159_v34  ;;  %v4090_v34 = vld [vmem:[%s6491_s5 + $0x190] sm:$0xff]   ;;  %v1023_v48 = vmax.f32 %v1003_v4, 0.0  ;;  %v1238_v19 = vsel %vm6552_vm14, %v1215_v20, %v1216_v62 }
 0x12d   : > { %vm5385_vm7 = vcmp.ne.s16.totalorder %v6691_v1, 0  ;;  %v5393_v18 = vpack.c.bf16 %v1190_v2, %v1191_v58  ;;  %v6694_v47 = vrot.slane %v5102_v50, 7  ;;  %v974_v2 = vmul.f32 %v4742_v10, %v938_v25  ;;  %3678 = vmatpush3.bf16.msra.mxu0 %v4090_v34  ;;  %v4094_v34 = vld [vmem:[%s6491_s5 + $0x1c0] sm:$0xff]  }
 0x12e   : > { %vm6551_vm8 = vcmp.eq.s32.totalorder %v5395_v38, 1  ;;  %v5425_v25 = vsel %vm6550_vm9, %v1023_v48, 0.0  ;;  %3679 = vmatprep.subr.bf16.mxu0 %v4091_v24  ;;  %v6701_v24 = vmax.f32 %v5363_v26, 0.0  ;;  %vm6704_vm6 = vcmp.eq.s32.totalorder %v4731_v6, 1 }
 0x12f   : > { %v1239_v41 = vsel %vm6552_vm14, %v6694_v47, %v1215_v20  ;;  %3336 = vmatmul.mubr.msk.bf16.gmra.mxu0 %vm5272_vm3, %v5393_v18  ;;  %v5429_v20 = vpack.c.bf16 %v1023_v48, %v6549_v45  ;;  %v5432_v46 = vadd.f32 %v4757_v17, %v974_v2  ;;  %v5438_v28 = vsel %vm6551_vm8, %v6548_v57, 0.0  ;;  %v4092_v48 = vld [vmem:[%s6491_s5 + $0x188] sm:$0xff]  }
 0x130   : > { %v5420_v10 = vpack.c.bf16 %v1238_v19, %v1239_v41  ;;  %v1217_v19 = vrot.slane %v5343_v31, 7  ;;  %v1163_v41 = vrot.slane %v5304_v9, 1  ;;  %v1483_v2 = vsel %vm1467_vm13, 65537, %v6622_v37 }
 0x131   : > { %6695 = vst [vmem:[#allocation37_spill] sm:$0xff] %v5429_v20  ;;  %v6696_v45 = vrot.slane %v5287_v63, 1  ;;  %v6697_v47 = vrot.slane %v5102_v50, 1  ;;  %v5465_v57 = vadd.f32 %v4757_v17, %v972_v44  ;;  %vm6698_vm13 = vcmp.eq.s32.totalorder %v4764_v22, 1  ;;  %3680 = vmatpush3.bf16.msra.mxu0 %v4092_v48 }
 0x132   : > { %3337 = vmatprep.mubr.msk.bf16.mxu0 %vm5313_vm12, %v5420_v10  ;;  %v1237_v58 = vsel %vm6552_vm14, %v1216_v62, %v1217_v19  ;;  %vm5473_vm9 = vmpackc.low %vm6698_vm13, %vm6698_vm13  ;;  %vm6702_vm8 = vcmp.eq.s32.totalorder %v4744_v11, 1  ;;  %v6703_v17 = vmax.f32 %v5366_v61, 0.0  ;;  %v6705_v62 = vmax.f32 %v5432_v46, 0.0  ;;  %3681 = vmatprep.subr.bf16.mxu0 %v4094_v34  ;;  %v4075_v34 = vld [vmem:[%s6491_s5 + $0x170] sm:$0xff]  }
 0x133   : > { %v1188_v9 = vsel %vm6558_vm11, %v6697_v47, %v6696_v45  ;;  %v5481_v47 = vsel %vm6702_vm8, %v6701_v24, 0.0  ;;  %vm6706_vm2 = vcmp.eq.s32.totalorder %v5268_v56, 1  ;;  %v6707_v4 = vrot.slane %v5102_v50, 1 }
 0x134   : > { %v5487_v44 = vsel %vm6704_vm6, %v6703_v17, 0.0  ;;  %v5493_v22 = vsel %vm6706_vm2, %v6705_v62, 0.0  ;;  %v6708_v1 = vrot.slane %v5139_v43, 1  ;;  %v6709_v20 = vcombine.low %v5196_v14, %v5221_v49  ;;  %v4110_v17 = vld [vmem:[%s6491_s5 + $0x200] sm:$0xff]  }
 0x135   : > { %vm6712_vm13 = vcmp.eq.s32.totalorder %v4805_v40, 1  ;;  %v3223_v50 = vcombine.low %v5253_v12, %v1483_v2  ;;  %v1171_v43 = vrot.slane %v5493_v22, 1  ;;  %v4096_v40 = vld [vmem:[%s6491_s5 + $0x180] sm:$0xff]   ;;  %v6716_v12 = vrot.slane %v4893_v29, 7 }
 0x136   : > { %v1189_v24 = vsel %vm6558_vm11, %v6708_v1, %v6707_v4  ;;  %vm5505_vm6 = vcmp.ne.s16.totalorder %v6709_v20, 0  ;;  %vm5512_vm2 = vmpackc.low %vm6712_vm13, %vm6712_vm13  ;;  %v6715_v1 = vrot.slane %v5357_v51, 7  ;;  %v6717_v20 = vrot.slane %v4899_v16, 7  ;;  %3682 = vmatpush3.bf16.msra.mxu0 %v4096_v40 }
 0x137   : > { %v5518_v4 = vpack.c.bf16 %v1188_v9, %v1189_v24  ;;  %v4072_v24 = vld [vmem:[%s6491_s5 + $0x138] sm:$0xff]   ;;  %v6720_v29 = vmax.f32 %v5320_v21, 0.0  ;;  %vm6721_vm8 = vcmp.eq.s32.totalorder %v5351_v5, 1  ;;  %vm6724_vm13 = vcmp.eq.s32.totalorder %v4675_v39, 1 }
 0x138   : > { %v1236_v49 = vsel %vm6552_vm14, %v1217_v19, %v6715_v1  ;;  %v1246_v2 = vsel %vm6552_vm14, %v6717_v20, %v6716_v12  ;;  %v6718_v9 = vmov %v6717_v20  ;;  %v6719_v19 = vrot.slane %v5425_v25, 7 }
 0x139   : > { %v5528_v14 = vpack.c.bf16 %v1236_v49, %v1237_v58  ;;  %v1142_v1 = vsel %vm6721_vm8, %v6720_v29, 0.0  ;;  %v6722_v49 = vrot.slane %v5438_v28, 1  ;;  %3338 = vmatmul.mubr.msk.bf16.gmra.mxu0 %vm5368_vm5, %v5518_v4  ;;  %v6725_v21 = vmov 0 }
 0x13a   : > { %v1247_v48 = vsel %vm6552_vm14, %v6719_v19, %v6718_v9  ;;  %vm6723_vm14 = vcmp.eq.s32.totalorder %v4666_v36, 1  ;;  %v6727_v9 = vmax.f32 %v4778_v27, 0.0  ;;  %v6728_v19 = vld [vmem:[#allocation18_spill] sm:$0xff]  ;;  %v5582_v36 = vsel %vm5512_vm2, 65537, %v6622_v37 }
 0x13b   : > { %v1179_v12 = vsel %vm6558_vm11, %v6722_v49, %v1171_v43  ;;  %v1248_v20 = vpack.c.bf16 %v1246_v2, %v1247_v48  ;;  %vm5564_vm3 = vmpackc.low %vm6724_vm13, %vm6723_vm14  ;;  %v6729_v29 = vmax.f32 %v6728_v19, 0.0  ;;  %v5577_v2 = vsel %vm5473_vm9, 65537, %v6622_v37  ;;  %3339 = vmatprep.mubr.msk.bf16.mxu0 %vm5385_vm7, %v5528_v14 }
 0x13c   : > { %v6726_v21 = vsel %vm5564_vm3, 4294967295, %v6725_v21  ;;  %v1219_v27 = vrot.slane %v5481_v47, 7  ;;  %vm6730_vm14 = vcmp.eq.s32.totalorder %v5266_v8, 1  ;;  %v1173_v48 = vrot.slane %v5425_v25, 1 }
 0x13d   : > { %v5572_v49 = vpack.c.bf16 %v6729_v29, %v6727_v9  ;;  %vm5592_vm8 = vmpackc.low %vm6730_vm14, %vm6730_vm14  ;;  %3302 = vmatmul.mubr.msk.bf16.vlgmr.msra.gmra.mxu1 %vm4929_vm4, %v1248_v20  ;;  %v6733_v62 = vrot.slane %v5343_v31, 1  ;;  %v6734_v19 = vrot.slane %v5287_v63, 1  ;;  %v6735_v29 = vld [vmem:[#allocation23_spill] sm:$0xff]  ;;  %v6736_v39 = vmax.f32 %v5360_v23, 0.0 }
 0x13e   : > { %vm6737_vm2 = vcmp.eq.s32.totalorder %v4946_v53, 1  ;;  %v1225_v30 = vrot.slane %v1142_v1, 7  ;;  %3604 = vmatpush3.bf16.msra.mxu1 %v4072_v24  ;;  %v4077_v63 = vld [vmem:[%s6491_s5 + $0x130] sm:$0xff]   ;;  %vm5622_vm13 = vcmp.ne.s16.totalorder %v3223_v50, 0  ;;  %v6738_v40 = vmov 0 }
 0x13f   : > { %v1186_v9 = vsel %vm6558_vm11, %v1163_v41, %v6733_v62  ;;  %v1187_v8 = vsel %vm6558_vm11, %v6734_v19, %v1163_v41  ;;  %v5612_v58 = vsel %vm6737_vm2, %v6736_v39, 0.0  ;;  %3305 = vmatprep.mubr.msk.bf16.mxu1 %vm5564_vm3, %v5572_v49  ;;  %v6739_v40 = vsel %vm5622_vm13, 4294967295, %v6738_v40  ;;  %3605 = vmatprep.subr.bf16.mxu1 %v4075_v34  ;;  %v4081_v19 = vld [vmem:[%s6491_s5 + $0x168] sm:$0xff]  }
 0x140   : > { %v1172_v39 = vrot.slane %v1142_v1, 1  ;;  %v6740_v62 = vrot.slane %v5487_v44, 7  ;;  %vm6741_vm14 = vcmp.lt.s32.totalorder %v4791_v33, 1  ;;  %v1484_v20 = vsel %vm5592_vm8, 65537, %v6622_v37 }
 0x141   : > { %v5636_v41 = vpack.c.bf16 %v1186_v9, %v1187_v8  ;;  %v6742_v50 = vrot.slane %v5425_v25, 7  ;;  %vm6743_vm2 = vmmov %vm6741_vm14  ;;  %v6744_v5 = vrot.slane %v5493_v22, 7  ;;  %vm6751_vm8 = vcmp.eq.s32.totalorder %v4854_v13, 1 }
 0x142   : > { %v1234_v24 = vsel %vm6741_vm14, %v1219_v27, %v6740_v62  ;;  %vm6745_vm14 = vmmov %vm6743_vm2  ;;  %v6747_v62 = vrot.slane %v5357_v51, 7  ;;  %v1178_v25 = vsel %vm6558_vm11, %v1171_v43, %v1172_v39  ;;  %v5660_v8 = vsel %vm6558_vm11, %v1172_v39, %v1173_v48  ;;  %3606 = vmatpush3.bf16.msra.mxu1 %v4077_v63 }
 0x143   : > { %v5642_v1 = vsel %vm6743_vm2, %v1225_v30, %v6742_v50  ;;  %v5648_v34 = vsel %vm6745_vm14, %v6744_v5, %v1225_v30  ;;  %vm6748_vm9 = vmmov %vm6743_vm2  ;;  %6749 = vst [vmem:[#allocation23_spill] sm:$0xff] %v5660_v8  ;;  %v6750_v50 = vmax.f32 %v5465_v57, 0.0  ;;  %v5673_v9 = vpack.c.bf16 %v1178_v25, %v1179_v12  ;;  %3340 = vmatmul.mubr.msk.bf16.gmra.mxu0 %vm5622_vm13, %v5636_v41  ;;  %v6767_v25 = vld [vmem:[#allocation26_spill] sm:$0xff] }
 0x144   : > { %6746 = vst [vmem:[#allocation18_spill] sm:$0xff] %v5648_v34  ;;  %v1235_v45 = vsel %vm6748_vm9, %v6747_v62, %v1219_v27  ;;  %v1438_v27 = vpop.permute.xlu1 %1437  ;;  %v4083_v62 = vld [vmem:[%s6491_s5 + $0x128] sm:$0xff]   ;;  %v6752_v43 = vrot.slane %v4899_v16, 1  ;;  %v6754_v34 = vld [vmem:[#allocation13_spill] sm:$0xff]  ;;  %v3217_v63 = vcombine.low %v5577_v2, %v5582_v36  ;;  %3607 = vmatprep.subr.bf16.mxu1 %v4081_v19  ;;  %v6765_v36 = vld [vmem:[#allocation20_spill] sm:$0xff]  ;;  %v1165_v19 = vrot.slane %v5357_v51, 1 }
 0x145   : > { %v5666_v30 = vsel %vm6751_vm8, %v6750_v50, 0.0  ;;  %v5668_v5 = vpack.c.bf16 %v1234_v24, %v1235_v45  ;;  %vm6755_vm9 = vcmp.eq.s32.totalorder %v6754_v34, 1  ;;  %v6756_v50 = vld [vmem:[#allocation12_spill] sm:$0xff]  ;;  %vm1454_vm8 = vcmp.eq.s32.totalorder %v5323_v32, 1  ;;  %v4087_v16 = vld [vmem:[%s6491_s5 + $0x160] sm:$0xff]   ;;  %v6763_v32 = vld [vmem:[#allocation19_spill] sm:$0xff] }
 0x146   : > { %v5679_v39 = vsel %vm6558_vm11, %v1173_v48, %v6752_v43  ;;  %vm6757_vm2 = vcmp.eq.s32.totalorder %v6756_v50, 1  ;;  %v6764_v2 = vmax.f32 %v6763_v32, 0.0  ;;  %v6766_v34 = vmax.f32 %v6765_v36, 0.0  ;;  %v6771_v51 = vld [vmem:[#allocation25_spill] sm:$0xff]  ;;  %vm1470_vm5 = vmpackc.low %vm1454_vm8, %vm1454_vm8  ;;  %3608 = vmatpush3.bf16.msra.mxu1 %v4083_v62 }
 0x147   : > { %6753 = vst [vmem:[#allocation38_spill] sm:$0xff] %v5679_v39  ;;  %vm5685_vm14 = vmpackc.low %vm6757_vm2, %vm6755_vm9  ;;  %vm6760_vm9 = vcmp.eq.s32.totalorder %v5150_v42, 1  ;;  %vm1321_vm11 = vcmp.eq.s32.totalorder %v6767_v25, 1  ;;  %v3224_v43 = vcombine.low %v1484_v20, %v5258_v7  ;;  %3341 = vmatprep.mubr.msk.bf16.mxu0 %vm5505_vm6, %v5668_v5  ;;  %v1221_v50 = vrot.slane %v5612_v58, 7  ;;  %3306 = vmatmul.mubr.msk.bf16.gmra.mxu1 %vm4989_vm0, %v6771_v51  ;;  %v4089_v20 = vld [vmem:[%s6491_s5 + $0x120] sm:$0xff]  }
 0x148   : > { %vm5703_vm2 = vmpackc.low %vm6760_vm9, %vm6760_vm9  ;;  %v5711_v45 = vpack.c.bf16 %v6766_v34, %v6764_v2  ;;  %vm6768_vm9 = vcmp.eq.s32.totalorder %v6735_v29, 1  ;;  %v1222_v32 = vrot.slane %v5666_v30, 7  ;;  %v6772_v7 = vrot.slane %v5481_v47, 1  ;;  %3609 = vmatprep.subr.bf16.mxu1 %v4087_v16  ;;  %v4093_v34 = vld [vmem:[%s6491_s5 + $0x158] sm:$0xff]  }
 0x149   : > { %vm5722_vm13 = vmpackc.low %vm6768_vm9, %vm6768_vm9  ;;  %vm6773_vm9 = vcmp.lt.s32.totalorder %v4791_v33, 7  ;;  %v6774_v2 = vrot.slane %v5487_v44, 7  ;;  %vm6775_vm3 = vcmp.lt.s32.totalorder %v4791_v33, 1  ;;  %v1487_v25 = vsel %vm5703_vm2, 65537, %v6622_v37 }
 0x14a   : > { %3309 = vmatprep.mubr.msk.bf16.mxu1 %vm5685_vm14, %v5711_v45  ;;  %v1184_v29 = vsel %vm6773_vm9, %v1165_v19, %v6772_v7  ;;  %vm1337_vm1 = vmpackc.low %vm1321_vm11, %vm1321_vm11  ;;  %vm5751_vm8 = vcmp.ne.s16.totalorder %v3217_v63, 0  ;;  %vm5755_vm9 = vcmp.ne.s16.totalorder %v3224_v43, 0  ;;  %v6778_v51 = vmov 0  ;;  %3610 = vmatpush3.bf16.msra.mxu1 %v4089_v20  ;;  %v6788_v20 = vld [vmem:[#allocation21_spill] sm:$0xff] }
 0x14b   : > { %v1233_v36 = vsel %vm6775_vm3, %v6774_v2, %v1221_v50  ;;  %v6779_v51 = vsel %vm5755_vm9, 4294967295, %v6778_v51  ;;  %v6780_v7 = vrot.slane %v5343_v31, 1  ;;  %vm6781_vm11 = vcmp.lt.s32.totalorder %v4791_v33, 7  ;;  %v1441_v2 = vpop.permute.xlu1 %1440  ;;  %3611 = vmatprep.subr.bf16.mxu1 %v4093_v34 }
 0x14c   : > { %v1352_v12 = vsel %vm5722_vm13, 65537, %v6622_v37  ;;  %v1486_v48 = vsel %vm1470_vm5, 65537, %v6622_v37  ;;  %v1232_v43 = vsel %vm6775_vm3, %v1221_v50, %v1222_v32  ;;  %v1353_v8 = vsel %vm1337_vm1, 65537, %v6622_v37  ;;  %v6786_v50 = vld [vmem:[#allocation22_spill] sm:$0xff] }
 0x14d   : > { %v1185_v16 = vsel %vm6781_vm11, %v6780_v7, %v1165_v19  ;;  %v1167_v39 = vrot.slane %v5487_v44, 1  ;;  %v5773_v31 = vpack.c.bf16 %v1232_v43, %v1233_v36  ;;  %vm1456_vm2 = vcmp.eq.s32.totalorder %v1438_v27, 1  ;;  %v4095_v19 = vld [vmem:[%s6491_s5 + $0x118] sm:$0xff]   ;;  %v4097_v44 = vld [vmem:[%s6491_s5 + $0x150] sm:$0xff]  }
 0x14e   : > { %v5767_v63 = vpack.c.bf16 %v1184_v29, %v1185_v16  ;;  %v1223_v42 = vrot.slane %v5438_v28, 7  ;;  %vm1457_vm5 = vcmp.eq.s32.totalorder %v1441_v2, 1  ;;  %vm6782_vm1 = vcmp.eq.s32.totalorder %v4707_v52, 1  ;;  %vm1472_vm3 = vmpackc.low %vm1456_vm2, %vm1456_vm2  ;;  %3612 = vmatpush3.bf16.msra.mxu1 %v4095_v19 }
 0x14f   : > { %vm6783_vm13 = vcmp.eq.s32.totalorder %v4709_v54, 1  ;;  %v6787_v29 = vmax.f32 %v6786_v50, 0.0  ;;  %v6789_v36 = vmax.f32 %v6788_v20, 0.0  ;;  %v1168_v34 = vrot.slane %v5612_v58, 1  ;;  %v6790_v54 = vld [vmem:[#allocation28_spill] sm:$0xff]  ;;  %3613 = vmatprep.subr.bf16.mxu1 %v4097_v44  ;;  %v4101_v44 = vld [vmem:[%s6491_s5 + $0x140] sm:$0xff]  }
 0x150   : > { %3342 = vmatmul.mubr.msk.bf16.gmra.mxu0 %vm5755_vm9, %v5767_v63  ;;  %vm5789_vm11 = vmpackc.low %vm6783_vm13, %vm6782_vm1  ;;  %v3225_v16 = vcombine.low %v1486_v48, %v1487_v25  ;;  %v3218_v52 = vcombine.low %v1352_v12, %v1353_v8  ;;  %3310 = vmatmul.mubr.msk.bf16.gmra.mxu1 %vm5113_vm15, %v6790_v54  ;;  %vm6792_vm1 = vcmp.lt.s32.totalorder %v4791_v33, 7  ;;  %v6793_v58 = vrot.slane %v5481_v47, 1  ;;  %v4098_v8 = vld [vmem:[%s6491_s5 + $0x110] sm:$0xff]   ;;  %v4099_v47 = vld [vmem:[%s6491_s5 + $0x148] sm:$0xff]  }
 0x151   : > { %v5797_v7 = vpack.c.bf16 %v6789_v36, %v6787_v29  ;;  %3343 = vmatprep.mubr.msk.bf16.mxu0 %vm5751_vm8, %v5773_v31  ;;  %v1182_v43 = vsel %vm6792_vm1, %v1167_v39, %v1168_v34  ;;  %vm6794_vm13 = vmmov %vm6792_vm1  ;;  %v6795_v12 = vrot.slane %v5493_v22, 7  ;;  %vm6796_vm2 = vcmp.lt.s32.totalorder %v4791_v33, 1  ;;  %v6802_v36 = vld [vmem:[#allocation29_spill] sm:$0xff]  ;;  %v6821_v33 = vld [vmem:[#allocation16_spill] sm:$0xff] }
 0x152   : > { %v1183_v25 = vsel %vm6794_vm13, %v6793_v58, %v1167_v39  ;;  %vm1473_vm9 = vmpackc.low %vm1457_vm5, %vm1457_vm5  ;;  %vm5827_vm1 = vcmp.ne.s16.totalorder %v3225_v16, 0  ;;  %vm5831_vm5 = vcmp.ne.s16.totalorder %v3218_v52, 0  ;;  %v1488_v22 = vsel %vm1472_vm3, 65537, %v6622_v37  ;;  %3614 = vmatpush3.bf16.msra.mxu1 %v4098_v8  ;;  %v6804_v52 = vld [vmem:[#allocation30_spill] sm:$0xff] }
 0x153   : > { %3313 = vmatprep.mubr.msk.bf16.mxu1 %vm5789_vm11, %v5797_v7  ;;  %v1230_v48 = vsel %vm6796_vm2, %v1223_v42, %v6795_v12  ;;  %vm6797_vm10 = vmmov %vm6796_vm2  ;;  %v5836_v29 = vpack.c.bf16 %v1182_v43, %v1183_v25  ;;  %v1489_v20 = vsel %vm1473_vm9, 65537, %v6622_v37  ;;  %3615 = vmatprep.subr.bf16.mxu1 %v4099_v47  ;;  %v6803_v16 = vmax.f32 %v6802_v36, 0.0  ;;  %v6806_v8 = vld [vmem:[#allocation14_spill] sm:$0xff]  ;;  %v6808_v12 = vld [vmem:[#allocation15_spill] sm:$0xff] }
 0x154   : > { %v1231_v50 = vsel %vm6797_vm10, %v1222_v32, %v1223_v42  ;;  %v4100_v42 = vld [vmem:[%s6491_s5 + $0x108] sm:$0xff]   ;;  %v6805_v37 = vmax.f32 %v6804_v52, 0.0  ;;  %v1169_v58 = vrot.slane %v5666_v30, 1  ;;  %v3226_v25 = vcombine.low %v1488_v22, %v1489_v20  ;;  %v4102_v22 = vld [vmem:[%s6491_s5 + $0x100] sm:$0xff]   ;;  %v4103_v20 = vld [vmem:[%s6491_s5 + $0x238] sm:$0xff]  }
 0x155   : > { %v5839_v32 = vpack.c.bf16 %v1230_v48, %v1231_v50  ;;  %vm6807_vm10 = vcmp.eq.s32.totalorder %v6806_v8, 1  ;;  %vm6809_vm9 = vcmp.eq.s32.totalorder %v6808_v12, 1  ;;  %v6812_v50 = vld [vmem:[#allocation35_spill] sm:$0xff]  ;;  %v6813_v47 = vrot.slane %v5438_v28, 1  ;;  %v6819_v52 = vld [vmem:[#allocation33_spill] sm:$0xff] }
 0x156   : > { %v5854_v43 = vpack.c.bf16 %v6805_v37, %v6803_v16  ;;  %vm5864_vm3 = vmpackc.low %vm6809_vm9, %vm6807_vm10  ;;  %3616 = vmatpush3.bf16.msra.mxu1 %v4100_v42  ;;  %vm5884_vm2 = vcmp.ne.s16.totalorder %v3226_v25, 0  ;;  %v6814_v36 = vmov 0  ;;  %v6817_v42 = vld [vmem:[#allocation32_spill] sm:$0xff]  ;;  %v6820_v37 = vmax.f32 %v6819_v52, 0.0  ;;  %v4117_v48 = vld [vmem:[%s6492_s6 + $0x30] sm:$0xff]  }
 0x157   : > { %v1180_v30 = vsel %vm6794_vm13, %v1169_v58, %v6813_v47  ;;  %3617 = vmatprep.subr.bf16.mxu1 %v4101_v44  ;;  %v6815_v36 = vsel %vm5884_vm2, 4294967295, %v6814_v36  ;;  %vm6816_vm10 = vmmov %vm6794_vm13  ;;  %v6818_v44 = vmax.f32 %v6817_v42, 0.0  ;;  %vm6822_vm9 = vcmp.eq.s32.totalorder %v6821_v33, 1  ;;  %v4120_v52 = vld [vmem:[%s6492_s6 + $0x20] sm:$0xff]  }
 0x158   : > { %3344 = vmatmul.mubr.msk.bf16.gmra.mxu0 %vm5827_vm1, %v5836_v29  ;;  %3314 = vmatmul.mubr.msk.bf16.gmra.mxu1 %vm5313_vm12, %v6812_v50  ;;  %v1181_v28 = vsel %vm6816_vm10, %v1168_v34, %v1169_v58  ;;  %v6823_v34 = vld [vmem:[#allocation17_spill] sm:$0xff]  ;;  %v6827_v25 = vmax.f32 %v5363_v26, 0.0  ;;  %v6828_v12 = vmax.f32 %v5366_v61, 0.0  ;;  %v6833_v60 = vmax.f32 %v5360_v23, 0.0 }
 0x159   : > { %3345 = vmatprep.mubr.msk.bf16.mxu0 %vm5831_vm5, %v5839_v32  ;;  %3317 = vmatprep.mubr.msk.bf16.mxu1 %vm5864_vm3, %v5854_v43  ;;  %v5890_v16 = vpack.c.bf16 %v1180_v30, %v1181_v28  ;;  %v5899_v8 = vpack.c.bf16 %v6820_v37, %v6818_v44  ;;  %vm6824_vm13 = vcmp.eq.s32.totalorder %v6823_v34, 1  ;;  %v4106_v23 = vld [vmem:[%s6491_s5 + $0x220] sm:$0xff]   ;;  %v6846_v61 = vmax.f32 %v5333_v55, 0.0  ;;  %v4108_v55 = vld [vmem:[%s6491_s5 + $0x210] sm:$0xff]  }
 0x15a   : > { %3618 = vmatpush3.bf16.msra.mxu1 %v4102_v22  ;;  %vm5908_vm10 = vmpackc.low %vm6824_vm13, %vm6822_vm9  ;;  %v3324_v47 = vpack.c.bf16 %v6828_v12, %v6827_v25  ;;  %vm6829_vm9 = vcmp.eq.s32.totalorder %v4744_v11, 1  ;;  %vm6830_vm13 = vcmp.eq.s32.totalorder %v4731_v6, 1  ;;  %v6834_v11 = vmax.f32 %v5465_v57, 0.0  ;;  %v6843_v57 = vld [vmem:[#allocation31_spill] sm:$0xff] }
 0x15b   : > { %3815 = vmatprep.subr.bf16.mxu1 %v4103_v20  ;;  %v4119_v28 = vld [vmem:[%s6493_s7 + $0x10] sm:$0xff]  }
 0x15c   : > { %v3328_v6 = vpack.c.bf16 %v6834_v11, %v6833_v60 }
 0x160   : > { %3346 = vmatmul.mubr.msk.bf16.gmra.mxu0 %vm5884_vm2, %v5890_v16  ;;  %3318 = vmatmul.mubr.msk.bf16.gmra.mxu1 %vm5385_vm7, %v5420_v10  ;;  %vm5932_vm2 = vmpackc.low %vm6830_vm13, %vm6829_vm9  ;;  %vm6836_vm9 = vcmp.eq.s32.totalorder %v4854_v13, 1  ;;  %v6839_v13 = vld [vmem:[#allocation34_spill] sm:$0xff] }
 0x161   : > { %3381 = vmatprep.mubr.msk.bf16.mxu0 %vm5685_vm14, %v5711_v45  ;;  %3321 = vmatprep.mubr.msk.bf16.mxu1 %vm5908_vm10, %v5899_v8 }
 0x168   : > { %3382 = vmatmul.mubr.msk.bf16.vlgmr.msra.gmra.mxu0 %vm4929_vm4, %v6790_v54  ;;  %3322 = vmatmul.mubr.msk.bf16.gmra.mxu1 %vm5505_vm6, %v5528_v14  ;;  %vm6835_vm4 = vcmp.eq.s32.totalorder %v4946_v53, 1  ;;  %v6840_v53 = vld [vmem:[#allocation24_spill] sm:$0xff] }
 0x169   : > { %3385 = vmatprep.mubr.msk.bf16.mxu0 %vm5789_vm11, %v5797_v7  ;;  %3325 = vmatprep.mubr.msk.bf16.mxu1 %vm5932_vm2, %v3324_v47  ;;  %vm5955_vm13 = vmpackc.low %vm6836_vm9, %vm6835_vm4  ;;  %vm6844_vm4 = vnez %v6843_v57 }
 0x170   : > { %3386 = vmatmul.mubr.msk.bf16.gmra.mxu0 %vm4989_vm0, %v6812_v50  ;;  %3326 = vmatmul.mubr.msk.bf16.gmra.mxu1 %vm5751_vm8, %v5668_v5  ;;  %vm6841_vm0 = vnez %v6840_v53  ;;  %v4121_v53 = vld [vmem:[%s6492_s6 + $0x18] sm:$0xff]  }
 0x171   : > { %3389 = vmatprep.mubr.msk.bf16.mxu0 %vm5864_vm3, %v5854_v43  ;;  %3329 = vmatprep.mubr.msk.bf16.mxu1 %vm5955_vm13, %v3328_v6 }
 0x178   : > { %3390 = vmatmul.mubr.msk.bf16.gmra.mxu0 %vm5113_vm15, %v5420_v10  ;;  %3330 = vmatmul.mubr.msk.bf16.gmra.mxu1 %vm5831_vm5, %v5773_v31  ;;  %vm6842_vm15 = vnez %v6726_v21  ;;  %v6847_v10 = vmax.f32 %v5432_v46, 0.0  ;;  %v6855_v46 = vld [vmem:[#allocation11_spill] sm:$0xff] }
 0x179   : > { %3393 = vmatprep.mubr.msk.bf16.mxu0 %vm5908_vm10, %v5899_v8  ;;  %3347 = vmatprep.mubr.msk.bf16.mxu1 %vm6841_vm0, %v6839_v13 }
 0x180   : > { %3394 = vmatmul.mubr.msk.bf16.gmra.mxu0 %vm5313_vm12, %v5528_v14  ;;  %3350 = vmatmul.mubr.msk.bf16.vlgmr.msra.gmra.mxu1 %vm6842_vm15, %v5572_v49  ;;  %vm6845_vm12 = vnez %v6676_v15  ;;  %v3377_v14 = vpack.c.bf16 %v6847_v10, %v6846_v61  ;;  %vm6852_vm15 = vnez %v6688_v3  ;;  %v6857_v49 = vld [vmem:[#allocation37_spill] sm:$0xff]  ;;  %v4111_v15 = vld [vmem:[%s6493_s7 + $0x38] sm:$0xff]   ;;  %v6864_v3 = vld [vmem:[#allocation23_spill] sm:$0xff] }
 0x181   : > { %3397 = vmatprep.mubr.msk.bf16.mxu0 %vm5932_vm2, %v3324_v47  ;;  %3816 = vmatpush3.bf16.msra.mxu1 %v4103_v20 }
 0x182   : > { %3351 = vmatprep.mubr.msk.bf16.mxu1 %vm6844_vm4, %v5393_v18  ;;  %3817 = vmatprep.subr.bf16.mxu1 %v4104_v35 }
 0x183   : > { %3879 = vmatprep.subr.bf16.mxu0 %v4111_v15 }
 0x184   : > { %3880 = vmatpush3.bf16.msra.mxu0 %v4111_v15 }
 0x185   : > { %3818 = vmatpush3.bf16.msra.mxu1 %v4104_v35  ;;  %v4122_v35 = vld [vmem:[%s6493_s7 + $0x8] sm:$0xff]  }
 0x186   : > { %3819 = vmatprep.subr.bf16.mxu1 %v4105_v59 }
 0x188   : > { %3398 = vmatmul.mubr.msk.bf16.gmra.mxu0 %vm5385_vm7, %v5668_v5  ;;  %3354 = vmatmul.mubr.msk.bf16.gmra.mxu1 %vm5685_vm14, %v5711_v45  ;;  %vm6848_vm7 = vcmp.eq.s32.totalorder %v5395_v38, 1  ;;  %vm6849_vm14 = vcmp.eq.s32.totalorder %v5268_v56, 1  ;;  %v4109_v56 = vld [vmem:[%s6491_s5 + $0x208] sm:$0xff]   ;;  %v6853_v38 = vld [vmem:[#allocation36_spill] sm:$0xff] }
 0x189   : > { %3401 = vmatprep.mubr.msk.bf16.mxu0 %vm5955_vm13, %v3328_v6  ;;  %3355 = vmatprep.mubr.msk.bf16.mxu1 %vm6845_vm12, %v5518_v4  ;;  %vm6018_vm9 = vmpackc.low %vm6849_vm14, %vm6848_vm7  ;;  %vm6856_vm7 = vcmp.eq.s32.totalorder %v6855_v46, 1  ;;  %v6859_v5 = vld [vmem:[#allocation18_spill] sm:$0xff]  ;;  %v4123_v46 = vld [vmem:[%s6492_s6 + $0x10] sm:$0xff]  }
 0x18a   : > { %3820 = vmatpush3.bf16.msra.mxu1 %v4105_v59  ;;  %v6860_v24 = vpack.c.bf16 %v5642_v1, %v6859_v5  ;;  %v4127_v45 = vld [vmem:[#allocation2 + $0x8] sm:$0xff]  }
 0x18b   : > { %3821 = vmatprep.subr.bf16.mxu1 %v4106_v23 }
 0x18e   : > { %3822 = vmatpush3.bf16.msra.mxu1 %v4106_v23 }
 0x18f   : > { %3823 = vmatprep.subr.bf16.mxu1 %v4107_v0 }
 0x190   : > { %3402 = vmatmul.mubr.msk.bf16.gmra.mxu0 %vm5505_vm6, %v5773_v31  ;;  %3358 = vmatmul.mubr.msk.bf16.gmra.mxu1 %vm5789_vm11, %v5797_v7  ;;  %vm6854_vm6 = vcmp.eq.s32.totalorder %v6853_v38, 1  ;;  %vm6858_vm11 = vnez %v6739_v40  ;;  %v4114_v31 = vld [vmem:[%s6493_s7 + $0x20] sm:$0xff]  }
 0x191   : > { %3405 = vmatprep.mubr.msk.bf16.mxu0 %vm6018_vm9, %v3377_v14  ;;  %3359 = vmatprep.mubr.msk.bf16.mxu1 %vm6852_vm15, %v5636_v41  ;;  %vm3407_vm14 = vmpackc.low %vm6856_vm7, %vm6854_vm6 }
 0x192   : > { %3824 = vmatpush3.bf16.msra.mxu1 %v4107_v0 }
 0x193   : > { %3825 = vmatprep.subr.bf16.mxu1 %v4108_v55 }
 0x196   : > { %3826 = vmatpush3.bf16.msra.mxu1 %v4108_v55 }
 0x197   : > { %3827 = vmatprep.subr.bf16.mxu1 %v4109_v56 }
 0x198   : > { %3406 = vmatmul.mubr.msk.bf16.gmra.mxu0 %vm5751_vm8, %v5839_v32  ;;  %3362 = vmatmul.mubr.msk.bf16.gmra.mxu1 %vm5864_vm3, %v5854_v43  ;;  %vm6861_vm8 = vnez %v6779_v51  ;;  %v4116_v32 = vld [vmem:[%s6493_s7 + $0x18] sm:$0xff]  }
 0x199   : > { %3409 = vmatprep.mubr.msk.bf16.mxu0 %vm3407_vm14, %v6857_v49  ;;  %3363 = vmatprep.mubr.msk.bf16.mxu1 %vm6858_vm11, %v5767_v63 }
 0x19a   : > { %3828 = vmatpush3.bf16.msra.mxu1 %v4109_v56 }
 0x19b   : > { %3829 = vmatprep.subr.bf16.mxu1 %v4110_v17 }
 0x19e   : > { %3830 = vmatpush3.bf16.msra.mxu1 %v4110_v17 }
 0x1a0   : > { %3410 = vmatmul.mubr.msk.bf16.gmra.mxu0 %vm5831_vm5, %v6860_v24  ;;  %3366 = vmatmul.mubr.msk.bf16.gmra.mxu1 %vm5908_vm10, %v5899_v8  ;;  %vm6862_vm5 = vnez %v6815_v36  ;;  %v4118_v36 = vld [vmem:[%s6492_s6 + $0x28] sm:$0xff]   ;;  %v4124_v24 = vld [vmem:[%s6493_s7] sm:$0xff]  }
 0x1a1   : > { %3895 = vmatprep.mubr.bf16.mxu0 %v4127_v45  ;;  %3367 = vmatprep.mubr.msk.bf16.mxu1 %vm6861_vm8, %v5836_v29  ;;  %v4125_v45 = vld [vmem:[%s6492_s6 + $0x8] sm:$0xff]  }
 0x1a8   : > { %3370 = vmatmul.mubr.msk.bf16.gmra.mxu1 %vm5932_vm2, %v3324_v47 }
 0x1a9   : > { %3371 = vmatprep.mubr.msk.bf16.mxu1 %vm5827_vm1, %v5890_v16 }
 0x1b0   : > { %3374 = vmatmul.mubr.msk.bf16.gmra.mxu1 %vm5955_vm13, %v3328_v6 }
 0x1b1   : > { %3375 = vmatprep.mubr.msk.bf16.mxu1 %vm6862_vm5, %v5673_v9 }
 0x1b8   : > { %3378 = vmatmul.mubr.msk.bf16.gmra.mxu1 %vm6018_vm9, %v3377_v14 }
 0x1b9   : > { %3831 = vmatprep.mubr.msk.bf16.mxu1 %vm6841_vm0, %v5393_v18  ;;  %v6863_v18 = vld [vmem:[#allocation38_spill] sm:$0xff] }
 0x1c0   : > { %3832 = vmatmul.mubr.msk.bf16.vlgmr.msra.gmra.mxu1 %vm6844_vm4, %v5518_v4  ;;  %v6865_v4 = vpack.c.bf16 %v6863_v18, %v6864_v3 }
 0x1c1   : > { %3835 = vmatprep.mubr.msk.bf16.mxu1 %vm6845_vm12, %v5636_v41  ;;  %v4112_v41 = vld [vmem:[%s6493_s7 + $0x30] sm:$0xff]  }
 0x1c2   : > { %3881 = vmatprep.subr.bf16.mxu0 %v4112_v41 }
 0x1c3   : > { %3882 = vmatpush3.bf16.msra.mxu0 %v4112_v41 }
 0x1c8   : > { %3836 = vmatmul.mubr.msk.bf16.gmra.mxu1 %vm6852_vm15, %v5767_v63 }
 0x1c9   : > { %3839 = vmatprep.mubr.msk.bf16.mxu1 %vm6858_vm11, %v5836_v29  ;;  %v4115_v29 = vld [vmem:[%s6492_s6 + $0x38] sm:$0xff]  }
 0x1ca   : > { %3847 = vmatprep.subr.bf16.mxu1 %v4115_v29 }
 0x1cb   : > { %3848 = vmatpush3.bf16.msra.mxu1 %v4115_v29 }
 0x1cc   : > { %3849 = vmatprep.subr.bf16.mxu1 %v4117_v48 }
 0x1cf   : > { %3850 = vmatpush3.bf16.msra.mxu1 %v4117_v48 }
 0x1d0   : > { %3840 = vmatmul.mubr.msk.bf16.gmra.mxu1 %vm6861_vm8, %v5890_v16  ;;  %3851 = vmatprep.subr.bf16.mxu1 %v4118_v36 }
 0x1d1   : > { %3843 = vmatprep.mubr.msk.bf16.mxu1 %vm5827_vm1, %v5673_v9  ;;  %v4113_v9 = vld [vmem:[%s6493_s7 + $0x28] sm:$0xff]  }
 0x1d2   : > { %3883 = vmatprep.subr.bf16.mxu0 %v4113_v9 }
 0x1d3   : > { %3884 = vmatpush3.bf16.msra.mxu0 %v4113_v9  ;;  %3852 = vmatpush3.bf16.msra.mxu1 %v4118_v36 }
 0x1d4   : > { %3885 = vmatprep.subr.bf16.mxu0 %v4114_v31  ;;  %3853 = vmatprep.subr.bf16.mxu1 %v4120_v52 }
 0x1d7   : > { %v3555_v40 = vpop.f32.mrf.mxu0  ;;  %3886 = vmatpush3.bf16.msra.mxu0 %v4114_v31  ;;  %3854 = vmatpush3.bf16.msra.mxu1 %v4120_v52 }
 0x1d8   : > { %3844 = vmatmul.mubr.msk.bf16.gmra.mxu1 %vm6862_vm5, %v6865_v4  ;;  %3887 = vmatprep.subr.bf16.mxu0 %v4116_v32 }
 0x1d9   : > { %v3556_v1 = vpop.f32.mrf.mxu0  ;;  %3855 = vmatprep.subr.bf16.mxu1 %v4121_v53 }
 0x1da   : > { %v3557_v62 = vadd.f32 %v3556_v1, %v3555_v40 }
 0x1db   : > { %v3558_v51 = vpop.f32.mrf.mxu0  ;;  %3888 = vmatpush3.bf16.msra.mxu0 %v4116_v32  ;;  %3856 = vmatpush3.bf16.msra.mxu1 %v4121_v53  ;;  %v4132_v53 = vld [vmem:[#allocation2 + $0x30] sm:$0xff]  }
 0x1dc   : > { %3889 = vmatprep.subr.bf16.mxu0 %v4119_v28  ;;  %3857 = vmatprep.subr.bf16.mxu1 %v4123_v46 }
 0x1dd   : > { %v3559_v63 = vpop.f32.mrf.mxu0 }
 0x1de   : > { %v3560_v27 = vadd.f32 %v3559_v63, %v3558_v51  ;;  %v4126_v51 = vld [vmem:[%s6492_s6] sm:$0xff]  }
 0x1df   : > { %3890 = vmatpush3.bf16.msra.mxu0 %v4119_v28  ;;  %3858 = vmatpush3.bf16.msra.mxu1 %v4123_v46 }
 0x1e0   : > { %3891 = vmatprep.subr.bf16.mxu0 %v4122_v35  ;;  %3859 = vmatprep.subr.bf16.mxu1 %v4125_v45 }
 0x1e3   : > { %v3561_v7 = vpop.f32.mrf.mxu0  ;;  %3892 = vmatpush3.bf16.msra.mxu0 %v4122_v35  ;;  %3860 = vmatpush3.bf16.msra.mxu1 %v4125_v45 }
 0x1e4   : > { %3893 = vmatprep.subr.bf16.mxu0 %v4124_v24  ;;  %3861 = vmatprep.subr.bf16.mxu1 %v4126_v51 }
 0x1e5   : > { %v3562_v54 = vpop.f32.mrf.mxu0 }
 0x1e6   : > { %v3563_v2 = vadd.f32 %v3562_v54, %v3561_v7 }
 0x1e7   : > { %v3564_v39 = vpop.f32.mrf.mxu0  ;;  %3894 = vmatpush3.bf16.msra.mxu0 %v4124_v24  ;;  %3862 = vmatpush3.bf16.msra.mxu1 %v4126_v51 }
 0x1e9   : > { %v3565_v19 = vpop.f32.mrf.mxu0 }
 0x1ea   : > { %v6123_v43 = vadd.f32 %v3565_v19, %v3564_v39 }
 0x1ef   : > { %v3567_v50 = vpop.f32.mrf.mxu0 }
 0x1f1   : > { %v3568_v22 = vpop.f32.mrf.mxu0 }
 0x1f2   : > { %v6128_v20 = vadd.f32 %v3568_v22, %v3567_v50 }
 0x1f3   : > { %v3570_v16 = vpop.f32.mrf.mxu0 }
 0x1f5   : > { %v3571_v42 = vpop.f32.mrf.mxu0 }
 0x1f6   : > { %v6136_v44 = vadd.f32 %v3571_v42, %v3570_v16  ;;  %v4130_v42 = vld [vmem:[#allocation2 + $0x20] sm:$0xff]  }
 0x1f9   : > { %v3573_v37 = vpop.f32.mrf.mxu0 }
 0x1fb   : > { %v3574_v8 = vpop.f32.mrf.mxu0 }
 0x1fc   : > { %v6141_v34 = vadd.f32 %v3574_v8, %v3573_v37  ;;  %v4131_v8 = vld [vmem:[#allocation2 + $0x28] sm:$0xff]  }
 0x1fd   : > { %v3491_v33 = vpop.f32.mrf.mxu1  ;;  %v3576_v58 = vpop.f32.mrf.mxu0 }
 0x1ff   : > { %v3492_v25 = vpop.f32.mrf.mxu1  ;;  %v3577_v47 = vpop.f32.mrf.mxu0 }
 0x200   : > { %v3493_v12 = vadd.f32 %v3492_v25, %v3491_v33  ;;  %v6143_v60 = vadd.f32 %v3577_v47, %v3576_v58 }
 0x201   : > { %v3494_v30 = vpop.f32.mrf.mxu1 }
 0x202   : > { %v6145_v11 = vadd.f32 %v3557_v62, %v3493_v12 }
 0x203   : > { %v3579_v6 = vpop.f32.mrf.mxu0  ;;  %v3495_v26 = vpop.f32.mrf.mxu1 }
 0x204   : > { %v3496_v13 = vadd.f32 %v3495_v26, %v3494_v30 }
 0x205   : > { %v3580_v57 = vpop.f32.mrf.mxu0 }
 0x206   : > { %v6153_v23 = vadd.f32 %v3580_v57, %v3579_v6  ;;  %v6155_v0 = vadd.f32 %v3560_v27, %v3496_v13  ;;  %v4128_v27 = vld [vmem:[#allocation2 + $0x10] sm:$0xff]  }
 0x207   : > { %v3497_v59 = vpop.f32.mrf.mxu1  ;;  %v3582_v61 = vpop.f32.mrf.mxu0  ;;  %3896 = vmatmul.mubr.bf16.vlgmr.msra.gmra.mxu0 %v4128_v27 }
 0x209   : > { %v3498_v10 = vpop.f32.mrf.mxu1  ;;  %v3583_v21 = vpop.f32.mrf.mxu0 }
 0x20a   : > { %v3499_v14 = vadd.f32 %v3498_v10, %v3497_v59  ;;  %v6157_v56 = vadd.f32 %v3583_v21, %v3582_v61  ;;  %v4133_v59 = vld [vmem:[#allocation2 + $0x38] sm:$0xff]  }
 0x20b   : > { %v3500_v55 = vpop.f32.mrf.mxu1 }
 0x20c   : > { %v6159_v38 = vadd.f32 %v3563_v2, %v3499_v14  ;;  %v4129_v2 = vld [vmem:[#allocation2 + $0x18] sm:$0xff]  }
 0x20d   : > { %v3501_v49 = vpop.f32.mrf.mxu1  ;;  %3899 = vmatprep.mubr.bf16.mxu0 %v4129_v2 }
 0x20e   : > { %v3502_v5 = vadd.f32 %v3501_v49, %v3500_v55 }
 0x20f   : > { %3900 = vmatmul.mubr.bf16.gmra.mxu0 %v4130_v42 }
 0x210   : > { %v3585_v17 = vpop.f32.mrf.mxu0  ;;  %v3503_v18 = vpop.f32.mrf.mxu1  ;;  %v6173_v4 = vadd.f32 %v6123_v43, %v3502_v5  ;;  %3903 = vmatprep.mubr.bf16.mxu0 %v4131_v8  ;;  %v4134_v5 = vld [vmem:[#allocation2 + $0x40] sm:$0xff]  }
 0x212   : > { %v3586_v15 = vpop.f32.mrf.mxu0  ;;  %v3504_v40 = vpop.f32.mrf.mxu1 }
 0x213   : > { %v6170_v3 = vadd.f32 %v3586_v15, %v3585_v17  ;;  %v3505_v1 = vadd.f32 %v3504_v40, %v3503_v18 }
 0x214   : > { %v3588_v41 = vpop.f32.mrf.mxu0  ;;  %v3506_v62 = vpop.f32.mrf.mxu1 }
 0x215   : > { %v6179_v31 = vadd.f32 %v6128_v20, %v3505_v1 }
 0x216   : > { %v3589_v9 = vpop.f32.mrf.mxu0  ;;  %v3507_v54 = vpop.f32.mrf.mxu1 }
 0x217   : > { %v3590_v63 = vadd.f32 %v3589_v9, %v3588_v41  ;;  %v3508_v39 = vadd.f32 %v3507_v54, %v3506_v62  ;;  %3904 = vmatmul.mubr.bf16.gmra.mxu0 %v4132_v53 }
 0x218   : > { %v3591_v7 = vpop.f32.mrf.mxu0  ;;  %v3509_v29 = vpop.f32.mrf.mxu1  ;;  %3907 = vmatprep.mubr.bf16.mxu0 %v4133_v59 }
 0x219   : > { %v6182_v43 = vadd.f32 %v6136_v44, %v3508_v39 }
 0x21a   : > { %v3592_v19 = vpop.f32.mrf.mxu0  ;;  %v3510_v50 = vpop.f32.mrf.mxu1 }
 0x21b   : > { %v3593_v32 = vadd.f32 %v3592_v19, %v3591_v7  ;;  %v3511_v22 = vadd.f32 %v3510_v50, %v3509_v29 }
 0x21c   : > { %v3594_v48 = vpop.f32.mrf.mxu0  ;;  %v3512_v36 = vpop.f32.mrf.mxu1 }
 0x21d   : > { %v6185_v16 = vadd.f32 %v6141_v34, %v3511_v22 }
 0x21e   : > { %v3595_v20 = vpop.f32.mrf.mxu0  ;;  %v3513_v37 = vpop.f32.mrf.mxu1 }
 0x21f   : > { %v3596_v28 = vadd.f32 %v3595_v20, %v3594_v48  ;;  %v3514_v33 = vadd.f32 %v3513_v37, %v3512_v36  ;;  %3908 = vmatmul.mubr.bf16.gmra.mxu0 %v4134_v5 }
 0x220   : > { %v3597_v52 = vpop.f32.mrf.mxu0  ;;  %v3515_v25 = vpop.f32.mrf.mxu1 }
 0x221   : > { %v6188_v12 = vadd.f32 %v6143_v60, %v3514_v33 }
 0x222   : > { %v3598_v58 = vpop.f32.mrf.mxu0  ;;  %v3516_v30 = vpop.f32.mrf.mxu1 }
 0x223   : > { %v3599_v44 = vadd.f32 %v3598_v58, %v3597_v52  ;;  %v3517_v6 = vadd.f32 %v3516_v30, %v3515_v25 }
 0x224   : > { %v6190_v47 = vpop.f32.mrf.mxu0  ;;  %v3518_v34 = vpop.f32.mrf.mxu1 }
 0x225   : > { %v6195_v13 = vadd.f32 %v6153_v23, %v3517_v6 }
 0x226   : > { %v6192_v26 = vpop.f32.mrf.mxu0  ;;  %v3519_v57 = vpop.f32.mrf.mxu1 }
 0x227   : > { %6866 = vst [vmem:[#allocation13_spill] sm:$0xff] %v6195_v13  ;;  %v3520_v61 = vadd.f32 %v3519_v57, %v3518_v34 }
 0x228   : > { %v6197_v35 = vpop.f32.mrf.mxu0  ;;  %v3521_v10 = vpop.f32.mrf.mxu1 }
 0x229   : > { %v6202_v14 = vadd.f32 %v6157_v56, %v3520_v61 }
 0x22a   : > { %v6199_v60 = vpop.f32.mrf.mxu0  ;;  %v3522_v55 = vpop.f32.mrf.mxu1 }
 0x22b   : > { %6867 = vst [vmem:[#allocation12_spill] sm:$0xff] %v6202_v14  ;;  %v3523_v46 = vadd.f32 %v3522_v55, %v3521_v10 }
 0x22c   : > { %v6204_v21 = vpop.f32.mrf.mxu0  ;;  %v3524_v17 = vpop.f32.mrf.mxu1 }
 0x22d   : > { %v6209_v49 = vadd.f32 %v6170_v3, %v3523_v46 }
 0x22e   : > { %v6206_v23 = vpop.f32.mrf.mxu0  ;;  %v3525_v45 = vpop.f32.mrf.mxu1 }
 0x22f   : > { %v3526_v15 = vadd.f32 %v3525_v45, %v3524_v17 }
 0x230   : > { %v6211_v24 = vpop.f32.mrf.mxu0  ;;  %v3527_v56 = vpop.f32.mrf.mxu1 }
 0x231   : > { %v6215_v41 = vadd.f32 %v3590_v63, %v3526_v15 }
 0x232   : > { %v6213_v18 = vpop.f32.mrf.mxu0  ;;  %v3528_v1 = vpop.f32.mrf.mxu1 }
 0x233   : > { %6868 = vst [vmem:[#allocation19_spill] sm:$0xff] %v6215_v41  ;;  %v3529_v9 = vadd.f32 %v3528_v1, %v3527_v56 }
 0x234   : > { %v6217_v40 = vpop.f32.mrf.mxu0  ;;  %v3530_v62 = vpop.f32.mrf.mxu1 }
 0x235   : > { %v6221_v3 = vadd.f32 %v3593_v32, %v3529_v9 }
 0x236   : > { %v6219_v51 = vpop.f32.mrf.mxu0  ;;  %v3531_v27 = vpop.f32.mrf.mxu1 }
 0x237   : > { %6869 = vst [vmem:[#allocation20_spill] sm:$0xff] %v6221_v3  ;;  %v3532_v7 = vadd.f32 %v3531_v27, %v3530_v62 }
 0x238   : > { %v3533_v54 = vpop.f32.mrf.mxu1  ;;  %v6223_v2 = vpop.f32.mrf.mxu0 }
 0x239   : > { %v6225_v39 = vadd.f32 %v3596_v28, %v3532_v7 }
 0x23a   : > { %v3534_v19 = vpop.f32.mrf.mxu1  ;;  %v6227_v48 = vpop.f32.mrf.mxu0 }
 0x23b   : > { %6870 = vst [vmem:[#allocation26_spill] sm:$0xff] %v6225_v39  ;;  %v3535_v29 = vadd.f32 %v3534_v19, %v3533_v54 }
 0x23c   : > { %v3536_v63 = vpop.f32.mrf.mxu1  ;;  %v6233_v32 = vpop.f32.mrf.mxu0 }
 0x23d   : > { %v6229_v50 = vadd.f32 %v3599_v44, %v3535_v29 }
 0x23e   : > { %v3537_v22 = vpop.f32.mrf.mxu1  ;;  %v6235_v8 = vpop.f32.mrf.mxu0 }
 0x23f   : > { %6871 = vst [vmem:[#allocation25_spill] sm:$0xff] %v6229_v50  ;;  %v6231_v20 = vadd.f32 %v3537_v22, %v3536_v63 }
 0x240   : > { %v3619_v36 = vpop.f32.mrf.mxu1  ;;  %v6238_v25 = vpop.f32.mrf.mxu0 }
 0x242   : > { %v3620_v42 = vpop.f32.mrf.mxu1  ;;  %v6240_v6 = vpop.f32.mrf.mxu0 }
 0x243   : > { %v3621_v52 = vadd.f32 %v3620_v42, %v3619_v36 }
 0x244   : > { %v3622_v37 = vpop.f32.mrf.mxu1  ;;  %v6242_v57 = vpop.f32.mrf.mxu0 }
 0x245   : > { %v2367_v28 = vadd.f32 %v3621_v52, %v6145_v11 }
 0x246   : > { %v3623_v33 = vpop.f32.mrf.mxu1  ;;  %v6244_v10 = vpop.f32.mrf.mxu0 }
 0x248   : > { %v3625_v58 = vpop.f32.mrf.mxu1  ;;  %v6246_v17 = vpop.f32.mrf.mxu0 }
 0x24a   : > { %v3626_v30 = vpop.f32.mrf.mxu1  ;;  %v6248_v45 = vpop.f32.mrf.mxu0 }
 0x24b   : > { %v3627_v41 = vadd.f32 %v3626_v30, %v3625_v58  ;;  %v3685_v58 = vadd.f32 %v6199_v60, %v6197_v35  ;;  %v3688_v60 = vadd.f32 %v6206_v23, %v6204_v21 }
 0x24c   : > { %v3628_v44 = vpop.f32.mrf.mxu1  ;;  %v6252_v1 = vpop.f32.mrf.mxu0 }
 0x24d   : > { %v2464_v35 = vadd.f32 %v3685_v58, %v2367_v28 }
 0x24e   : > { %v3629_v34 = vpop.f32.mrf.mxu1  ;;  %v6258_v27 = vpop.f32.mrf.mxu0 }
 0x250   : > { %v3631_v53 = vpop.f32.mrf.mxu1  ;;  %v6262_v19 = vpop.f32.mrf.mxu0 }
 0x252   : > { %v3632_v59 = vpop.f32.mrf.mxu1  ;;  %v6266_v22 = vpop.f32.mrf.mxu0 }
 0x254   : > { %v3634_v61 = vpop.f32.mrf.mxu1  ;;  %v6272_v52 = vpop.f32.mrf.mxu0 }
 0x255   : > { %6877 = vst [vmem:[#allocation30_spill] sm:$0xff] %v6272_v52 }
 0x256   : > { %v3635_v55 = vpop.f32.mrf.mxu1  ;;  %v6278_v50 = vpop.f32.mrf.mxu0 }
 0x257   : > { %6880 = vst [vmem:[#allocation35_spill] sm:$0xff] %v6278_v50 }
 0x258   : > { %v3637_v46 = vpop.f32.mrf.mxu1 }
 0x25a   : > { %v3638_v11 = vpop.f32.mrf.mxu1 }
 0x25c   : > { %v3640_v5 = vpop.f32.mrf.mxu1 }
 0x25e   : > { %v3641_v15 = vpop.f32.mrf.mxu1 }
 0x260   : > { %v6250_v56 = vpop.f32.mrf.mxu1 }
 0x262   : > { %v6254_v9 = vpop.f32.mrf.mxu1 }
 0x264   : > { %v6256_v62 = vpop.f32.mrf.mxu1 }
 0x265   : > { %6872 = vst [vmem:[#allocation22_spill] sm:$0xff] %v6256_v62  ;;  %v6284_v62 = vpop.f32.mrf.mxu0 }
 0x266   : > { %v6260_v7 = vpop.f32.mrf.mxu1  ;;  %6882 = vst [vmem:[#allocation33_spill] sm:$0xff] %v6284_v62 }
 0x267   : > { %6873 = vst [vmem:[#allocation21_spill] sm:$0xff] %v6260_v7  ;;  %v6293_v52 = vpop.f32.mrf.mxu0 }
 0x268   : > { %v3649_v54 = vpop.f32.mrf.mxu1 }
 0x26a   : > { %v3650_v29 = vpop.f32.mrf.mxu1 }
 0x26c   : > { %v6264_v63 = vpop.f32.mrf.mxu1 }
 0x26d   : > { %6874 = vst [vmem:[#allocation28_spill] sm:$0xff] %v6264_v63 }
 0x26e   : > { %v6268_v36 = vpop.f32.mrf.mxu1 }
 0x26f   : > { %6875 = vst [vmem:[#allocation27_spill] sm:$0xff] %v6268_v36  ;;  %v2375_v36 = vadd.f32 %v3627_v41, %v6159_v38  ;;  %v6303_v41 = vld [vmem:[%s6496_s10] ss:$0 sm:$0xff] }
 0x270   : > { %v6270_v42 = vpop.f32.mrf.mxu1 }
 0x271   : > { %6876 = vst [vmem:[#allocation29_spill] sm:$0xff] %v6270_v42  ;;  %v3630_v42 = vadd.f32 %v3629_v34, %v3628_v44 }
 0x272   : > { %v6274_v39 = vpop.f32.mrf.mxu1 }
 0x273   : > { %6878 = vst [vmem:[#allocation14_spill] sm:$0xff] %v6274_v39  ;;  %v3691_v39 = vadd.f32 %v6213_v18, %v6211_v24  ;;  %v2378_v30 = vadd.f32 %v3630_v42, %v6173_v4  ;;  %v3694_v24 = vadd.f32 %v6219_v51, %v6217_v40  ;;  %v3602_v4 = vadd.f32 %v6192_v26, %v6190_v47  ;;  %v6324_v26 = vld [vmem:[%s6497_s11] ss:$0 sm:$0xff] }
 0x274   : > { %v6276_v3 = vpop.f32.mrf.mxu1  ;;  %v3642_v47 = vadd.f32 %v3641_v15, %v3640_v5 }
 0x275   : > { %6879 = vst [vmem:[#allocation15_spill] sm:$0xff] %v6276_v3  ;;  %v3624_v3 = vadd.f32 %v3623_v33, %v3622_v37  ;;  %v2472_v62 = vadd.f32 %v3691_v39, %v2375_v36  ;;  %v6308_v37 = vpop.f32.mrf.mxu0  ;;  %v3697_v39 = vadd.f32 %v6227_v48, %v6223_v2 }
 0x276   : > { %v6280_v14 = vpop.f32.mrf.mxu1 }
 0x277   : > { %6881 = vst [vmem:[#allocation32_spill] sm:$0xff] %v6280_v14  ;;  %v3639_v14 = vadd.f32 %v3638_v11, %v3637_v46  ;;  %v2370_v18 = vadd.f32 %v3624_v3, %v6155_v0  ;;  %v2475_v0 = vadd.f32 %v3694_v24, %v2378_v30  ;;  %v3700_v3 = vadd.f32 %v6235_v8, %v6233_v32  ;;  %v6886_v24 = vld [vmem:[#allocation13_spill] sm:$0xff] }
 0x278   : > { %v6282_v7 = vpop.f32.mrf.mxu1  ;;  %v6332_v32 = vadd.f32 %v3602_v4, %v6231_v20  ;;  %v3651_v8 = vadd.f32 %v3650_v29, %v3649_v54  ;;  %v2394_v11 = vadd.f32 %v3642_v47, %v6188_v12  ;;  %v3645_v20 = vadd.f32 %v6254_v9, %v6250_v56  ;;  %v6884_v29 = vld [vmem:[#allocation28_spill] sm:$0xff]  ;;  %v6885_v56 = vld [vmem:[#allocation27_spill] sm:$0xff] }
 0x279   : > { %v2391_v34 = vadd.f32 %v3639_v14, %v6185_v16  ;;  %v3703_v16 = vadd.f32 %v6240_v6, %v6238_v25  ;;  %v6328_v14 = vpop.f32.mrf.mxu0  ;;  %v2467_v48 = vadd.f32 %v3688_v60, %v2370_v18  ;;  %v3712_v54 = vadd.f32 %v6258_v27, %v6252_v1 }
 0x27a   : > { %v6286_v13 = vpop.f32.mrf.mxu1  ;;  %v2407_v12 = vadd.f32 %v3651_v8, %v6209_v49  ;;  %v3654_v9 = vadd.f32 %v6885_v56, %v6884_v29  ;;  %v2399_v18 = vadd.f32 %v3645_v20, %v6886_v24  ;;  %v6896_v20 = vld [vmem:[#allocation12_spill] sm:$0xff] }
 0x27b   : > { %6883 = vst [vmem:[#allocation16_spill] sm:$0xff] %v6286_v13  ;;  %v3633_v13 = vadd.f32 %v3632_v59, %v3631_v53  ;;  %v3636_v53 = vadd.f32 %v3635_v55, %v3634_v61  ;;  %v2488_v55 = vadd.f32 %v3703_v16, %v2391_v34  ;;  %v6889_v34 = vld [vmem:[#allocation30_spill] sm:$0xff] }
 0x27c   : > { %v6289_v63 = vpop.f32.mrf.mxu1 }
 0x27d   : > { %v2383_v28 = vadd.f32 %v3633_v13, %v6179_v31  ;;  %v3706_v31 = vadd.f32 %v6244_v10, %v6242_v57  ;;  %v3709_v13 = vadd.f32 %v6248_v45, %v6246_v17  ;;  %v2386_v46 = vadd.f32 %v3636_v53, %v6182_v43  ;;  %v3725_v10 = vpop.f32.mrf.mxu0 }
 0x27e   : > { %v6295_v50 = vpop.f32.mrf.mxu1  ;;  %v3715_v43 = vadd.f32 %v6266_v22, %v6262_v19  ;;  %v6887_v19 = vld [vmem:[#allocation22_spill] sm:$0xff]  ;;  %v6888_v22 = vld [vmem:[#allocation21_spill] sm:$0xff]  ;;  %v6900_v24 = vld [vmem:[#allocation32_spill] sm:$0xff] }
 0x27f   : > { %v2480_v57 = vadd.f32 %v3697_v39, %v2383_v28  ;;  %v2483_v27 = vadd.f32 %v3700_v3, %v2386_v46  ;;  %v3726_v4 = vpop.f32.mrf.mxu0  ;;  %v3648_v49 = vadd.f32 %v6888_v22, %v6887_v19 }
 0x280   : > { %v3833_v38 = vpop.f32.mrf.mxu1  ;;  %v2504_v47 = vadd.f32 %v3715_v43, %v2407_v12  ;;  %v6897_v12 = vld [vmem:[#allocation25_spill] sm:$0xff] }
 0x281   : > { %v2569_v33 = vadd.f32 %v3833_v38, %v2472_v62 }
 0x282   : > { %v2560_v44 = vpop.f32.mrf.mxu1 }
 0x283   : > { %v2632_v40 = vmul.f32 %v6303_v41, %v2569_v33  ;;  %v2561_v51 = vadd.f32 %v2560_v44, %v2464_v35  ;;  %v2491_v35 = vadd.f32 %v3706_v31, %v2394_v11  ;;  %v6893_v31 = vld [vmem:[#allocation33_spill] sm:$0xff]  ;;  %v3728_v11 = vpop.f32.mrf.mxu0 }
 0x284   : > { %v3834_v21 = vpop.f32.mrf.mxu1  ;;  %v3721_v8 = vadd.f32 %v6293_v52, %v6893_v31  ;;  %v3666_v52 = vadd.f32 %v6295_v50, %v6289_v63  ;;  %v6899_v63 = vld [vmem:[#allocation15_spill] sm:$0xff] }
 0x285   : > { %v2630_v23 = vmul.f32 %v6303_v41, %v2561_v51  ;;  %v2572_v2 = vadd.f32 %v3834_v21, %v2475_v0  ;;  %v2655_v61 = vadd.f32 %v6324_v26, %v2632_v40  ;;  %v6890_v40 = vld [vmem:[#allocation35_spill] sm:$0xff]  ;;  %v3729_v50 = vpop.f32.mrf.mxu0 }
 0x286   : > { %v2563_v59 = vpop.f32.mrf.mxu1  ;;  %v3718_v51 = vadd.f32 %v6890_v40, %v6889_v34  ;;  %v6891_v21 = vld [vmem:[#allocation19_spill] sm:$0xff]  ;;  %v3730_v34 = vadd.f32 %v3729_v50, %v3728_v11 }
 0x287   : > { %v2633_v25 = vmul.f32 %v6303_v41, %v2572_v2  ;;  %v2564_v6 = vadd.f32 %v2563_v59, %v2467_v48  ;;  %v2653_v17 = vadd.f32 %v6324_v26, %v2630_v23  ;;  %v2671_v42 = vmax.f32 %v2655_v61, 0.0  ;;  %v6892_v23 = vld [vmem:[#allocation16_spill] sm:$0xff]  ;;  %v6894_v59 = vld [vmem:[#allocation29_spill] sm:$0xff]  ;;  %v6895_v61 = vld [vmem:[#allocation14_spill] sm:$0xff] }
 0x288   : > { %v3837_v5 = vpop.f32.mrf.mxu1  ;;  %v2410_v16 = vadd.f32 %v3654_v9, %v6891_v21  ;;  %v3663_v3 = vadd.f32 %v6892_v23, %v6282_v7  ;;  %v2496_v7 = vadd.f32 %v3709_v13, %v2399_v18  ;;  %v3660_v18 = vadd.f32 %v6900_v24, %v6899_v63 }
 0x289   : > { %v2656_v45 = vadd.f32 %v6324_v26, %v2633_v25  ;;  %v2631_v15 = vmul.f32 %v6303_v41, %v2564_v6  ;;  %v2585_v62 = vadd.f32 %v3837_v5, %v2488_v55  ;;  %v2669_v60 = vmax.f32 %v2653_v17, 0.0 }
 0x28a   : > { %v2576_v36 = vpop.f32.mrf.mxu1  ;;  %v3657_v25 = vadd.f32 %v6895_v61, %v6894_v59  ;;  %v2402_v5 = vadd.f32 %v3648_v49, %v6896_v20  ;;  %v2423_v29 = vadd.f32 %v3663_v3, %v6897_v12 }
 0x28b   : > { %v2672_v58 = vmax.f32 %v2656_v45, 0.0  ;;  %v2654_v30 = vadd.f32 %v6324_v26, %v2631_v15  ;;  %v2577_v38 = vadd.f32 %v2576_v36, %v2480_v57  ;;  %v2636_v33 = vmul.f32 %v6303_v41, %v2585_v62 }
 0x28c   : > { %v3838_v1 = vpop.f32.mrf.mxu1  ;;  %v3727_v45 = vadd.f32 %v3726_v4, %v3725_v10  ;;  %v2507_v36 = vadd.f32 %v3718_v51, %v2410_v16  ;;  %v3724_v16 = vadd.f32 %v6328_v14, %v6308_v37 }
 0x28d   : > { %v2686_v39 = vpack.c.bf16 %v2672_v58, %v2671_v42  ;;  %v2670_v44 = vmax.f32 %v2654_v30, 0.0  ;;  %v2634_v0 = vmul.f32 %v6303_v41, %v2577_v38  ;;  %v2588_v28 = vadd.f32 %v3838_v1, %v2491_v35  ;;  %v6898_v42 = vld [vmem:[#allocation20_spill] sm:$0xff] }
 0x28e   : > { %v2579_v53 = vpop.f32.mrf.mxu1  ;;  %v2659_v6 = vadd.f32 %v6324_v26, %v2636_v33  ;;  %v2415_v58 = vadd.f32 %v3657_v25, %v6898_v42  ;;  %v2499_v1 = vadd.f32 %v3712_v54, %v2402_v5 }
 0x28f   : > { %v2580_v2 = vadd.f32 %v2579_v53, %v2483_v27  ;;  %v2685_v48 = vpack.c.bf16 %v2670_v44, %v2669_v60  ;;  %v2637_v55 = vmul.f32 %v6303_v41, %v2588_v28  ;;  %v2657_v15 = vadd.f32 %v6324_v26, %v2634_v0  ;;  %v6901_v53 = vld [vmem:[#allocation26_spill] sm:$0xff] }
 0x290   : > { %v3841_v46 = vpop.f32.mrf.mxu1  ;;  %v2675_v30 = vmax.f32 %v2659_v6, 0.0  ;;  %v2426_v27 = vadd.f32 %v3666_v52, %v6332_v32  ;;  %v2520_v44 = vadd.f32 %v3727_v45, %v2423_v29  ;;  %v2512_v28 = vadd.f32 %v3721_v8, %v2415_v58 }
 0x291   : > { %v2635_v57 = vmul.f32 %v6303_v41, %v2580_v2  ;;  %v2601_v17 = vadd.f32 %v3841_v46, %v2504_v47  ;;  %3863 = vmatprep.mubr.bf16.mxu1 %v2685_v48  ;;  %v2660_v62 = vadd.f32 %v6324_v26, %v2637_v55  ;;  %v2673_v4 = vmax.f32 %v2657_v15, 0.0 }
 0x292   : > { %v2592_v43 = vpop.f32.mrf.mxu1  ;;  %3864 = vmatmul.mubr.bf16.vlgmr.msra.gmra.mxu1 %v2686_v39  ;;  %v2418_v47 = vadd.f32 %v3660_v18, %v6901_v53  ;;  %v2523_v2 = vadd.f32 %v3730_v34, %v2426_v27 }
 0x293   : > { %v2658_v56 = vadd.f32 %v6324_v26, %v2635_v57  ;;  %v2593_v9 = vadd.f32 %v2592_v43, %v2496_v7  ;;  %v2676_v13 = vmax.f32 %v2660_v62, 0.0  ;;  %v2640_v10 = vmul.f32 %v6303_v41, %v2601_v17 }
 0x294   : > { %v3842_v38 = vpop.f32.mrf.mxu1  ;;  %v2515_v11 = vadd.f32 %v3724_v16, %v2418_v47 }
 0x295   : > { %v2674_v33 = vmax.f32 %v2658_v56, 0.0  ;;  %v2604_v35 = vadd.f32 %v3842_v38, %v2507_v36  ;;  %v2638_v19 = vmul.f32 %v6303_v41, %v2593_v9  ;;  %v2688_v49 = vpack.c.bf16 %v2676_v13, %v2675_v30 }
 0x296   : > { %v2595_v22 = vpop.f32.mrf.mxu1  ;;  %v2663_v40 = vadd.f32 %v6324_v26, %v2640_v10 }
 0x297   : > { %v2641_v60 = vmul.f32 %v6303_v41, %v2604_v35  ;;  %v2596_v39 = vadd.f32 %v2595_v22, %v2499_v1  ;;  %v2687_v0 = vpack.c.bf16 %v2674_v33, %v2673_v4  ;;  %v2661_v23 = vadd.f32 %v6324_v26, %v2638_v19 }
 0x298   : > { %v3845_v51 = vpop.f32.mrf.mxu1  ;;  %v2679_v61 = vmax.f32 %v2663_v40, 0.0 }
 0x299   : > { %v2664_v54 = vadd.f32 %v6324_v26, %v2641_v60  ;;  %v2639_v32 = vmul.f32 %v6303_v41, %v2596_v39  ;;  %v2617_v21 = vadd.f32 %v3845_v51, %v2520_v44  ;;  %3867 = vmatprep.mubr.bf16.mxu1 %v2687_v0  ;;  %v2677_v37 = vmax.f32 %v2661_v23, 0.0 }
 0x29a   : > { %v2608_v3 = vpop.f32.mrf.mxu1  ;;  %3868 = vmatmul.mubr.bf16.gmra.mxu1 %v2688_v49 }
 0x29b   : > { %v2680_v48 = vmax.f32 %v2664_v54, 0.0  ;;  %v2662_v31 = vadd.f32 %v6324_v26, %v2639_v32  ;;  %v2644_v8 = vmul.f32 %v6303_v41, %v2617_v21  ;;  %v2609_v59 = vadd.f32 %v2608_v3, %v2512_v28 }
 0x29c   : > { %v3846_v25 = vpop.f32.mrf.mxu1 }
 0x29d   : > { %v2678_v6 = vmax.f32 %v2662_v31, 0.0  ;;  %v2642_v55 = vmul.f32 %v6303_v41, %v2609_v59  ;;  %v2620_v46 = vadd.f32 %v3846_v25, %v2523_v2  ;;  %v2690_v20 = vpack.c.bf16 %v2680_v48, %v2679_v61 }
 0x29e   : > { %v2611_v14 = vpop.f32.mrf.mxu1  ;;  %v2667_v5 = vadd.f32 %v6324_v26, %v2644_v8 }
 0x29f   : > { %v2645_v57 = vmul.f32 %v6303_v41, %v2620_v46  ;;  %v2612_v17 = vadd.f32 %v2611_v14, %v2515_v11  ;;  %v2689_v7 = vpack.c.bf16 %v2678_v6, %v2677_v37  ;;  %v2665_v45 = vadd.f32 %v6324_v26, %v2642_v55 }
 0x2a0   : > { %v2683_v62 = vmax.f32 %v2667_v5, 0.0 }
 0x2a1   : > { %v2668_v52 = vadd.f32 %v6324_v26, %v2645_v57  ;;  %v2643_v15 = vmul.f32 %v6303_v41, %v2612_v17  ;;  %3871 = vmatprep.mubr.bf16.mxu1 %v2689_v7  ;;  %v2681_v29 = vmax.f32 %v2665_v45, 0.0 }
 0x2a2   : > { %3872 = vmatmul.mubr.bf16.gmra.mxu1 %v2690_v20 }
 0x2a3   : > { %v2684_v43 = vmax.f32 %v2668_v52, 0.0  ;;  %v2666_v12 = vadd.f32 %v6324_v26, %v2643_v15 }
 0x2a5   : > { %v2682_v56 = vmax.f32 %v2666_v12, 0.0  ;;  %v2692_v9 = vpack.c.bf16 %v2684_v43, %v2683_v62 }
 0x2a7   : > { %v2691_v36 = vpack.c.bf16 %v2682_v56, %v2681_v29 }
 0x2a9   : > { %3875 = vmatprep.mubr.bf16.mxu1 %v2691_v36 }
 0x2aa   : > { %3876 = vmatmul.mubr.bf16.gmra.mxu1 %v2692_v9 }
 0x2c7   : > { %v3897_v42 = vpop.f32.mrf.mxu0 }
 0x2c9   : > { %v2936_v58 = vpop.f32.mrf.mxu0 }
 0x2cb   : > { %v3898_v30 = vpop.f32.mrf.mxu0 }
 0x2cd   : > { %v2939_v13 = vpop.f32.mrf.mxu0 }
 0x2cf   : > { %v3901_v10 = vpop.f32.mrf.mxu0 }
 0x2d1   : > { %v2952_v41 = vpop.f32.mrf.mxu0 }
 0x2d3   : > { %v3902_v38 = vpop.f32.mrf.mxu0 }
 0x2d5   : > { %v2955_v50 = vpop.f32.mrf.mxu0 }
 0x2d7   : > { %v3905_v33 = vpop.f32.mrf.mxu0 }
 0x2d9   : > { %v2968_v19 = vpop.f32.mrf.mxu0 }
 0x2db   : > { %v3906_v39 = vpop.f32.mrf.mxu0 }
 0x2dd   : > { %v2971_v0 = vpop.f32.mrf.mxu0 }
 0x2df   : > { %v3909_v32 = vpop.f32.mrf.mxu0 }
 0x2e1   : > { %v2984_v3 = vpop.f32.mrf.mxu0 }
 0x2e3   : > { %v3910_v59 = vpop.f32.mrf.mxu0 }
 0x2e5   : > { %v2987_v46 = vpop.f32.mrf.mxu0 }
 0x352   : > { %v3865_v26 = vpop.f32.mrf.mxu1 }
 0x353   : > { %v2945_v63 = vadd.f32 %v3897_v42, %v3865_v26 }
 0x354   : > { %v2791_v24 = vpop.f32.mrf.mxu1 }
 0x355   : > { %3001 = vst [vmem:[%s6405_s20 + $0x10] sm:$0xff] %v2945_v63  ;;  %v2937_v18 = vadd.f32 %v2936_v58, %v2791_v24 }
 0x356   : > { %v3866_v35 = vpop.f32.mrf.mxu1 }
 0x357   : > { %2999 = vst [vmem:[%s6405_s20] sm:$0xff] %v2937_v18  ;;  %v2948_v1 = vadd.f32 %v3898_v30, %v3866_v35 }
 0x358   : > { %v2794_v27 = vpop.f32.mrf.mxu1 }
 0x359   : > { %3002 = vst [vmem:[%s6405_s20 + $0x18] sm:$0xff] %v2948_v1  ;;  %v2940_v4 = vadd.f32 %v2939_v13, %v2794_v27 }
 0x35a   : > { %v3869_v22 = vpop.f32.mrf.mxu1 }
 0x35b   : > { %3000 = vst [vmem:[%s6405_s20 + $0x8] sm:$0xff] %v2940_v4  ;;  %v2961_v49 = vadd.f32 %v3901_v10, %v3869_v22 }
 0x35c   : > { %v2807_v60 = vpop.f32.mrf.mxu1 }
 0x35d   : > { %3005 = vst [vmem:[%s6405_s20 + $0x30] sm:$0xff] %v2961_v49  ;;  %v2953_v44 = vadd.f32 %v2952_v41, %v2807_v60 }
 0x35e   : > { %v3870_v34 = vpop.f32.mrf.mxu1 }
 0x35f   : > { %3003 = vst [vmem:[%s6405_s20 + $0x20] sm:$0xff] %v2953_v44  ;;  %v2964_v40 = vadd.f32 %v3902_v38, %v3870_v34 }
 0x360   : > { %v2810_v51 = vpop.f32.mrf.mxu1 }
 0x361   : > { %3006 = vst [vmem:[%s6405_s20 + $0x38] sm:$0xff] %v2964_v40  ;;  %v2956_v28 = vadd.f32 %v2955_v50, %v2810_v51 }
 0x362   : > { %v3873_v53 = vpop.f32.mrf.mxu1 }
 0x363   : > { %3004 = vst [vmem:[%s6405_s20 + $0x28] sm:$0xff] %v2956_v28  ;;  %v2977_v47 = vadd.f32 %v3905_v33, %v3873_v53 }
 0x364   : > { %v2823_v54 = vpop.f32.mrf.mxu1 }
 0x365   : > { %3009 = vst [vmem:[%s6405_s20 + $0x50] sm:$0xff] %v2977_v47  ;;  %v2969_v21 = vadd.f32 %v2968_v19, %v2823_v54 }
 0x366   : > { %v3874_v16 = vpop.f32.mrf.mxu1 }
 0x367   : > { %3007 = vst [vmem:[%s6405_s20 + $0x40] sm:$0xff] %v2969_v21  ;;  %v2980_v23 = vadd.f32 %v3906_v39, %v3874_v16 }
 0x368   : > { %v2826_v2 = vpop.f32.mrf.mxu1 }
 0x369   : > { %3010 = vst [vmem:[%s6405_s20 + $0x58] sm:$0xff] %v2980_v23  ;;  %v2972_v48 = vadd.f32 %v2971_v0, %v2826_v2 }
 0x36a   : > { %v3877_v31 = vpop.f32.mrf.mxu1 }
 0x36b   : > { %3008 = vst [vmem:[%s6405_s20 + $0x48] sm:$0xff] %v2972_v48  ;;  %v2993_v8 = vadd.f32 %v3909_v32, %v3877_v31 }
 0x36c   : > { %v2839_v61 = vpop.f32.mrf.mxu1 }
 0x36d   : > { %3013 = vst [vmem:[%s6405_s20 + $0x70] sm:$0xff] %v2993_v8  ;;  %v2985_v25 = vadd.f32 %v2984_v3, %v2839_v61 }
 0x36e   : > { %v3878_v6 = vpop.f32.mrf.mxu1 }
 0x36f   : > { %3011 = vst [vmem:[%s6405_s20 + $0x60] sm:$0xff] %v2985_v25  ;;  %v2996_v55 = vadd.f32 %v3910_v59, %v3878_v6 }
 0x370   : > { %v2842_v11 = vpop.f32.mrf.mxu1 }
 0x371   : > { %3014 = vst [vmem:[%s6405_s20 + $0x78] sm:$0xff] %v2996_v55  ;;  %v2988_v37 = vadd.f32 %v2987_v46, %v2842_v11 }
 0x373   : > { %3012 = vst [vmem:[%s6405_s20 + $0x68] sm:$0xff] %v2988_v37 }
 0x374   : > { %4148 = shalt.err (!%p4145_p11)
}
 0x375   : > { %s4149_s15 = scalar_lea.hbm %s6427_s19, 2048  ;;  %s4153_s30 = scalar_lea.hbm %s6498_s12, 8192 }
 0x376   : > { %p4150_p12 = scmp.ne.s32.totalorder %s6427_s19, %s4149_s15  ;;  %p4154_p1 = scmp.lt.s32.totalorder %s6427_s19, %s6498_s12 }
 0x377   : > { %p4155_p2 = scmp.lt.s32.totalorder %s4153_s30, %s4149_s15 }
 0x378   : > { %p4151_p13 = pnand %p4150_p12, %p4351_p3 }
 0x379   : > { %p4156_p4 = por %p4155_p2, %p4154_p1 }
 0x37a   : > { %p4152_p0 = pneg %p4151_p13 }
 0x37c   : > { %p4157_p5 = pnand %p4156_p4, %p4152_p0 }
 0x37e   : > { %4160 = shalt.err (!%p4157_p5)
}
 0x37f   : > { %s4233_s3 = smov 128   ;;  %s4234_s21 = smov 8  }
 0x380   : > { %3913 = dma.vmem_to_hbm [thread:$0]  (%p4351_p3), %s6429_s24, 2048, %s6427_s19, %s6435_s18, %s4233_s3, %s4233_s3, %s4234_s21  }
 0x381 PF: > { %s6902_s26 = sld [smem:[#allocation6_spill]]  ;;  %p3919_p6 = scmp.ge.s32.totalorder %s4227_s28, 2 }
 0x383   : > { %p3916_p7 = pnand %p3919_p6, %p4360_p8 }
 0x385   : > { %p3917_p9 = pneg %p3916_p7 }
 0x387   : > { %s3047_s13 = sand.u32 1, %s6902_s26  }
 0x388   : > { %s3048_s15 = scalar_lea.sflag [#allocation4], %s3047_s13 }
 0x389   : > { %4194 = dma.done.wait (%p3917_p9), %s3048_s15, 2048  }
 0x38a   : > { %4196 = vsyncadd (%p3917_p9), %s3048_s15, 4294965248  ;;  %s25_s28 = sadd.s32 1, %s4227_s28   ;;  %s6903_s24 = sld [smem:[#allocation7_spill]] }
 0x38b   : > { %p22_p10 = scmp.ge.s32.totalorder %s25_s28, 6   ;;  %s6904_s25 = sld [smem:[#allocation8_spill]] }
 0x38c   : > { %s6905_s26 = sld [smem:[#allocation9_spill]]  ;;  %s6907_s21 = smov %s4203_s22 }
 0x38d   : > { %s6906_s27 = sld [smem:[#allocation10_spill]]  ;;  %s6908_s22 = smov %s4207_s23 }
 0x38e   : > { %s6909_s23 = smov %s4369_s29  ;;  %24 = sbr.rel (!%p22_p10) target bundleno = 7 (0x7), region = 112 }
 0x393   :  { %3053 = vsyncpa [#allocation4], 1 }
 0x394   :  { %3055 = vsyncpa [#allocation4 + $0x1], 1 }

</bundles_post_ra>
